<compile_context>
chip_gen: v7x
topology: tpu7x:2x2x1
jax: 0.10.0
libtpu: 0.0.40
codegen_flags: <defaults>
</compile_context>

<pallas_src>
import jax
import jax.numpy as jnp
import numpy as np
from jax import lax
from jax.experimental import pallas as pl
from jax.experimental.pallas import tpu as pltpu

EPS = 1e-5

# Module geometry (implied by Conv2d(181,70,k=2) + Linear(70*77*1, 800)).
CIN, COUT, KH, KW = 181, 70, 2, 2
H_IN, W_IN = 155, 3
HO, WO = H_IN - KH + 1, W_IN - KW + 1          # 154, 2
HP, WP = HO // 2, WO // 2                      # 77, 1
K = CIN * KH * KW                              # 724

# Padded (lane/sublane friendly) sizes.
HP_PAD = 80                                    # 77 -> 80 pooled rows / sample
C_PAD = 128                                    # 70 -> 128 conv channels
K_PAD = 768                                    # 724 -> 768 conv contraction
KFLAT = HP_PAD * COUT                          # 5600 flattened features
KFLAT_PAD = 5632                               # 5600 -> 44*128 (lane multiple)
K1_TILE = 1408                                 # 5632 / 4 contraction tiles
K1_STEPS = KFLAT_PAD // K1_TILE                # 4
H1, H1_PAD = 800, 896
H2, H2_PAD = 200, 256
H3, H3_PAD = 75, 128
NCLS, OUT_PAD = 4, 128


# ----------------------------- Pallas kernels ------------------------------

def _conv_bn_relu_pool_kernel(xc_ref, w_ref, scale_ref, shift_ref, o_ref):
    # One sample per grid step.  Conv(2x2,valid) as a single MXU matmul over
    # im2col patches, folded-BN affine, then MaxPool(2x2,2) + ReLU.  The 4
    # pool candidates live in 4 contiguous 80-row blocks, so pooling is three
    # plain VPU maxima on lane-dense (80,128) slabs.  Padded hp rows are
    # masked to exactly zero (robustness: layer 1 no longer has to rely on
    # zero-padded w1 rows).
    m = HP_PAD
    y = jnp.dot(xc_ref[...], w_ref[...], preferred_element_type=jnp.float32)
    y = y * scale_ref[...] + shift_ref[...]
    pooled = jnp.maximum(jnp.maximum(y[0:m, :], y[m:2 * m, :]),
                         jnp.maximum(y[2 * m:3 * m, :], y[3 * m:4 * m, :]))
    pooled = jnp.maximum(pooled, 0.0)
    row = lax.broadcasted_iota(jnp.int32, (m, C_PAD), 0)
    o_ref[...] = jnp.where(row < HP, pooled, 0.0)


def _mlp_kernel(x_ref, w1q_ref, s1_ref, b1_ref, w2_ref, b2_ref,
                w3_ref, b3_ref, w4_ref, b4_ref, o_ref, acc_ref):
    # Grid axis = layer-1 contraction tiles.  Each step streams one int8 w1
    # block (double-buffered by the BlockSpec pipeline), dequantizes to f32
    # and accumulates into acc_ref.  Last step applies the per-column scale +
    # b1, ReLU, and runs the tiny layers 2-4.  Dropout = identity (eval).
    k = pl.program_id(0)

    @pl.when(k == 0)
    def _():
        acc_ref[...] = jnp.zeros_like(acc_ref)

    w1f = w1q_ref[...].astype(jnp.float32)
    acc_ref[...] += jnp.dot(x_ref[...], w1f, preferred_element_type=jnp.float32)

    @pl.when(k == pl.num_programs(0) - 1)
    def _():
        h = jnp.maximum(acc_ref[...] * s1_ref[...] + b1_ref[...], 0.0)
        h = jnp.maximum(
            jnp.dot(h, w2_ref[...], preferred_element_type=jnp.float32) + b2_ref[...], 0.0)
        h = jnp.maximum(
            jnp.dot(h, w3_ref[...], preferred_element_type=jnp.float32) + b3_ref[...], 0.0)
        o_ref[...] = jnp.dot(h, w4_ref[...],
                             preferred_element_type=jnp.float32) + b4_ref[...]


# ----------------------- One-time parameter preparation ---------------------

def prepare_params(params):
    (conv_w, conv_b, g, bb, mu, var, w1, b1, w2, b2, w3, b3, w4, b4) = params

    # Fold conv bias + eval-mode BatchNorm into per-channel scale/shift (f32).
    inv_std = g / jnp.sqrt(var + EPS)
    scale = jnp.zeros((1, C_PAD), jnp.float32).at[0, :COUT].set(inv_std)
    shift = jnp.zeros((1, C_PAD), jnp.float32).at[0, :COUT].set(
        bb + (conv_b - mu) * inv_std)

    # Conv weight -> lane-dense (K_PAD, C_PAD) matrix, (ci,dy,dx) row order.
    wcol = conv_w.reshape(COUT, K).T
    wcol_p = jnp.pad(wcol, ((0, K_PAD - K), (0, C_PAD - COUT))).astype(jnp.float32)

    # PyTorch flatten order is feature = c*77 + hp; the conv kernel emits
    # (hp, c) order with hp padded to 80.  Permute/pad w1's rows once, then
    # quantize to int8 with a per-output-column scale (dominant HBM stream
    # halved vs bf16).
    w1_r = jnp.transpose(w1.reshape(COUT, HP, H1), (1, 0, 2))        # (77,70,800)
    w1_p = jnp.pad(w1_r, ((0, HP_PAD - HP), (0, 0), (0, H1_PAD - H1)))
    w1_p = w1_p.reshape(KFLAT, H1_PAD)                               # (5600,896)
    w1_p = jnp.pad(w1_p, ((0, KFLAT_PAD - KFLAT), (0, 0)))           # (5632,896)
    maxabs = jnp.max(jnp.abs(w1_p), axis=0, keepdims=True)           # (1,896)
    s1 = jnp.where(maxabs > 0, maxabs / 127.0, 1.0).astype(jnp.float32)
    w1q = jnp.clip(jnp.round(w1_p / s1), -127.0, 127.0).astype(jnp.int8)
    b1_p = jnp.pad(b1, ((0, 0), (0, H1_PAD - H1))).astype(jnp.float32)

    # Layers 2-4 are tiny (<1.1 MiB total in f32) -> keep full precision.
    w2_p = jnp.pad(w2, ((0, H1_PAD - H1), (0, H2_PAD - H2))).astype(jnp.float32)
    b2_p = jnp.pad(b2, ((0, 0), (0, H2_PAD - H2))).astype(jnp.float32)
    w3_p = jnp.pad(w3, ((0, H2_PAD - H2), (0, H3_PAD - H3))).astype(jnp.float32)
    b3_p = jnp.pad(b3, ((0, 0), (0, H3_PAD - H3))).astype(jnp.float32)
    w4_p = jnp.pad(w4, ((0, H3_PAD - H3), (0, OUT_PAD - NCLS))).astype(jnp.float32)
    b4_p = jnp.pad(b4, ((0, 0), (0, OUT_PAD - NCLS))).astype(jnp.float32)

    return (wcol_p, scale, shift, w1q, s1, b1_p,
            w2_p, b2_p, w3_p, b3_p, w4_p, b4_p)


# ------------------------------ Forward pass --------------------------------

@jax.jit
def sheep_classifier_forward(x, prepped):
    (wcol_p, scale, shift, w1q, s1, b1_p,
     w2_p, b2_p, w3_p, b3_p, w4_p, b4_p) = prepped
    N = x.shape[0]

    # im2col glue (f32, all fused under this jit).  Patch feature order
    # (ci, dy, dx) matches wcol_p rows.  Candidate (r, wq) of pooled output
    # (n, hp) is conv position (ho=2*hp+r, wo=wq); candidates are stacked as 4
    # contiguous row blocks per sample so pooling is slab maxima in-kernel.
    # TODO(synk): im2col kept in XLA (in-kernel variant needs awkward 3-wide
    # lane layouts); acceptable since it is sub-MiB and jit-fused.
    pats = jnp.stack([x[:, :, dy:dy + HO, dx:dx + WO]
                      for dy in range(KH) for dx in range(KW)], axis=2)
    pats = pats.reshape(N, K, HO, WO)                        # (N, 724, 154, 2)
    cands = [jnp.transpose(pats[:, :, r::2, wq], (0, 2, 1))  # (N, 77, 724)
             for r in range(2) for wq in range(WO)]
    xc = jnp.stack(cands, axis=1)                            # (N, 4, 77, 724)
    xc = jnp.pad(xc, ((0, 0), (0, 0), (0, HP_PAD - HP), (0, K_PAD - K)))
    xc = xc.reshape(N * 4 * HP_PAD, K_PAD)                   # (N*320, 768) f32

    pooled = pl.pallas_call(
        _conv_bn_relu_pool_kernel,
        out_shape=jax.ShapeDtypeStruct((N * HP_PAD, C_PAD), jnp.float32),
        grid=(N,),
        in_specs=[pl.BlockSpec((4 * HP_PAD, K_PAD), lambda n: (n, 0)),
                  pl.BlockSpec((K_PAD, C_PAD), lambda n: (0, 0)),
                  pl.BlockSpec((1, C_PAD), lambda n: (0, 0)),
                  pl.BlockSpec((1, C_PAD), lambda n: (0, 0))],
        out_specs=pl.BlockSpec((HP_PAD, C_PAD), lambda n: (n, 0)),
        compiler_params=pltpu.CompilerParams(
            dimension_semantics=("parallel",)),
    )(xc, wcol_p, scale, shift)

    # Flatten in (hp, c) order (w1 rows were pre-permuted to match) and pad the
    # feature axis to a lane multiple so the layer-1 contraction can be tiled.
    # TODO(synk): w1 prefetch during the conv stage (cross-call semaphore
    # future) not implemented; with int8 w1 the exposed DMA is already small.
    feats = pooled.reshape(N, HP_PAD, C_PAD)[:, :, :COUT].reshape(N, KFLAT)
    feats = jnp.pad(feats, ((0, 0), (0, KFLAT_PAD - KFLAT)))         # (N, 5632)

    out = pl.pallas_call(
        _mlp_kernel,
        out_shape=jax.ShapeDtypeStruct((N, OUT_PAD), jnp.float32),
        grid=(K1_STEPS,),
        in_specs=[pl.BlockSpec((N, K1_TILE), lambda k: (0, k)),
                  pl.BlockSpec((K1_TILE, H1_PAD), lambda k: (k, 0)),
                  pl.BlockSpec((1, H1_PAD), lambda k: (0, 0)),
                  pl.BlockSpec((1, H1_PAD), lambda k: (0, 0)),
                  pl.BlockSpec((H1_PAD, H2_PAD), lambda k: (0, 0)),
                  pl.BlockSpec((1, H2_PAD), lambda k: (0, 0)),
                  pl.BlockSpec((H2_PAD, H3_PAD), lambda k: (0, 0)),
                  pl.BlockSpec((1, H3_PAD), lambda k: (0, 0)),
                  pl.BlockSpec((H3_PAD, OUT_PAD), lambda k: (0, 0)),
                  pl.BlockSpec((1, OUT_PAD), lambda k: (0, 0))],
        out_specs=pl.BlockSpec((N, OUT_PAD), lambda k: (0, 0)),
        scratch_shapes=[pltpu.VMEM((N, H1_PAD), jnp.float32)],
        compiler_params=pltpu.CompilerParams(
            dimension_semantics=("arbitrary",),
            vmem_limit_bytes=32 * 1024 * 1024),
    )(feats, w1q, s1, b1_p, w2_p, b2_p, w3_p, b3_p, w4_p, b4_p)

    return out[:, :NCLS]


# -------------------------- Params & pure-JAX ref ---------------------------

def init_params(key):
    ks = jax.random.split(key, 14)

    def rnd(k, shape, s=0.04):
        return jax.random.normal(k, shape, jnp.float32) * s

    conv_w = rnd(ks[0], (COUT, CIN, KH, KW))
    conv_b = rnd(ks[1], (COUT,))
    bn_gamma = 1.0 + rnd(ks[2], (COUT,), 0.1)
    bn_beta = rnd(ks[3], (COUT,), 0.1)
    bn_mean = rnd(ks[4], (COUT,), 0.1)
    bn_var = 0.5 + jax.random.uniform(ks[5], (COUT,), jnp.float32)
    w1 = rnd(ks[6], (COUT * HP * WP, H1)); b1 = rnd(ks[7], (1, H1))
    w2 = rnd(ks[8], (H1, H2));             b2 = rnd(ks[9], (1, H2))
    w3 = rnd(ks[10], (H2, H3));            b3 = rnd(ks[11], (1, H3))
    w4 = rnd(ks[12], (H3, NCLS));          b4 = rnd(ks[13], (1, NCLS))
    return (conv_w, conv_b, bn_gamma, bn_beta, bn_mean, bn_var,
            w1, b1, w2, b2, w3, b3, w4, b4)


def reference_forward(x, params):
    (conv_w, conv_b, g, bb, mu, var, w1, b1, w2, b2, w3, b3, w4, b4) = params
    y = lax.conv_general_dilated(x, conv_w, (1, 1), 'VALID',
                                 dimension_numbers=('NCHW', 'OIHW', 'NCHW'))
    y = y + conv_b[None, :, None, None]
    y = ((y - mu[None, :, None, None]) * (g / jnp.sqrt(var + EPS))[None, :, None, None]
         + bb[None, :, None, None])
    y = jnp.maximum(y, 0.0)
    y = lax.reduce_window(y, -jnp.inf, lax.max, (1, 1, 2, 2), (1, 1, 2, 2), 'VALID')
    y = y.reshape(y.shape[0], -1)
    y = jnp.maximum(y @ w1 + b1, 0.0)
    y = jnp.maximum(y @ w2 + b2, 0.0)
    y = jnp.maximum(y @ w3 + b3, 0.0)
    return y @ w4 + b4


# ---------------------------------- main ------------------------------------

if __name__ == "__main__":
    key = jax.random.PRNGKey(0)
    kx, kp = jax.random.split(key)

    # Input shape implied by Linear(70*77*1, 800): (N, 181, 155, 3) NCHW.
    x = jax.random.normal(kx, (2, CIN, H_IN, W_IN), jnp.float32)
    params = init_params(kp)
    prepped = prepare_params(params)   # one-time pad / permute / int8 quantize

    out = jax.block_until_ready(sheep_classifier_forward(x, prepped))
    ref = jax.block_until_ready(reference_forward(x, params))

    assert out.shape == (2, NCLS), out.shape
    assert np.all(np.isfinite(np.asarray(out)))
    max_diff = np.max(np.abs(np.asarray(out) - np.asarray(ref)))
    assert np.allclose(np.asarray(out), np.asarray(ref), rtol=5e-2, atol=5e-2), \
        f"max abs diff {max_diff}"

    # TODO(synk): train-mode Dropout/BatchNorm randomness not modeled (eval semantics used).
    print("KERNEL_OK")
</pallas_src>

<mosaic_0001>
module attributes {stable_mosaic.version = 11 : i64} {
  func.func @_conv_bn_relu_pool_kernel(%arg0: i32, %arg1: memref<320x768xf32, #tpu.memory_space<vmem>>, %arg2: memref<768x128xf32, #tpu.memory_space<vmem>>, %arg3: memref<1x128xf32, #tpu.memory_space<vmem>>, %arg4: memref<1x128xf32, #tpu.memory_space<vmem>>, %arg5: memref<80x128xf32, #tpu.memory_space<vmem>>) attributes {dimension_semantics = [#tpu.dimension_semantics<parallel>], iteration_bounds = array<i64: 2>, scalar_prefetch = 0 : i64, scratch_operands = 0 : i64, tpu.core_type = #tpu.core_type<tc>, window_params = [{transform_indices = @transform_0, window_bounds = array<i64: 320, 768>}, {pipeline_mode = #tpu.pipeline_mode<synchronous>, transform_indices = @transform_1, window_bounds = array<i64: 768, 128>}, {pipeline_mode = #tpu.pipeline_mode<synchronous>, transform_indices = @transform_2, window_bounds = array<i64: 1, 128>}, {pipeline_mode = #tpu.pipeline_mode<synchronous>, transform_indices = @transform_3, window_bounds = array<i64: 1, 128>}, {transform_indices = @transform_4, window_bounds = array<i64: 80, 128>}]} {
    %c0 = arith.constant 0 : index
    %c0_0 = arith.constant 0 : index
    %0 = vector.load %arg1[%c0, %c0_0] : memref<320x768xf32, #tpu.memory_space<vmem>>, vector<320x768xf32>
    %c0_1 = arith.constant 0 : index
    %c0_2 = arith.constant 0 : index
    %1 = vector.load %arg2[%c0_1, %c0_2] : memref<768x128xf32, #tpu.memory_space<vmem>>, vector<768x128xf32>
    %cst = arith.constant dense<0.000000e+00> : vector<320x128xf32>
    %2 = tpu.matmul %0, %1, %cst {dimension_numbers = #tpu.dot_dimension_numbers<[1], [0], [0], [1], [0, 0, 1, 1], [], []>} : vector<320x768xf32>, vector<768x128xf32>, vector<320x128xf32> -> vector<320x128xf32>
    %c0_3 = arith.constant 0 : index
    %c0_4 = arith.constant 0 : index
    %3 = vector.load %arg3[%c0_3, %c0_4] : memref<1x128xf32, #tpu.memory_space<vmem>>, vector<1x128xf32>
    %4 = vector.broadcast %3 : vector<1x128xf32> to vector<320x128xf32>
    %5 = arith.mulf %2, %4 : vector<320x128xf32>
    %c0_5 = arith.constant 0 : index
    %c0_6 = arith.constant 0 : index
    %6 = vector.load %arg4[%c0_5, %c0_6] : memref<1x128xf32, #tpu.memory_space<vmem>>, vector<1x128xf32>
    %7 = vector.broadcast %6 : vector<1x128xf32> to vector<320x128xf32>
    %8 = arith.addf %5, %7 : vector<320x128xf32>
    %9 = vector.extract_strided_slice %8 {offsets = [0, 0], sizes = [80, 128], strides = [1, 1]} : vector<320x128xf32> to vector<80x128xf32>
    %10 = vector.extract_strided_slice %8 {offsets = [80, 0], sizes = [80, 128], strides = [1, 1]} : vector<320x128xf32> to vector<80x128xf32>
    %11 = arith.maximumf %9, %10 : vector<80x128xf32>
    %12 = vector.extract_strided_slice %8 {offsets = [160, 0], sizes = [80, 128], strides = [1, 1]} : vector<320x128xf32> to vector<80x128xf32>
    %13 = vector.extract_strided_slice %8 {offsets = [240, 0], sizes = [80, 128], strides = [1, 1]} : vector<320x128xf32> to vector<80x128xf32>
    %14 = arith.maximumf %12, %13 : vector<80x128xf32>
    %15 = arith.maximumf %11, %14 : vector<80x128xf32>
    %cst_7 = arith.constant 0.000000e+00 : f32
    %16 = vector.broadcast %cst_7 : f32 to vector<80x128xf32>
    %17 = arith.maximumf %15, %16 : vector<80x128xf32>
    %18 = tpu.iota {dimensions = array<i32: 0>} : vector<80x128xi32>
    %c77_i32 = arith.constant 77 : i32
    %19 = vector.broadcast %c77_i32 : i32 to vector<80x128xi32>
    %20 = arith.cmpi slt, %18, %19 : vector<80x128xi32>
    %cst_8 = arith.constant 0.000000e+00 : f32
    %21 = vector.broadcast %cst_8 : f32 to vector<80x128xf32>
    %22 = arith.select %20, %17, %21 : vector<80x128xi1>, vector<80x128xf32>
    %c0_9 = arith.constant 0 : index
    %c0_10 = arith.constant 0 : index
    %23 = vector.load %arg5[%c0_9, %c0_10] : memref<80x128xf32, #tpu.memory_space<vmem>>, vector<80x128xf32>
    tpu.vector_store %arg5[%c0_9, %c0_10], %22 {strides = array<i32>} : memref<80x128xf32, #tpu.memory_space<vmem>>, vector<80x128xf32>,
    return
  }
  func.func @transform_0(%arg0: i32) -> (i32, i32) {
    %c0_i32 = arith.constant 0 : i32
    %c0_i32_0 = arith.constant 0 : i32
    return %arg0, %c0_i32 : i32, i32
  }
  func.func @transform_1(%arg0: i32) -> (i32, i32) {
    %c0_i32 = arith.constant 0 : i32
    %c0_i32_0 = arith.constant 0 : i32
    %c0_i32_1 = arith.constant 0 : i32
    return %c0_i32, %c0_i32_0 : i32, i32
  }
  func.func @transform_2(%arg0: i32) -> (i32, i32) {
    %c0_i32 = arith.constant 0 : i32
    %c0_i32_0 = arith.constant 0 : i32
    %c0_i32_1 = arith.constant 0 : i32
    return %c0_i32, %c0_i32_0 : i32, i32
  }
  func.func @transform_3(%arg0: i32) -> (i32, i32) {
    %c0_i32 = arith.constant 0 : i32
    %c0_i32_0 = arith.constant 0 : i32
    %c0_i32_1 = arith.constant 0 : i32
    return %c0_i32, %c0_i32_0 : i32, i32
  }
  func.func @transform_4(%arg0: i32) -> (i32, i32) {
    %c0_i32 = arith.constant 0 : i32
    %c0_i32_0 = arith.constant 0 : i32
    return %arg0, %c0_i32 : i32, i32
  }
}

module attributes {stable_mosaic.version = 11 : i64} {
  func.func @_mlp_kernel(%arg0: i32, %arg1: memref<2x1408xf32, #tpu.memory_space<vmem>>, %arg2: memref<1408x896xi8, #tpu.memory_space<vmem>>, %arg3: memref<1x896xf32, #tpu.memory_space<vmem>>, %arg4: memref<1x896xf32, #tpu.memory_space<vmem>>, %arg5: memref<896x256xf32, #tpu.memory_space<vmem>>, %arg6: memref<1x256xf32, #tpu.memory_space<vmem>>, %arg7: memref<256x128xf32, #tpu.memory_space<vmem>>, %arg8: memref<1x128xf32, #tpu.memory_space<vmem>>, %arg9: memref<128x128xf32, #tpu.memory_space<vmem>>, %arg10: memref<1x128xf32, #tpu.memory_space<vmem>>, %arg11: memref<2x128xf32, #tpu.memory_space<vmem>>, %arg12: memref<2x896xf32, #tpu.memory_space<vmem>>) attributes {dimension_semantics = [#tpu.dimension_semantics<arbitrary>], iteration_bounds = array<i64: 4>, scalar_prefetch = 0 : i64, scratch_operands = 1 : i64, tpu.core_type = #tpu.core_type<tc>, window_params = [{transform_indices = @transform_0, window_bounds = array<i64: 2, 1408>}, {transform_indices = @transform_1, window_bounds = array<i64: 1408, 896>}, {pipeline_mode = #tpu.pipeline_mode<synchronous>, transform_indices = @transform_2, window_bounds = array<i64: 1, 896>}, {pipeline_mode = #tpu.pipeline_mode<synchronous>, transform_indices = @transform_3, window_bounds = array<i64: 1, 896>}, {pipeline_mode = #tpu.pipeline_mode<synchronous>, transform_indices = @transform_4, window_bounds = array<i64: 896, 256>}, {pipeline_mode = #tpu.pipeline_mode<synchronous>, transform_indices = @transform_5, window_bounds = array<i64: 1, 256>}, {pipeline_mode = #tpu.pipeline_mode<synchronous>, transform_indices = @transform_6, window_bounds = array<i64: 256, 128>}, {pipeline_mode = #tpu.pipeline_mode<synchronous>, transform_indices = @transform_7, window_bounds = array<i64: 1, 128>}, {pipeline_mode = #tpu.pipeline_mode<synchronous>, transform_indices = @transform_8, window_bounds = array<i64: 128, 128>}, {pipeline_mode = #tpu.pipeline_mode<synchronous>, transform_indices = @transform_9, window_bounds = array<i64: 1, 128>}, {pipeline_mode = #tpu.pipeline_mode<synchronous>, transform_indices = @transform_10, window_bounds = array<i64: 2, 128>}]} {
    %c0_i32 = arith.constant 0 : i32
    %0 = arith.cmpi eq, %arg0, %c0_i32 : i32
    %1 = arith.extui %0 : i1 to i32
    %c0_i32_0 = arith.constant 0 : i32
    %2 = arith.cmpi ne, %1, %c0_i32_0 : i32
    scf.if %2 {
      %cst_9 = arith.constant 0.000000e+00 : f32
      %13 = vector.broadcast %cst_9 : f32 to vector<2x896xf32>
      %c0_10 = arith.constant 0 : index
      %c0_11 = arith.constant 0 : index
      %14 = vector.load %arg12[%c0_10, %c0_11] : memref<2x896xf32, #tpu.memory_space<vmem>>, vector<2x896xf32>
      tpu.vector_store %arg12[%c0_10, %c0_11], %13 {strides = array<i32>} : memref<2x896xf32, #tpu.memory_space<vmem>>, vector<2x896xf32>,
    } else {
    }
    %c0 = arith.constant 0 : index
    %c0_1 = arith.constant 0 : index
    %3 = vector.load %arg2[%c0, %c0_1] : memref<1408x896xi8, #tpu.memory_space<vmem>>, vector<1408x896xi8>
    %4 = arith.sitofp %3 : vector<1408x896xi8> to vector<1408x896xf32>
    %c0_2 = arith.constant 0 : index
    %c0_3 = arith.constant 0 : index
    %5 = vector.load %arg12[%c0_2, %c0_3] : memref<2x896xf32, #tpu.memory_space<vmem>>, vector<2x896xf32>
    %c0_4 = arith.constant 0 : index
    %c0_5 = arith.constant 0 : index
    %6 = vector.load %arg1[%c0_4, %c0_5] : memref<2x1408xf32, #tpu.memory_space<vmem>>, vector<2x1408xf32>
    %cst = arith.constant dense<0.000000e+00> : vector<2x896xf32>
    %7 = tpu.matmul %6, %4, %cst {dimension_numbers = #tpu.dot_dimension_numbers<[1], [0], [0], [1], [0, 0, 1, 1], [], []>} : vector<2x1408xf32>, vector<1408x896xf32>, vector<2x896xf32> -> vector<2x896xf32>
    %8 = arith.addf %5, %7 : vector<2x896xf32>
    %c0_6 = arith.constant 0 : index
    %c0_7 = arith.constant 0 : index
    %9 = vector.load %arg12[%c0_6, %c0_7] : memref<2x896xf32, #tpu.memory_space<vmem>>, vector<2x896xf32>
    tpu.vector_store %arg12[%c0_6, %c0_7], %8 {strides = array<i32>} : memref<2x896xf32, #tpu.memory_space<vmem>>, vector<2x896xf32>,
    %c3_i32 = arith.constant 3 : i32
    %10 = arith.cmpi eq, %arg0, %c3_i32 : i32
    %11 = arith.extui %10 : i1 to i32
    %c0_i32_8 = arith.constant 0 : i32
    %12 = arith.cmpi ne, %11, %c0_i32_8 : i32
    scf.if %12 {
      %c0_9 = arith.constant 0 : index
      %c0_10 = arith.constant 0 : index
      %13 = vector.load %arg12[%c0_9, %c0_10] : memref<2x896xf32, #tpu.memory_space<vmem>>, vector<2x896xf32>
      %c0_11 = arith.constant 0 : index
      %c0_12 = arith.constant 0 : index
      %14 = vector.load %arg3[%c0_11, %c0_12] : memref<1x896xf32, #tpu.memory_space<vmem>>, vector<1x896xf32>
      %15 = vector.broadcast %14 : vector<1x896xf32> to vector<2x896xf32>
      %16 = arith.mulf %13, %15 : vector<2x896xf32>
      %c0_13 = arith.constant 0 : index
      %c0_14 = arith.constant 0 : index
      %17 = vector.load %arg4[%c0_13, %c0_14] : memref<1x896xf32, #tpu.memory_space<vmem>>, vector<1x896xf32>
      %18 = vector.broadcast %17 : vector<1x896xf32> to vector<2x896xf32>
      %19 = arith.addf %16, %18 : vector<2x896xf32>
      %cst_15 = arith.constant 0.000000e+00 : f32
      %20 = vector.broadcast %cst_15 : f32 to vector<2x896xf32>
      %21 = arith.maximumf %19, %20 : vector<2x896xf32>
      %c0_16 = arith.constant 0 : index
      %c0_17 = arith.constant 0 : index
      %22 = vector.load %arg5[%c0_16, %c0_17] : memref<896x256xf32, #tpu.memory_space<vmem>>, vector<896x256xf32>
      %cst_18 = arith.constant dense<0.000000e+00> : vector<2x256xf32>
      %23 = tpu.matmul %21, %22, %cst_18 {dimension_numbers = #tpu.dot_dimension_numbers<[1], [0], [0], [1], [0, 0, 1, 1], [], []>} : vector<2x896xf32>, vector<896x256xf32>, vector<2x256xf32> -> vector<2x256xf32>
      %c0_19 = arith.constant 0 : index
      %c0_20 = arith.constant 0 : index
      %24 = vector.load %arg6[%c0_19, %c0_20] : memref<1x256xf32, #tpu.memory_space<vmem>>, vector<1x256xf32>
      %25 = vector.broadcast %24 : vector<1x256xf32> to vector<2x256xf32>
      %26 = arith.addf %23, %25 : vector<2x256xf32>
      %cst_21 = arith.constant 0.000000e+00 : f32
      %27 = vector.broadcast %cst_21 : f32 to vector<2x256xf32>
      %28 = arith.maximumf %26, %27 : vector<2x256xf32>
      %c0_22 = arith.constant 0 : index
      %c0_23 = arith.constant 0 : index
      %29 = vector.load %arg7[%c0_22, %c0_23] : memref<256x128xf32, #tpu.memory_space<vmem>>, vector<256x128xf32>
      %cst_24 = arith.constant dense<0.000000e+00> : vector<2x128xf32>
      %30 = tpu.matmul %28, %29, %cst_24 {dimension_numbers = #tpu.dot_dimension_numbers<[1], [0], [0], [1], [0, 0, 1, 1], [], []>} : vector<2x256xf32>, vector<256x128xf32>, vector<2x128xf32> -> vector<2x128xf32>
      %c0_25 = arith.constant 0 : index
      %c0_26 = arith.constant 0 : index
      %31 = vector.load %arg8[%c0_25, %c0_26] : memref<1x128xf32, #tpu.memory_space<vmem>>, vector<1x128xf32>
      %32 = vector.broadcast %31 : vector<1x128xf32> to vector<2x128xf32>
      %33 = arith.addf %30, %32 : vector<2x128xf32>
      %cst_27 = arith.constant 0.000000e+00 : f32
      %34 = vector.broadcast %cst_27 : f32 to vector<2x128xf32>
      %35 = arith.maximumf %33, %34 : vector<2x128xf32>
      %c0_28 = arith.constant 0 : index
      %c0_29 = arith.constant 0 : index
      %36 = vector.load %arg9[%c0_28, %c0_29] : memref<128x128xf32, #tpu.memory_space<vmem>>, vector<128x128xf32>
      %cst_30 = arith.constant dense<0.000000e+00> : vector<2x128xf32>
      %37 = tpu.matmul %35, %36, %cst_30 {dimension_numbers = #tpu.dot_dimension_numbers<[1], [0], [0], [1], [0, 0, 1, 1], [], []>} : vector<2x128xf32>, vector<128x128xf32>, vector<2x128xf32> -> vector<2x128xf32>
      %c0_31 = arith.constant 0 : index
      %c0_32 = arith.constant 0 : index
      %38 = vector.load %arg10[%c0_31, %c0_32] : memref<1x128xf32, #tpu.memory_space<vmem>>, vector<1x128xf32>
      %39 = vector.broadcast %38 : vector<1x128xf32> to vector<2x128xf32>
      %40 = arith.addf %37, %39 : vector<2x128xf32>
      %c0_33 = arith.constant 0 : index
      %c0_34 = arith.constant 0 : index
      %41 = vector.load %arg11[%c0_33, %c0_34] : memref<2x128xf32, #tpu.memory_space<vmem>>, vector<2x128xf32>
      tpu.vector_store %arg11[%c0_33, %c0_34], %40 {strides = array<i32>} : memref<2x128xf32, #tpu.memory_space<vmem>>, vector<2x128xf32>,
    } else {
    }
    return
  }
  func.func @transform_0(%arg0: i32) -> (i32, i32) {
    %c0_i32 = arith.constant 0 : i32
    %c0_i32_0 = arith.constant 0 : i32
    return %c0_i32, %arg0 : i32, i32
  }
  func.func @transform_1(%arg0: i32) -> (i32, i32) {
    %c0_i32 = arith.constant 0 : i32
    %c0_i32_0 = arith.constant 0 : i32
    return %arg0, %c0_i32 : i32, i32
  }
  func.func @transform_2(%arg0: i32) -> (i32, i32) {
    %c0_i32 = arith.constant 0 : i32
    %c0_i32_0 = arith.constant 0 : i32
    %c0_i32_1 = arith.constant 0 : i32
    return %c0_i32, %c0_i32_0 : i32, i32
  }
  func.func @transform_3(%arg0: i32) -> (i32, i32) {
    %c0_i32 = arith.constant 0 : i32
    %c0_i32_0 = arith.constant 0 : i32
    %c0_i32_1 = arith.constant 0 : i32
    return %c0_i32, %c0_i32_0 : i32, i32
  }
  func.func @transform_4(%arg0: i32) -> (i32, i32) {
    %c0_i32 = arith.constant 0 : i32
    %c0_i32_0 = arith.constant 0 : i32
    %c0_i32_1 = arith.constant 0 : i32
    return %c0_i32, %c0_i32_0 : i32, i32
  }
  func.func @transform_5(%arg0: i32) -> (i32, i32) {
    %c0_i32 = arith.constant 0 : i32
    %c0_i32_0 = arith.constant 0 : i32
    %c0_i32_1 = arith.constant 0 : i32
    return %c0_i32, %c0_i32_0 : i32, i32
  }
  func.func @transform_6(%arg0: i32) -> (i32, i32) {
    %c0_i32 = arith.constant 0 : i32
    %c0_i32_0 = arith.constant 0 : i32
    %c0_i32_1 = arith.constant 0 : i32
    return %c0_i32, %c0_i32_0 : i32, i32
  }
  func.func @transform_7(%arg0: i32) -> (i32, i32) {
    %c0_i32 = arith.constant 0 : i32
    %c0_i32_0 = arith.constant 0 : i32
    %c0_i32_1 = arith.constant 0 : i32
    return %c0_i32, %c0_i32_0 : i32, i32
  }
  func.func @transform_8(%arg0: i32) -> (i32, i32) {
    %c0_i32 = arith.constant 0 : i32
    %c0_i32_0 = arith.constant 0 : i32
    %c0_i32_1 = arith.constant 0 : i32
    return %c0_i32, %c0_i32_0 : i32, i32
  }
  func.func @transform_9(%arg0: i32) -> (i32, i32) {
    %c0_i32 = arith.constant 0 : i32
    %c0_i32_0 = arith.constant 0 : i32
    %c0_i32_1 = arith.constant 0 : i32
    return %c0_i32, %c0_i32_0 : i32, i32
  }
  func.func @transform_10(%arg0: i32) -> (i32, i32) {
    %c0_i32 = arith.constant 0 : i32
    %c0_i32_0 = arith.constant 0 : i32
    %c0_i32_1 = arith.constant 0 : i32
    return %c0_i32, %c0_i32_0 : i32, i32
  }
}

</mosaic_0001>

<bundles_post_ra>
// kernel: sheep_classifier_forward.2
= control target key start
LH: loop header
LB: loop body
LE: loop exit
PB: predicated region body
PF: predicated region fallthrough
CT: control target
= control target key end

     0   :  { %s1917_s15 = smov 0   ;;  %s2854_s0 = inlined_call_operand.vmem [shape: f32[640,768], index: 0, kind: input, shape index: {}]   ;;  %s2855_s1 = inlined_call_operand.vmem [shape: f32[768,128], index: 1, kind: input, shape index: {}]   ;;  %s2856_s2 = inlined_call_operand.vmem [shape: f32[1,128], index: 2, kind: input, shape index: {}]   ;;  %s2857_s3 = inlined_call_operand.vmem [shape: f32[1,128], index: 3, kind: input, shape index: {}]   ;;  %s2858_s4 = inlined_call_operand.vmem [shape: f32[160,128], index: 4, kind: output, shape index: {}]  }
   0x1 LB: > { %s1566_s16 = sadd.s32 4294967295, %s1889_s15   ;;  %p1570_p0 = scmp.ge.s32.totalorder %s1889_s15, 1  ;;  %s1889_s15 = sphi %s1917_s15, %s14_s15  }
   0x2   : > { %p164_p1 = scmp.lt.s32.totalorder %s1889_s15, 3 }
   0x4   : > { %p165_p2 = pnand %p1570_p0, %p164_p1 }
   0x5   : > { %v444_v0 = vld [vmem:[%s2855_s1] sm:$0xff] (!%p165_p2)  ;;  %v445_v1 = vld [vmem:[%s2855_s1 + $0x8] sm:$0xff] (!%p165_p2)  ;;  %v1891_v3 = vmov (!%p165_p2), 0.0|0.0   ;;  %v446_v6 = vld [vmem:[%s2855_s1 + $0x10] sm:$0xff] (!%p165_p2)  ;;  %s191_s7 = smul.u32 (!%p165_p2), 40, %s1566_s16 }
   0x6   : > { %168 = sbr.rel (%p165_p2) target bundleno = 534 (0x216), region = 36  ;;  %v476_v2 = vld [vmem:[%s2855_s1 + $0x100] sm:$0xff] (!%p165_p2)  ;;  %1577 = vmatprep.subr.bf16.mxu1 (!%p165_p2), %v1891_v3  ;;  %1625 = vmatprep.subr.bf16.mxu0 (!%p165_p2), %v1891_v3  ;;  %v1578_v4 = vpack.c.bf16 (!%p165_p2), %v445_v1, %v444_v0  ;;  %v477_v5 = vld [vmem:[%s2855_s1 + $0x108] sm:$0xff] (!%p165_p2)  ;;  %v447_v7 = vld [vmem:[%s2855_s1 + $0x18] sm:$0xff] (!%p165_p2) }
   0x7   : > { %v1945_v8 = vpack.c.bf16 (!%p165_p2), %v477_v5, %v476_v2  ;;  %v478_v9 = vld [vmem:[%s2855_s1 + $0x110] sm:$0xff] (!%p165_p2)  ;;  %v479_v10 = vld [vmem:[%s2855_s1 + $0x118] sm:$0xff] (!%p165_p2)  ;;  %v1581_v11 = vpack.c.bf16 (!%p165_p2), %v447_v7, %v446_v6  ;;  %v448_v13 = vld [vmem:[%s2855_s1 + $0x20] sm:$0xff] (!%p165_p2)  ;;  %p192_p3 = scmp.lt.s32.totalorder (!%p165_p2), %s191_s7, 79  ;;  %s198_s5 = smul.u32 (!%p165_p2), 10, %s1566_s16 }
   0x8   : > { %1579 = vmatpush1.bf16.msra.mxu1 (!%p165_p2), %v1578_v4  ;;  %v1957_v12 = vpack.c.bf16 (!%p165_p2), %v479_v10, %v478_v9  ;;  %v449_v14 = vld [vmem:[%s2855_s1 + $0x28] sm:$0xff] (!%p165_p2)  ;;  %v480_v15 = vld [vmem:[%s2855_s1 + $0x120] sm:$0xff] (!%p165_p2)  ;;  %v450_v19 = vld [vmem:[%s2855_s1 + $0x30] sm:$0xff] (!%p165_p2) }
   0x9   : > { %1627 = vmatpush1.bf16.msra.mxu0 (!%p165_p2), %v1945_v8  ;;  %1580 = vmatprep.subr.bf16.mxu1 (!%p165_p2), %v1891_v3  ;;  %v481_v16 = vld [vmem:[%s2855_s1 + $0x128] sm:$0xff] (!%p165_p2)  ;;  %v1584_v17 = vpack.c.bf16 (!%p165_p2), %v449_v14, %v448_v13  ;;  %v451_v20 = vld [vmem:[%s2855_s1 + $0x38] sm:$0xff] (!%p165_p2)  ;;  %v482_v21 = vld [vmem:[%s2855_s1 + $0x130] sm:$0xff] (!%p165_p2)  ;;  %p199_p4 = scmp.lt.s32.totalorder (!%p165_p2), %s198_s5, 19 }
   0xa   : > { %1628 = vmatprep.subr.bf16.mxu0 (!%p165_p2), %v1891_v3  ;;  %v1974_v18 = vpack.c.bf16 (!%p165_p2), %v481_v16, %v480_v15  ;;  %v483_v22 = vld [vmem:[%s2855_s1 + $0x138] sm:$0xff] (!%p165_p2)  ;;  %v1587_v23 = vpack.c.bf16 (!%p165_p2), %v451_v20, %v450_v19  ;;  %v452_v25 = vld [vmem:[%s2855_s1 + $0x40] sm:$0xff] (!%p165_p2)  ;;  %v453_v26 = vld [vmem:[%s2855_s1 + $0x48] sm:$0xff] (!%p165_p2) }
   0xb   : > { %v1991_v24 = vpack.c.bf16 (!%p165_p2), %v483_v22, %v482_v21  ;;  %v484_v27 = vld [vmem:[%s2855_s1 + $0x140] sm:$0xff] (!%p165_p2)  ;;  %v485_v28 = vld [vmem:[%s2855_s1 + $0x148] sm:$0xff] (!%p165_p2)  ;;  %v1590_v29 = vpack.c.bf16 (!%p165_p2), %v453_v26, %v452_v25  ;;  %v454_v31 = vld [vmem:[%s2855_s1 + $0x50] sm:$0xff] (!%p165_p2) }
   0xc   : > { %1582 = vmatpush1.bf16.msra.mxu1 (!%p165_p2), %v1581_v11  ;;  %v2008_v30 = vpack.c.bf16 (!%p165_p2), %v485_v28, %v484_v27  ;;  %v455_v32 = vld [vmem:[%s2855_s1 + $0x58] sm:$0xff] (!%p165_p2)  ;;  %v486_v33 = vld [vmem:[%s2855_s1 + $0x150] sm:$0xff] (!%p165_p2)  ;;  %v456_v37 = vld [vmem:[%s2855_s1 + $0x60] sm:$0xff] (!%p165_p2) }
   0xd   : > { %1630 = vmatpush1.bf16.msra.mxu0 %v1957_v12  ;;  %1583 = vmatprep.subr.bf16.mxu1 %v1891_v3  ;;  %s2860_s7 = smov (!%p192_p3, %s191_s7), 79  ;;  %v487_v34 = vld [vmem:[%s2855_s1 + $0x158] sm:$0xff]  ;;  %v1593_v35 = vpack.c.bf16 %v455_v32, %v454_v31  ;;  %v457_v38 = vld [vmem:[%s2855_s1 + $0x68] sm:$0xff]  ;;  %v488_v39 = vld [vmem:[%s2855_s1 + $0x160] sm:$0xff]  ;;  %s2862_s5 = smov (!%p199_p4, %s198_s5), 19 }
   0xe   : > { %1631 = vmatprep.subr.bf16.mxu0 %v1891_v3  ;;  %s1873_s9 = smul.u32 48, %s2860_s7  ;;  %v2030_v36 = vpack.c.bf16 %v487_v34, %v486_v33  ;;  %v489_v40 = vld [vmem:[%s2855_s1 + $0x168] sm:$0xff]  ;;  %v1596_v43 = vpack.c.bf16 %v457_v38, %v456_v37  ;;  %v458_v45 = vld [vmem:[%s2855_s1 + $0x70] sm:$0xff]  ;;  %v459_v46 = vld [vmem:[%s2855_s1 + $0x78] sm:$0xff]  ;;  %s1572_s16 = sshll.u32 %s2862_s5, 3 }
   0xf   : > { %v2049_v44 = vpack.c.bf16 %v489_v40, %v488_v39  ;;  %v490_v47 = vld [vmem:[%s2855_s1 + $0x170] sm:$0xff]  ;;  %v491_v48 = vld [vmem:[%s2855_s1 + $0x178] sm:$0xff]  ;;  %v1599_v49 = vpack.c.bf16 %v459_v46, %v458_v45  ;;  %v460_v51 = vld [vmem:[%s2855_s1 + $0x80] sm:$0xff] }
  0x10   : > { %1585 = vmatpush1.bf16.msra.mxu1 %v1584_v17  ;;  %s2026_s21 = scalar_lea.vmem %s2854_s0, %s1873_s9  ;;  %v2066_v50 = vpack.c.bf16 %v491_v48, %v490_v47  ;;  %v461_v52 = vld [vmem:[%s2855_s1 + $0x88] sm:$0xff]  ;;  %v492_v53 = vld [vmem:[%s2855_s1 + $0x180] sm:$0xff]  ;;  %v462_v57 = vld [vmem:[%s2855_s1 + $0x90] sm:$0xff]  ;;  %s2774_s9 = scalar_lea.vmem %s2858_s4, %s1572_s16 }
  0x11   : > { %1633 = vmatpush1.bf16.msra.mxu0 %v1974_v18  ;;  %1586 = vmatprep.subr.bf16.mxu1 %v1891_v3  ;;  %v205_v41 = vld [vmem:[%s2026_s21 + $0x8] sm:$0xff]  ;;  %v207_v42 = vld [vmem:[%s2026_s21 + $0x18] sm:$0xff]  ;;  %v1602_v55 = vpack.c.bf16 %v461_v52, %v460_v51  ;;  %v494_v59 = vld [vmem:[%s2855_s1 + $0x190] sm:$0xff] }
  0x12   : > { %1634 = vmatprep.subr.bf16.mxu0 %v1891_v3  ;;  %604 = vmatprep.mubr.f32.mxu1 %v205_v41  ;;  %v493_v54 = vld [vmem:[%s2855_s1 + $0x188] sm:$0xff]  ;;  %v463_v58 = vld [vmem:[%s2855_s1 + $0x98] sm:$0xff]  ;;  %v464_v63 = vld [vmem:[%s2855_s1 + $0xa0] sm:$0xff] }
  0x13   : > { %869 = vmatprep.mubr.f32.mxu0 %v207_v42  ;;  %v2083_v56 = vpack.c.bf16 %v493_v54, %v492_v53  ;;  %v495_v60 = vld [vmem:[%s2855_s1 + $0x198] sm:$0xff]  ;;  %v1605_v61 = vpack.c.bf16 %v463_v58, %v462_v57  ;;  %v465_v0 = vld [vmem:[%s2855_s1 + $0xa8] sm:$0xff]  ;;  %v496_v1 = vld [vmem:[%s2855_s1 + $0x1a0] sm:$0xff] }
  0x14   : > { %1588 = vmatpush1.bf16.msra.mxu1 %v1587_v23  ;;  %v2100_v62 = vpack.c.bf16 %v495_v60, %v494_v59  ;;  %v497_v2 = vld [vmem:[%s2855_s1 + $0x1a8] sm:$0xff]  ;;  %v1608_v4 = vpack.c.bf16 %v465_v0, %v464_v63  ;;  %v466_v6 = vld [vmem:[%s2855_s1 + $0xb0] sm:$0xff]  ;;  %v467_v7 = vld [vmem:[%s2855_s1 + $0xb8] sm:$0xff] }
  0x15   : > { %1636 = vmatpush1.bf16.msra.mxu0 %v1991_v24  ;;  %1589 = vmatprep.subr.bf16.mxu1 %v1891_v3  ;;  %v2117_v5 = vpack.c.bf16 %v497_v2, %v496_v1  ;;  %v498_v9 = vld [vmem:[%s2855_s1 + $0x1b0] sm:$0xff]  ;;  %v499_v10 = vld [vmem:[%s2855_s1 + $0x1b8] sm:$0xff]  ;;  %v1611_v11 = vpack.c.bf16 %v467_v7, %v466_v6  ;;  %v468_v14 = vld [vmem:[%s2855_s1 + $0xc0] sm:$0xff] }
  0x16   : > { %1637 = vmatprep.subr.bf16.mxu0 %v1891_v3  ;;  %v2134_v13 = vpack.c.bf16 %v499_v10, %v498_v9  ;;  %v469_v15 = vld [vmem:[%s2855_s1 + $0xc8] sm:$0xff]  ;;  %v500_v16 = vld [vmem:[%s2855_s1 + $0x1c0] sm:$0xff]  ;;  %v470_v21 = vld [vmem:[%s2855_s1 + $0xd0] sm:$0xff] }
  0x17   : > { %v501_v17 = vld [vmem:[%s2855_s1 + $0x1c8] sm:$0xff]  ;;  %v1614_v19 = vpack.c.bf16 %v469_v15, %v468_v14  ;;  %v471_v22 = vld [vmem:[%s2855_s1 + $0xd8] sm:$0xff]  ;;  %v502_v23 = vld [vmem:[%s2855_s1 + $0x1d0] sm:$0xff] }
  0x18   : > { %1591 = vmatpush1.bf16.msra.mxu1 %v1590_v29  ;;  %v2151_v20 = vpack.c.bf16 %v501_v17, %v500_v16  ;;  %v503_v25 = vld [vmem:[%s2855_s1 + $0x1d8] sm:$0xff]  ;;  %v1617_v26 = vpack.c.bf16 %v471_v22, %v470_v21  ;;  %v472_v28 = vld [vmem:[%s2855_s1 + $0xe0] sm:$0xff]  ;;  %v473_v29 = vld [vmem:[%s2855_s1 + $0xe8] sm:$0xff] }
  0x19   : > { %1639 = vmatpush1.bf16.msra.mxu0 %v2008_v30  ;;  %1592 = vmatprep.subr.bf16.mxu1 %v1891_v3  ;;  %v2168_v27 = vpack.c.bf16 %v503_v25, %v502_v23  ;;  %v504_v31 = vld [vmem:[%s2855_s1 + $0x1e0] sm:$0xff]  ;;  %v505_v32 = vld [vmem:[%s2855_s1 + $0x1e8] sm:$0xff]  ;;  %v1620_v33 = vpack.c.bf16 %v473_v29, %v472_v28  ;;  %v475_v37 = vld [vmem:[%s2855_s1 + $0xf8] sm:$0xff] }
  0x1a   : > { %1640 = vmatprep.subr.bf16.mxu0 %v1891_v3  ;;  %v2185_v34 = vpack.c.bf16 %v505_v32, %v504_v31  ;;  %v506_v38 = vld [vmem:[%s2855_s1 + $0x1f0] sm:$0xff]  ;;  %v507_v39 = vld [vmem:[%s2855_s1 + $0x1f8] sm:$0xff]  ;;  %v508_v42 = vld [vmem:[%s2855_s1 + $0x200] sm:$0xff] }
  0x1b   : > { %v2202_v41 = vpack.c.bf16 %v507_v39, %v506_v38  ;;  %v204_v45 = vld [vmem:[%s2026_s21] sm:$0xff]  ;;  %v206_v46 = vld [vmem:[%s2026_s21 + $0x10] sm:$0xff]  ;;  %v211_v48 = vld [vmem:[%s2026_s21 + $0x38] sm:$0xff] }
  0x1c   : > { %1594 = vmatpush1.bf16.msra.mxu1 %v1593_v35  ;;  %v474_v35 = vld [vmem:[%s2855_s1 + $0xf0] sm:$0xff]  ;;  %v511_v51 = vld [vmem:[%s2855_s1 + $0x218] sm:$0xff]  ;;  %v213_v52 = vld [vmem:[%s2026_s21 + $0x48] sm:$0xff] }
  0x1d   : > { %1642 = vmatpush1.bf16.msra.mxu0 %v2030_v36  ;;  %1595 = vmatprep.subr.bf16.mxu1 %v1891_v3  ;;  %v1623_v40 = vpack.c.bf16 %v475_v37, %v474_v35  ;;  %v210_v53 = vld [vmem:[%s2026_s21 + $0x30] sm:$0xff]  ;;  %v212_v54 = vld [vmem:[%s2026_s21 + $0x40] sm:$0xff]  ;;  %v217_v57 = vld [vmem:[%s2026_s21 + $0x68] sm:$0xff] }
  0x1e   : > { %1643 = vmatprep.subr.bf16.mxu0 %v1891_v3  ;;  %v219_v58 = vld [vmem:[%s2026_s21 + $0x78] sm:$0xff]  ;;  %v512_v59 = vld [vmem:[%s2855_s1 + $0x220] sm:$0xff]  ;;  %v225_v1 = vld [vmem:[%s2026_s21 + $0xa8] sm:$0xff] }
  0x1f   : > { %v216_v60 = vld [vmem:[%s2026_s21 + $0x60] sm:$0xff]  ;;  %v223_v63 = vld [vmem:[%s2026_s21 + $0x98] sm:$0xff]  ;;  %v514_v2 = vld [vmem:[%s2855_s1 + $0x230] sm:$0xff] }
  0x20   : > { %1597 = vmatpush1.bf16.msra.mxu1 %v1596_v43  ;;  %v509_v43 = vld [vmem:[%s2855_s1 + $0x208] sm:$0xff]  ;;  %v222_v6 = vld [vmem:[%s2026_s21 + $0x90] sm:$0xff]  ;;  %v231_v10 = vld [vmem:[%s2026_s21 + $0xd8] sm:$0xff] }
  0x21   : > { %1645 = vmatpush1.bf16.msra.mxu0 %v2049_v44  ;;  %1598 = vmatprep.subr.bf16.mxu1 %v1891_v3  ;;  %v1674_v47 = vpack.c.bf16 %v509_v43, %v508_v42  ;;  %v229_v7 = vld [vmem:[%s2026_s21 + $0xc8] sm:$0xff]  ;;  %v228_v15 = vld [vmem:[%s2026_s21 + $0xc0] sm:$0xff]  ;;  %v230_v16 = vld [vmem:[%s2026_s21 + $0xd0] sm:$0xff] }
  0x22   : > { %1646 = vmatprep.subr.bf16.mxu0 %v1891_v3  ;;  %v517_v14 = vld [vmem:[%s2855_s1 + $0x248] sm:$0xff]  ;;  %v518_v21 = vld [vmem:[%s2855_s1 + $0x250] sm:$0xff]  ;;  %v519_v22 = vld [vmem:[%s2855_s1 + $0x258] sm:$0xff] }
  0x23   : > { %v234_v23 = vld [vmem:[%s2026_s21 + $0xf0] sm:$0xff]  ;;  %v236_v25 = vld [vmem:[%s2026_s21 + $0x100] sm:$0xff]  ;;  %v1689_v28 = vpack.c.bf16 %v519_v22, %v518_v21  ;;  %v243_v29 = vld [vmem:[%s2026_s21 + $0x138] sm:$0xff] }
  0x24   : > { %1600 = vmatpush1.bf16.msra.mxu1 %v1599_v49  ;;  %v510_v49 = vld [vmem:[%s2855_s1 + $0x210] sm:$0xff]  ;;  %v521_v31 = vld [vmem:[%s2855_s1 + $0x268] sm:$0xff]  ;;  %v240_v32 = vld [vmem:[%s2026_s21 + $0x120] sm:$0xff] }
  0x25   : > { %1648 = vmatpush1.bf16.msra.mxu0 %v2066_v50  ;;  %1601 = vmatprep.subr.bf16.mxu1 %v1891_v3  ;;  %v247_v35 = vld [vmem:[%s2026_s21 + $0x158] sm:$0xff]  ;;  %v249_v38 = vld [vmem:[%s2026_s21 + $0x168] sm:$0xff]  ;;  %v248_v42 = vld [vmem:[%s2026_s21 + $0x160] sm:$0xff] }
  0x26   : > { %1649 = vmatprep.subr.bf16.mxu0 %v1891_v3  ;;  %v523_v39 = vld [vmem:[%s2855_s1 + $0x278] sm:$0xff]  ;;  %v253_v43 = vld [vmem:[%s2026_s21 + $0x188] sm:$0xff]  ;;  %v282_v21 = vld [vmem:[%s2026_s21 + $0x270] sm:$0xff] }
  0x27   : > { %v284_v22 = vld [vmem:[%s2026_s21 + $0x280] sm:$0xff] }
  0x28   : > { %1603 = vmatpush1.bf16.msra.mxu1 %v1602_v55  ;;  %v1677_v55 = vpack.c.bf16 %v511_v51, %v510_v49  ;;  %v254_v49 = vld [vmem:[%s2026_s21 + $0x190] sm:$0xff]  ;;  %v259_v51 = vld [vmem:[%s2026_s21 + $0x1b8] sm:$0xff] }
  0x29   : > { %1651 = vmatpush1.bf16.msra.mxu0 %v2083_v56  ;;  %1604 = vmatprep.subr.bf16.mxu1 %v1891_v3 }
  0x2a   : > { %1652 = vmatprep.subr.bf16.mxu0 %v1891_v3 }
  0x2c   : > { %1606 = vmatpush1.bf16.msra.mxu1 %v1605_v61  ;;  %v218_v61 = vld [vmem:[%s2026_s21 + $0x70] sm:$0xff] }
  0x2d   : > { %1654 = vmatpush1.bf16.msra.mxu0 %v2100_v62  ;;  %1607 = vmatprep.subr.bf16.mxu1 %v1891_v3 }
  0x2e   : > { %1655 = vmatprep.subr.bf16.mxu0 %v1891_v3 }
  0x30   : > { %1609 = vmatpush1.bf16.msra.mxu1 %v1608_v4  ;;  %v515_v4 = vld [vmem:[%s2855_s1 + $0x238] sm:$0xff] }
  0x31   : > { %1657 = vmatpush1.bf16.msra.mxu0 %v2117_v5  ;;  %1610 = vmatprep.subr.bf16.mxu1 %v1891_v3  ;;  %v1683_v9 = vpack.c.bf16 %v515_v4, %v514_v2  ;;  %v273_v2 = vld [vmem:[%s2026_s21 + $0x228] sm:$0xff]  ;;  %v531_v4 = vld [vmem:[%s2855_s1 + $0x2b8] sm:$0xff] }
  0x32   : > { %1658 = vmatprep.subr.bf16.mxu0 %v1891_v3 }
  0x34   : > { %1612 = vmatpush1.bf16.msra.mxu1 %v1611_v11  ;;  %v516_v11 = vld [vmem:[%s2855_s1 + $0x240] sm:$0xff] }
  0x35   : > { %1660 = vmatpush1.bf16.msra.mxu0 %v2134_v13  ;;  %1613 = vmatprep.subr.bf16.mxu1 %v1891_v3  ;;  %v1686_v17 = vpack.c.bf16 %v517_v14, %v516_v11  ;;  %v533_v11 = vld [vmem:[%s2855_s1 + $0x2c8] sm:$0xff]  ;;  %v276_v14 = vld [vmem:[%s2026_s21 + $0x240] sm:$0xff] }
  0x36   : > { %1661 = vmatprep.subr.bf16.mxu0 %v1891_v3 }
  0x38   : > { %1615 = vmatpush1.bf16.msra.mxu1 %v1614_v19  ;;  %v237_v19 = vld [vmem:[%s2026_s21 + $0x108] sm:$0xff] }
  0x39   : > { %1663 = vmatpush1.bf16.msra.mxu0 %v2151_v20  ;;  %1616 = vmatprep.subr.bf16.mxu1 %v1891_v3 }
  0x3a   : > { %1664 = vmatprep.subr.bf16.mxu0 %v1891_v3 }
  0x3c   : > { %1618 = vmatpush1.bf16.msra.mxu1 %v1617_v26  ;;  %v241_v26 = vld [vmem:[%s2026_s21 + $0x128] sm:$0xff] }
  0x3d   : > { %1666 = vmatpush1.bf16.msra.mxu0 %v2168_v27  ;;  %1619 = vmatprep.subr.bf16.mxu1 %v1891_v3 }
  0x3e   : > { %1667 = vmatprep.subr.bf16.mxu0 %v1891_v3 }
  0x40   : > { %1621 = vmatpush1.bf16.msra.mxu1 %v1620_v33  ;;  %v242_v33 = vld [vmem:[%s2026_s21 + $0x130] sm:$0xff] }
  0x41   : > { %1669 = vmatpush1.bf16.msra.mxu0 %v2185_v34  ;;  %1622 = vmatprep.subr.bf16.mxu1 %v1891_v3 }
  0x42   : > { %1670 = vmatprep.subr.bf16.mxu0 %v1891_v3 }
  0x44   : > { %1624 = vmatpush1.bf16.msra.mxu1 %v1623_v40  ;;  %v246_v40 = vld [vmem:[%s2026_s21 + $0x150] sm:$0xff] }
  0x45   : > { %1672 = vmatpush1.bf16.msra.mxu0 %v2202_v41  ;;  %1721 = vmatprep.subr.bf16.mxu1 %v1891_v3 }
  0x46   : > { %1673 = vmatprep.subr.bf16.mxu0 %v1891_v3 }
  0x47   : > { %605 = vmatmul.mubr.f32.vlgmr.msra.gmra.mrb[0].mxu1 %v204_v45 }
  0x48   : > { %870 = vmatmul.mubr.f32.vlgmr.msra.gmra.mrb[0].mxu0 %v206_v46  ;;  %1737 = vmatpush1.bf16.msra.mxu1 %v1945_v8  ;;  %v513_v8 = vld [vmem:[%s2855_s1 + $0x228] sm:$0xff]  ;;  %v255_v46 = vld [vmem:[%s2026_s21 + $0x198] sm:$0xff] }
  0x49   : > { %1675 = vmatpush1.bf16.msra.mxu0 %v1674_v47  ;;  %609 = vmatprep.mubr.f32.mxu1 %v211_v48  ;;  %v1680_v0 = vpack.c.bf16 %v513_v8, %v512_v59  ;;  %v525_v47 = vld [vmem:[%s2855_s1 + $0x288] sm:$0xff]  ;;  %v252_v48 = vld [vmem:[%s2026_s21 + $0x180] sm:$0xff]  ;;  %v267_v8 = vld [vmem:[%s2026_s21 + $0x1f8] sm:$0xff] }
  0x4a   : > { %874 = vmatprep.mubr.f32.mxu0 %v213_v52  ;;  %1676 = vmatprep.subr.bf16.mxu0 %v1891_v3 }
  0x4b   : > { %610 = vmatmul.mubr.f32.gmra.mrb[2].mxu1 %v210_v53  ;;  %1722 = vmatprep.subr.bf16.mxu1 %v1891_v3  ;;  %v261_v53 = vld [vmem:[%s2026_s21 + $0x1c8] sm:$0xff] }
  0x4c   : > { %875 = vmatmul.mubr.f32.gmra.mrb[2].mxu0 %v212_v54  ;;  %614 = vmatprep.mubr.f32.mxu1 %v217_v57  ;;  %v527_v54 = vld [vmem:[%s2855_s1 + $0x298] sm:$0xff]  ;;  %v260_v57 = vld [vmem:[%s2026_s21 + $0x1c0] sm:$0xff] }
  0x4d   : > { %1678 = vmatpush1.bf16.msra.mxu0 %v1677_v55  ;;  %879 = vmatprep.mubr.f32.mxu0 %v219_v58  ;;  %v258_v55 = vld [vmem:[%s2026_s21 + $0x1b0] sm:$0xff]  ;;  %v265_v58 = vld [vmem:[%s2026_s21 + $0x1e8] sm:$0xff] }
  0x4e   : > { %1679 = vmatprep.subr.bf16.mxu0 %v1891_v3  ;;  %1738 = vmatpush1.bf16.msra.mxu1 %v1957_v12  ;;  %v224_v12 = vld [vmem:[%s2026_s21 + $0xa0] sm:$0xff] }
  0x4f   : > { %615 = vmatmul.mubr.f32.gmra.mrb[4].mxu1 %v216_v60  ;;  %1723 = vmatprep.subr.bf16.mxu1 %v1891_v3  ;;  %v529_v60 = vld [vmem:[%s2855_s1 + $0x2a8] sm:$0xff] }
  0x50   : > { %880 = vmatmul.mubr.f32.gmra.mrb[4].mxu0 %v218_v61  ;;  %619 = vmatprep.mubr.f32.mxu1 %v223_v63  ;;  %v264_v61 = vld [vmem:[%s2026_s21 + $0x1e0] sm:$0xff]  ;;  %v266_v63 = vld [vmem:[%s2026_s21 + $0x1f0] sm:$0xff] }
  0x51   : > { %884 = vmatprep.mubr.f32.mxu0 %v225_v1  ;;  %1681 = vmatpush1.bf16.msra.mxu0 %v1680_v0  ;;  %v271_v0 = vld [vmem:[%s2026_s21 + $0x218] sm:$0xff] }
  0x52   : > { %1682 = vmatprep.subr.bf16.mxu0 %v1891_v3  ;;  %1739 = vmatpush1.bf16.msra.mxu1 %v1974_v18  ;;  %v235_v18 = vld [vmem:[%s2026_s21 + $0xf8] sm:$0xff] }
  0x53   : > { %620 = vmatmul.mubr.f32.gmra.mrb[6].mxu1 %v222_v6  ;;  %1724 = vmatprep.subr.bf16.mxu1 %v1891_v3  ;;  %v270_v6 = vld [vmem:[%s2026_s21 + $0x210] sm:$0xff] }
  0x54   : > { %885 = vmatmul.mubr.f32.gmra.mrb[6].mxu0 %v224_v12  ;;  %624 = vmatprep.mubr.f32.mxu1 %v229_v7  ;;  %v272_v12 = vld [vmem:[%s2026_s21 + $0x220] sm:$0xff]  ;;  %v277_v7 = vld [vmem:[%s2026_s21 + $0x248] sm:$0xff] }
  0x55   : > { %889 = vmatprep.mubr.f32.mxu0 %v231_v10  ;;  %1684 = vmatpush1.bf16.msra.mxu0 %v1683_v9  ;;  %v279_v10 = vld [vmem:[%s2026_s21 + $0x258] sm:$0xff] }
  0x56   : > { %1685 = vmatprep.subr.bf16.mxu0 %v1891_v3  ;;  %1740 = vmatpush1.bf16.msra.mxu1 %v1991_v24  ;;  %v520_v24 = vld [vmem:[%s2855_s1 + $0x260] sm:$0xff] }
  0x57   : > { %625 = vmatmul.mubr.f32.gmra.mrb[8].mxu1 %v228_v15  ;;  %1725 = vmatprep.subr.bf16.mxu1 %v1891_v3  ;;  %v1692_v37 = vpack.c.bf16 %v521_v31, %v520_v24  ;;  %v278_v15 = vld [vmem:[%s2026_s21 + $0x250] sm:$0xff]  ;;  %v295_v31 = vld [vmem:[%s2026_s21 + $0x2d8] sm:$0xff] }
  0x58   : > { %890 = vmatmul.mubr.f32.gmra.mrb[8].mxu0 %v230_v16  ;;  %629 = vmatprep.mubr.f32.mxu1 %v235_v18  ;;  %v283_v16 = vld [vmem:[%s2026_s21 + $0x278] sm:$0xff]  ;;  %v290_v24 = vld [vmem:[%s2026_s21 + $0x2b0] sm:$0xff] }
  0x59   : > { %894 = vmatprep.mubr.f32.mxu0 %v237_v19  ;;  %1687 = vmatpush1.bf16.msra.mxu0 %v1686_v17  ;;  %v285_v17 = vld [vmem:[%s2026_s21 + $0x288] sm:$0xff]  ;;  %v535_v19 = vld [vmem:[%s2855_s1 + $0x2d8] sm:$0xff] }
  0x5a   : > { %1688 = vmatprep.subr.bf16.mxu0 %v1891_v3  ;;  %1741 = vmatpush1.bf16.msra.mxu1 %v2008_v30  ;;  %v522_v30 = vld [vmem:[%s2855_s1 + $0x270] sm:$0xff] }
  0x5b   : > { %630 = vmatmul.mubr.f32.gmra.mrb[10].mxu1 %v234_v23  ;;  %1726 = vmatprep.subr.bf16.mxu1 %v1891_v3  ;;  %v1695_v45 = vpack.c.bf16 %v523_v39, %v522_v30  ;;  %v289_v23 = vld [vmem:[%s2026_s21 + $0x2a8] sm:$0xff] }
  0x5c   : > { %895 = vmatmul.mubr.f32.gmra.mrb[10].mxu0 %v236_v25  ;;  %634 = vmatprep.mubr.f32.mxu1 %v241_v26  ;;  %v291_v26 = vld [vmem:[%s2026_s21 + $0x2b8] sm:$0xff]  ;;  %v301_v30 = vld [vmem:[%s2026_s21 + $0x308] sm:$0xff] }
  0x5d   : > { %899 = vmatprep.mubr.f32.mxu0 %v243_v29  ;;  %1690 = vmatpush1.bf16.msra.mxu0 %v1689_v28  ;;  %v537_v28 = vld [vmem:[%s2855_s1 + $0x2e8] sm:$0xff]  ;;  %v288_v29 = vld [vmem:[%s2026_s21 + $0x2a0] sm:$0xff] }
  0x5e   : > { %1691 = vmatprep.subr.bf16.mxu0 %v1891_v3  ;;  %1742 = vmatpush1.bf16.msra.mxu1 %v2030_v36  ;;  %v524_v36 = vld [vmem:[%s2855_s1 + $0x280] sm:$0xff] }
  0x5f   : > { %635 = vmatmul.mubr.f32.gmra.mrb[12].mxu1 %v240_v32  ;;  %1727 = vmatprep.subr.bf16.mxu1 %v1891_v3  ;;  %v1698_v52 = vpack.c.bf16 %v525_v47, %v524_v36  ;;  %v315_v36 = vld [vmem:[%s2026_s21 + $0x378] sm:$0xff]  ;;  %v312_v47 = vld [vmem:[%s2026_s21 + $0x360] sm:$0xff] }
  0x60   : > { %900 = vmatmul.mubr.f32.gmra.mrb[12].mxu0 %v242_v33  ;;  %639 = vmatprep.mubr.f32.mxu1 %v247_v35  ;;  %v297_v33 = vld [vmem:[%s2026_s21 + $0x2e8] sm:$0xff]  ;;  %v539_v35 = vld [vmem:[%s2855_s1 + $0x2f8] sm:$0xff] }
  0x61   : > { %904 = vmatprep.mubr.f32.mxu0 %v249_v38  ;;  %1693 = vmatpush1.bf16.msra.mxu0 %v1692_v37  ;;  %v294_v37 = vld [vmem:[%s2026_s21 + $0x2d0] sm:$0xff]  ;;  %v296_v38 = vld [vmem:[%s2026_s21 + $0x2e0] sm:$0xff] }
  0x62   : > { %1694 = vmatprep.subr.bf16.mxu0 %v1891_v3  ;;  %1743 = vmatpush1.bf16.msra.mxu1 %v2049_v44  ;;  %v526_v44 = vld [vmem:[%s2855_s1 + $0x290] sm:$0xff] }
  0x63   : > { %640 = vmatmul.mubr.f32.gmra.mrb[14].mxu1 %v246_v40  ;;  %1728 = vmatprep.subr.bf16.mxu1 %v1891_v3  ;;  %v1701_v59 = vpack.c.bf16 %v527_v54, %v526_v44  ;;  %v303_v40 = vld [vmem:[%s2026_s21 + $0x318] sm:$0xff]  ;;  %v209_v44 = vld [vmem:[%s2026_s21 + $0x28] sm:$0xff]  ;;  %v324_v54 = vld [vmem:[%s2026_s21 + $0x3c0] sm:$0xff] }
  0x64   : > { %905 = vmatmul.mubr.f32.gmra.mrb[14].mxu0 %v248_v42  ;;  %644 = vmatprep.mubr.f32.mxu1 %v253_v43  ;;  %v302_v42 = vld [vmem:[%s2026_s21 + $0x310] sm:$0xff]  ;;  %v307_v43 = vld [vmem:[%s2026_s21 + $0x338] sm:$0xff] }
  0x65   : > { %909 = vmatprep.mubr.f32.mxu0 %v255_v46  ;;  %1696 = vmatpush1.bf16.msra.mxu0 %v1695_v45  ;;  %v309_v45 = vld [vmem:[%s2026_s21 + $0x348] sm:$0xff] }
  0x66   : > { %1697 = vmatprep.subr.bf16.mxu0 %v1891_v3  ;;  %1744 = vmatpush1.bf16.msra.mxu1 %v2066_v50  ;;  %v528_v50 = vld [vmem:[%s2855_s1 + $0x2a0] sm:$0xff]  ;;  %v313_v46 = vld [vmem:[%s2026_s21 + $0x368] sm:$0xff] }
  0x67   : > { %645 = vmatmul.mubr.f32.gmra.mrb[16].mxu1 %v252_v48  ;;  %1729 = vmatprep.subr.bf16.mxu1 %v1891_v3  ;;  %v1704_v1 = vpack.c.bf16 %v529_v60, %v528_v50  ;;  %v319_v48 = vld [vmem:[%s2026_s21 + $0x398] sm:$0xff]  ;;  %v337_v50 = vld [vmem:[%s2026_s21 + $0x428] sm:$0xff] }
  0x68   : > { %910 = vmatmul.mubr.f32.gmra.mrb[16].mxu0 %v254_v49  ;;  %649 = vmatprep.mubr.f32.mxu1 %v259_v51  ;;  %v321_v49 = vld [vmem:[%s2026_s21 + $0x3a8] sm:$0xff]  ;;  %v318_v51 = vld [vmem:[%s2026_s21 + $0x390] sm:$0xff] }
  0x69   : > { %914 = vmatprep.mubr.f32.mxu0 %v261_v53  ;;  %1699 = vmatpush1.bf16.msra.mxu0 %v1698_v52  ;;  %v320_v52 = vld [vmem:[%s2026_s21 + $0x3a0] sm:$0xff]  ;;  %v325_v53 = vld [vmem:[%s2026_s21 + $0x3c8] sm:$0xff] }
  0x6a   : > { %1700 = vmatprep.subr.bf16.mxu0 %v1891_v3  ;;  %1745 = vmatpush1.bf16.msra.mxu1 %v2083_v56  ;;  %v530_v56 = vld [vmem:[%s2855_s1 + $0x2b0] sm:$0xff]  ;;  %v221_v60 = vld [vmem:[%s2026_s21 + $0x88] sm:$0xff] }
  0x6b   : > { %650 = vmatmul.mubr.f32.gmra.mrb[18].mxu1 %v258_v55  ;;  %1730 = vmatprep.subr.bf16.mxu1 %v1891_v3  ;;  %v1707_v9 = vpack.c.bf16 %v531_v4, %v530_v56  ;;  %v208_v55 = vld [vmem:[%s2026_s21 + $0x20] sm:$0xff]  ;;  %v226_v56 = vld [vmem:[%s2026_s21 + $0xb0] sm:$0xff]  ;;  %v349_v4 = vld [vmem:[%s2026_s21 + $0x488] sm:$0xff] }
  0x6c   : > { %915 = vmatmul.mubr.f32.gmra.mrb[18].mxu0 %v260_v57  ;;  %654 = vmatprep.mubr.f32.mxu1 %v265_v58  ;;  %v331_v57 = vld [vmem:[%s2026_s21 + $0x3f8] sm:$0xff] }
  0x6d   : > { %919 = vmatprep.mubr.f32.mxu0 %v267_v8  ;;  %1702 = vmatpush1.bf16.msra.mxu0 %v1701_v59  ;;  %v215_v58 = vld [vmem:[%s2026_s21 + $0x58] sm:$0xff]  ;;  %v330_v59 = vld [vmem:[%s2026_s21 + $0x3f0] sm:$0xff] }
  0x6e   : > { %1703 = vmatprep.subr.bf16.mxu0 %v1891_v3  ;;  %1746 = vmatpush1.bf16.msra.mxu1 %v2100_v62  ;;  %v532_v62 = vld [vmem:[%s2855_s1 + $0x2c0] sm:$0xff]  ;;  %v214_v8 = vld [vmem:[%s2026_s21 + $0x50] sm:$0xff] }
  0x6f   : > { %655 = vmatmul.mubr.f32.gmra.mrb[20].mxu1 %v264_v61  ;;  %1731 = vmatprep.subr.bf16.mxu1 %v1891_v3  ;;  %v1710_v18 = vpack.c.bf16 %v533_v11, %v532_v62  ;;  %v336_v61 = vld [vmem:[%s2026_s21 + $0x420] sm:$0xff]  ;;  %v354_v62 = vld [vmem:[%s2026_s21 + $0x4b0] sm:$0xff] }
  0x70   : > { %920 = vmatmul.mubr.f32.gmra.mrb[20].mxu0 %v266_v63  ;;  %659 = vmatprep.mubr.f32.mxu1 %v271_v0  ;;  %v220_v63 = vld [vmem:[%s2026_s21 + $0x80] sm:$0xff]  ;;  %v343_v0 = vld [vmem:[%s2026_s21 + $0x458] sm:$0xff]  ;;  %v238_v11 = vld [vmem:[%s2026_s21 + $0x110] sm:$0xff] }
  0x71   : > { %924 = vmatprep.mubr.f32.mxu0 %v273_v2  ;;  %1705 = vmatpush1.bf16.msra.mxu0 %v1704_v1  ;;  %v227_v1 = vld [vmem:[%s2026_s21 + $0xb8] sm:$0xff]  ;;  %v342_v2 = vld [vmem:[%s2026_s21 + $0x450] sm:$0xff] }
  0x72   : > { %1706 = vmatprep.subr.bf16.mxu0 %v1891_v3  ;;  %1747 = vmatpush1.bf16.msra.mxu1 %v2117_v5  ;;  %v534_v5 = vld [vmem:[%s2855_s1 + $0x2d0] sm:$0xff] }
  0x73   : > { %660 = vmatmul.mubr.f32.gmra.mrb[22].mxu1 %v270_v6  ;;  %1732 = vmatprep.subr.bf16.mxu1 %v1891_v3  ;;  %v1713_v25 = vpack.c.bf16 %v535_v19, %v534_v5  ;;  %v233_v6 = vld [vmem:[%s2026_s21 + $0xe8] sm:$0xff]  ;;  %v251_v5 = vld [vmem:[%s2026_s21 + $0x178] sm:$0xff]  ;;  %v366_v19 = vld [vmem:[%s2026_s21 + $0x510] sm:$0xff] }
  0x74   : > { %925 = vmatmul.mubr.f32.gmra.mrb[22].mxu0 %v272_v12  ;;  %664 = vmatprep.mubr.f32.mxu1 %v277_v7  ;;  %v348_v12 = vld [vmem:[%s2026_s21 + $0x480] sm:$0xff] }
  0x75   : > { %929 = vmatprep.mubr.f32.mxu0 %v279_v10  ;;  %1708 = vmatpush1.bf16.msra.mxu0 %v1707_v9  ;;  %v232_v7 = vld [vmem:[%s2026_s21 + $0xe0] sm:$0xff]  ;;  %v355_v9 = vld [vmem:[%s2026_s21 + $0x4b8] sm:$0xff] }
  0x76   : > { %1709 = vmatprep.subr.bf16.mxu0 %v1891_v3  ;;  %1748 = vmatpush1.bf16.msra.mxu1 %v2134_v13  ;;  %v536_v13 = vld [vmem:[%s2855_s1 + $0x2e0] sm:$0xff]  ;;  %v239_v10 = vld [vmem:[%s2026_s21 + $0x118] sm:$0xff] }
  0x77   : > { %665 = vmatmul.mubr.f32.gmra.mrb[24].mxu1 %v276_v14  ;;  %1733 = vmatprep.subr.bf16.mxu1 %v1891_v3  ;;  %v1716_v32 = vpack.c.bf16 %v537_v28, %v536_v13  ;;  %v361_v14 = vld [vmem:[%s2026_s21 + $0x4e8] sm:$0xff]  ;;  %v379_v13 = vld [vmem:[%s2026_s21 + $0x578] sm:$0xff] }
  0x78   : > { %930 = vmatmul.mubr.f32.gmra.mrb[24].mxu0 %v278_v15  ;;  %669 = vmatprep.mubr.f32.mxu1 %v283_v16  ;;  %v245_v15 = vld [vmem:[%s2026_s21 + $0x148] sm:$0xff]  ;;  %v360_v16 = vld [vmem:[%s2026_s21 + $0x4e0] sm:$0xff]  ;;  %v263_v28 = vld [vmem:[%s2026_s21 + $0x1d8] sm:$0xff] }
  0x79   : > { %934 = vmatprep.mubr.f32.mxu0 %v285_v17  ;;  %1711 = vmatpush1.bf16.msra.mxu0 %v1710_v18  ;;  %v244_v18 = vld [vmem:[%s2026_s21 + $0x140] sm:$0xff]  ;;  %v367_v17 = vld [vmem:[%s2026_s21 + $0x518] sm:$0xff] }
  0x7a   : > { %1712 = vmatprep.subr.bf16.mxu0 %v1891_v3  ;;  %1749 = vmatpush1.bf16.msra.mxu1 %v2151_v20  ;;  %v538_v20 = vld [vmem:[%s2855_s1 + $0x2f0] sm:$0xff] }
  0x7b   : > { %670 = vmatmul.mubr.f32.gmra.mrb[26].mxu1 %v282_v21  ;;  %1734 = vmatprep.subr.bf16.mxu1 %v1891_v3  ;;  %v1719_v39 = vpack.c.bf16 %v539_v35, %v538_v20  ;;  %v250_v21 = vld [vmem:[%s2026_s21 + $0x170] sm:$0xff]  ;;  %v268_v20 = vld [vmem:[%s2026_s21 + $0x200] sm:$0xff]  ;;  %v391_v35 = vld [vmem:[%s2026_s21 + $0x5d8] sm:$0xff] }
  0x7c   : > { %935 = vmatmul.mubr.f32.gmra.mrb[26].mxu0 %v284_v22  ;;  %674 = vmatprep.mubr.f32.mxu1 %v289_v23  ;;  %v373_v22 = vld [vmem:[%s2026_s21 + $0x548] sm:$0xff] }
  0x7d   : > { %939 = vmatprep.mubr.f32.mxu0 %v291_v26  ;;  %1714 = vmatpush1.bf16.msra.mxu0 %v1713_v25  ;;  %v257_v23 = vld [vmem:[%s2026_s21 + $0x1a8] sm:$0xff]  ;;  %v372_v25 = vld [vmem:[%s2026_s21 + $0x540] sm:$0xff] }
  0x7e   : > { %1715 = vmatprep.subr.bf16.mxu0 %v1891_v3  ;;  %1750 = vmatpush1.bf16.msra.mxu1 %v2168_v27  ;;  %v300_v27 = vld [vmem:[%s2026_s21 + $0x300] sm:$0xff] }
  0x7f   : > { %675 = vmatmul.mubr.f32.gmra.mrb[28].mxu1 %v288_v29  ;;  %1735 = vmatprep.subr.bf16.mxu1 %v1891_v3  ;;  %v256_v26 = vld [vmem:[%s2026_s21 + $0x1a0] sm:$0xff]  ;;  %v378_v29 = vld [vmem:[%s2026_s21 + $0x570] sm:$0xff] }
  0x80   : > { %940 = vmatmul.mubr.f32.gmra.mrb[28].mxu0 %v290_v24  ;;  %679 = vmatprep.mubr.f32.mxu1 %v295_v31  ;;  %v262_v24 = vld [vmem:[%s2026_s21 + $0x1d0] sm:$0xff]  ;;  %v385_v31 = vld [vmem:[%s2026_s21 + $0x5a8] sm:$0xff] }
  0x81   : > { %944 = vmatprep.mubr.f32.mxu0 %v297_v33  ;;  %1717 = vmatpush1.bf16.msra.mxu0 %v1716_v32  ;;  %v269_v32 = vld [vmem:[%s2026_s21 + $0x208] sm:$0xff]  ;;  %v384_v33 = vld [vmem:[%s2026_s21 + $0x5a0] sm:$0xff] }
  0x82   : > { %1718 = vmatprep.subr.bf16.mxu0 %v1891_v3  ;;  %1751 = vmatpush1.bf16.msra.mxu1 %v2185_v34  ;;  %v308_v34 = vld [vmem:[%s2026_s21 + $0x340] sm:$0xff] }
  0x83   : > { %680 = vmatmul.mubr.f32.gmra.mrb[30].mxu1 %v294_v37  ;;  %1736 = vmatprep.subr.bf16.mxu1 %v1891_v3  ;;  %v306_v3 = vld [vmem:[%s2026_s21 + $0x330] sm:$0xff]  ;;  %v275_v37 = vld [vmem:[%s2026_s21 + $0x238] sm:$0xff] }
  0x84   : > { %945 = vmatmul.mubr.f32.gmra.mrb[30].mxu0 %v296_v38  ;;  %684 = vmatprep.mubr.f32.mxu1 %v301_v30  ;;  %v390_v38 = vld [vmem:[%s2026_s21 + $0x5d0] sm:$0xff] }
  0x85   : > { %949 = vmatprep.mubr.f32.mxu0 %v303_v40  ;;  %1720 = vmatpush1.bf16.msra.mxu0 %v1719_v39  ;;  %v274_v30 = vld [vmem:[%s2026_s21 + $0x230] sm:$0xff]  ;;  %v397_v39 = vld [vmem:[%s2026_s21 + $0x608] sm:$0xff] }
  0x86   : > { %1752 = vmatpush1.bf16.msra.mxu1 %v2202_v41  ;;  %v314_v41 = vld [vmem:[%s2026_s21 + $0x370] sm:$0xff]  ;;  %v281_v40 = vld [vmem:[%s2026_s21 + $0x268] sm:$0xff] }
  0x87   : > { %685 = vmatmul.mubr.f32.gmra.mrb[32].mxu1 %v300_v27  ;;  %v396_v27 = vld [vmem:[%s2026_s21 + $0x600] sm:$0xff] }
  0x88   : > { %950 = vmatmul.mubr.f32.gmra.mrb[32].mxu0 %v302_v42  ;;  %689 = vmatprep.mubr.f32.mxu1 %v307_v43  ;;  %v280_v42 = vld [vmem:[%s2026_s21 + $0x260] sm:$0xff]  ;;  %v403_v43 = vld [vmem:[%s2026_s21 + $0x638] sm:$0xff] }
  0x89   : > { %954 = vmatprep.mubr.f32.mxu0 %v309_v45  ;;  %v287_v45 = vld [vmem:[%s2026_s21 + $0x298] sm:$0xff] }
  0x8b   : > { %690 = vmatmul.mubr.f32.gmra.mrb[34].mxu1 %v306_v3  ;;  %v402_v3 = vld [vmem:[%s2026_s21 + $0x630] sm:$0xff] }
  0x8c   : > { %955 = vmatmul.mubr.f32.gmra.mrb[34].mxu0 %v308_v34  ;;  %694 = vmatprep.mubr.f32.mxu1 %v313_v46  ;;  %v286_v34 = vld [vmem:[%s2026_s21 + $0x290] sm:$0xff]  ;;  %v409_v46 = vld [vmem:[%s2026_s21 + $0x668] sm:$0xff] }
  0x8d   : > { %959 = vmatprep.mubr.f32.mxu0 %v315_v36  ;;  %v293_v36 = vld [vmem:[%s2026_s21 + $0x2c8] sm:$0xff] }
  0x8f   : > { %695 = vmatmul.mubr.f32.gmra.mrb[36].mxu1 %v312_v47  ;;  %v408_v47 = vld [vmem:[%s2026_s21 + $0x660] sm:$0xff] }
  0x90   : > { %960 = vmatmul.mubr.f32.gmra.mrb[36].mxu0 %v314_v41  ;;  %699 = vmatprep.mubr.f32.mxu1 %v319_v48  ;;  %v292_v41 = vld [vmem:[%s2026_s21 + $0x2c0] sm:$0xff]  ;;  %v415_v48 = vld [vmem:[%s2026_s21 + $0x698] sm:$0xff] }
  0x91   : > { %964 = vmatprep.mubr.f32.mxu0 %v321_v49  ;;  %v299_v49 = vld [vmem:[%s2026_s21 + $0x2f8] sm:$0xff] }
  0x93   : > { %700 = vmatmul.mubr.f32.gmra.mrb[38].mxu1 %v318_v51  ;;  %v414_v51 = vld [vmem:[%s2026_s21 + $0x690] sm:$0xff] }
  0x94   : > { %965 = vmatmul.mubr.f32.gmra.mrb[38].mxu0 %v320_v52  ;;  %704 = vmatprep.mubr.f32.mxu1 %v325_v53  ;;  %v298_v52 = vld [vmem:[%s2026_s21 + $0x2f0] sm:$0xff]  ;;  %v421_v53 = vld [vmem:[%s2026_s21 + $0x6c8] sm:$0xff] }
  0x95   : > { %1134 = vmatprep.mubr.f32.mxu0 %v209_v44  ;;  %v305_v44 = vld [vmem:[%s2026_s21 + $0x328] sm:$0xff] }
  0x97   : > { %705 = vmatmul.mubr.f32.gmra.mrb[40].mxu1 %v324_v54  ;;  %v420_v54 = vld [vmem:[%s2026_s21 + $0x6c0] sm:$0xff] }
  0x98   : > { %1135 = vmatmul.mubr.f32.vlgmr.msra.gmra.mrb[0].mxu0 %v208_v55  ;;  %709 = vmatprep.mubr.f32.mxu1 %v331_v57  ;;  %v304_v55 = vld [vmem:[%s2026_s21 + $0x320] sm:$0xff]  ;;  %v427_v57 = vld [vmem:[%s2026_s21 + $0x6f8] sm:$0xff] }
  0x99   : > { %1139 = vmatprep.mubr.f32.mxu0 %v215_v58  ;;  %v311_v58 = vld [vmem:[%s2026_s21 + $0x358] sm:$0xff] }
  0x9b   : > { %710 = vmatmul.mubr.f32.gmra.mrb[42].mxu1 %v330_v59  ;;  %v426_v59 = vld [vmem:[%s2026_s21 + $0x6f0] sm:$0xff] }
  0x9c   : > { %1140 = vmatmul.mubr.f32.gmra.mrb[2].mxu0 %v214_v8  ;;  %714 = vmatprep.mubr.f32.mxu1 %v337_v50  ;;  %v310_v8 = vld [vmem:[%s2026_s21 + $0x350] sm:$0xff]  ;;  %v433_v50 = vld [vmem:[%s2026_s21 + $0x728] sm:$0xff] }
  0x9d   : > { %1144 = vmatprep.mubr.f32.mxu0 %v221_v60  ;;  %v317_v60 = vld [vmem:[%s2026_s21 + $0x388] sm:$0xff] }
  0x9f   : > { %715 = vmatmul.mubr.f32.gmra.mrb[44].mxu1 %v336_v61  ;;  %v432_v61 = vld [vmem:[%s2026_s21 + $0x720] sm:$0xff] }
  0xa0   : > { %1145 = vmatmul.mubr.f32.gmra.mrb[4].mxu0 %v220_v63  ;;  %719 = vmatprep.mubr.f32.mxu1 %v343_v0  ;;  %v316_v63 = vld [vmem:[%s2026_s21 + $0x380] sm:$0xff]  ;;  %v439_v0 = vld [vmem:[%s2026_s21 + $0x758] sm:$0xff] }
  0xa1   : > { %1149 = vmatprep.mubr.f32.mxu0 %v227_v1  ;;  %v323_v1 = vld [vmem:[%s2026_s21 + $0x3b8] sm:$0xff] }
  0xa3   : > { %720 = vmatmul.mubr.f32.gmra.mrb[46].mxu1 %v342_v2  ;;  %v438_v2 = vld [vmem:[%s2026_s21 + $0x750] sm:$0xff] }
  0xa4   : > { %1150 = vmatmul.mubr.f32.gmra.mrb[6].mxu0 %v226_v56  ;;  %724 = vmatprep.mubr.f32.mxu1 %v349_v4  ;;  %v322_v56 = vld [vmem:[%s2026_s21 + $0x3b0] sm:$0xff]  ;;  %v327_v4 = vld [vmem:[%s2026_s21 + $0x3d8] sm:$0xff] }
  0xa5   : > { %1154 = vmatprep.mubr.f32.mxu0 %v233_v6  ;;  %v329_v6 = vld [vmem:[%s2026_s21 + $0x3e8] sm:$0xff] }
  0xa7   : > { %725 = vmatmul.mubr.f32.gmra.mrb[48].mxu1 %v348_v12  ;;  %v326_v12 = vld [vmem:[%s2026_s21 + $0x3d0] sm:$0xff] }
  0xa8   : > { %1155 = vmatmul.mubr.f32.gmra.mrb[8].mxu0 %v232_v7  ;;  %729 = vmatprep.mubr.f32.mxu1 %v355_v9  ;;  %v328_v7 = vld [vmem:[%s2026_s21 + $0x3e0] sm:$0xff]  ;;  %v333_v9 = vld [vmem:[%s2026_s21 + $0x408] sm:$0xff] }
  0xa9   : > { %1159 = vmatprep.mubr.f32.mxu0 %v239_v10  ;;  %v335_v10 = vld [vmem:[%s2026_s21 + $0x418] sm:$0xff] }
  0xab   : > { %730 = vmatmul.mubr.f32.gmra.mrb[50].mxu1 %v354_v62  ;;  %v332_v62 = vld [vmem:[%s2026_s21 + $0x400] sm:$0xff] }
  0xac   : > { %1160 = vmatmul.mubr.f32.gmra.mrb[10].mxu0 %v238_v11  ;;  %734 = vmatprep.mubr.f32.mxu1 %v361_v14  ;;  %v334_v11 = vld [vmem:[%s2026_s21 + $0x410] sm:$0xff]  ;;  %v339_v14 = vld [vmem:[%s2026_s21 + $0x438] sm:$0xff] }
  0xad   : > { %1164 = vmatprep.mubr.f32.mxu0 %v245_v15  ;;  %v341_v15 = vld [vmem:[%s2026_s21 + $0x448] sm:$0xff] }
  0xaf   : > { %735 = vmatmul.mubr.f32.gmra.mrb[52].mxu1 %v360_v16  ;;  %v338_v16 = vld [vmem:[%s2026_s21 + $0x430] sm:$0xff] }
  0xb0   : > { %1165 = vmatmul.mubr.f32.gmra.mrb[12].mxu0 %v244_v18  ;;  %739 = vmatprep.mubr.f32.mxu1 %v367_v17  ;;  %v340_v18 = vld [vmem:[%s2026_s21 + $0x440] sm:$0xff]  ;;  %v345_v17 = vld [vmem:[%s2026_s21 + $0x468] sm:$0xff] }
  0xb1   : > { %1169 = vmatprep.mubr.f32.mxu0 %v251_v5  ;;  %v347_v5 = vld [vmem:[%s2026_s21 + $0x478] sm:$0xff] }
  0xb3   : > { %740 = vmatmul.mubr.f32.gmra.mrb[54].mxu1 %v366_v19  ;;  %v344_v19 = vld [vmem:[%s2026_s21 + $0x460] sm:$0xff] }
  0xb4   : > { %1170 = vmatmul.mubr.f32.gmra.mrb[14].mxu0 %v250_v21  ;;  %744 = vmatprep.mubr.f32.mxu1 %v373_v22  ;;  %v346_v21 = vld [vmem:[%s2026_s21 + $0x470] sm:$0xff]  ;;  %v351_v22 = vld [vmem:[%s2026_s21 + $0x498] sm:$0xff] }
  0xb5   : > { %1174 = vmatprep.mubr.f32.mxu0 %v257_v23  ;;  %v353_v23 = vld [vmem:[%s2026_s21 + $0x4a8] sm:$0xff] }
  0xb7   : > { %745 = vmatmul.mubr.f32.gmra.mrb[56].mxu1 %v372_v25  ;;  %v350_v25 = vld [vmem:[%s2026_s21 + $0x490] sm:$0xff] }
  0xb8   : > { %1175 = vmatmul.mubr.f32.gmra.mrb[16].mxu0 %v256_v26  ;;  %749 = vmatprep.mubr.f32.mxu1 %v379_v13  ;;  %v352_v26 = vld [vmem:[%s2026_s21 + $0x4a0] sm:$0xff]  ;;  %v357_v13 = vld [vmem:[%s2026_s21 + $0x4c8] sm:$0xff] }
  0xb9   : > { %1179 = vmatprep.mubr.f32.mxu0 %v263_v28  ;;  %v359_v28 = vld [vmem:[%s2026_s21 + $0x4d8] sm:$0xff] }
  0xbb   : > { %750 = vmatmul.mubr.f32.gmra.mrb[58].mxu1 %v378_v29  ;;  %v356_v29 = vld [vmem:[%s2026_s21 + $0x4c0] sm:$0xff] }
  0xbc   : > { %1180 = vmatmul.mubr.f32.gmra.mrb[18].mxu0 %v262_v24  ;;  %754 = vmatprep.mubr.f32.mxu1 %v385_v31  ;;  %v358_v24 = vld [vmem:[%s2026_s21 + $0x4d0] sm:$0xff]  ;;  %v363_v31 = vld [vmem:[%s2026_s21 + $0x4f8] sm:$0xff] }
  0xbd   : > { %1184 = vmatprep.mubr.f32.mxu0 %v269_v32  ;;  %v365_v32 = vld [vmem:[%s2026_s21 + $0x508] sm:$0xff] }
  0xbf   : > { %755 = vmatmul.mubr.f32.gmra.mrb[60].mxu1 %v384_v33  ;;  %v362_v33 = vld [vmem:[%s2026_s21 + $0x4f0] sm:$0xff] }
  0xc0   : > { %1185 = vmatmul.mubr.f32.gmra.mrb[20].mxu0 %v268_v20  ;;  %759 = vmatprep.mubr.f32.mxu1 %v391_v35  ;;  %v364_v20 = vld [vmem:[%s2026_s21 + $0x500] sm:$0xff]  ;;  %v369_v35 = vld [vmem:[%s2026_s21 + $0x528] sm:$0xff] }
  0xc1   : > { %1189 = vmatprep.mubr.f32.mxu0 %v275_v37  ;;  %v371_v37 = vld [vmem:[%s2026_s21 + $0x538] sm:$0xff] }
  0xc3   : > { %760 = vmatmul.mubr.f32.gmra.mrb[62].mxu1 %v390_v38  ;;  %v368_v38 = vld [vmem:[%s2026_s21 + $0x520] sm:$0xff] }
  0xc4   : > { %1190 = vmatmul.mubr.f32.gmra.mrb[22].mxu0 %v274_v30  ;;  %764 = vmatprep.mubr.f32.mxu1 %v397_v39  ;;  %v370_v30 = vld [vmem:[%s2026_s21 + $0x530] sm:$0xff]  ;;  %v375_v39 = vld [vmem:[%s2026_s21 + $0x558] sm:$0xff] }
  0xc5   : > { %1194 = vmatprep.mubr.f32.mxu0 %v281_v40  ;;  %v377_v40 = vld [vmem:[%s2026_s21 + $0x568] sm:$0xff] }
  0xc7   : > { %765 = vmatmul.mubr.f32.gmra.mrb[64].mxu1 %v396_v27  ;;  %v374_v27 = vld [vmem:[%s2026_s21 + $0x550] sm:$0xff] }
  0xc8   : > { %1195 = vmatmul.mubr.f32.gmra.mrb[24].mxu0 %v280_v42  ;;  %769 = vmatprep.mubr.f32.mxu1 %v403_v43  ;;  %v376_v42 = vld [vmem:[%s2026_s21 + $0x560] sm:$0xff]  ;;  %v381_v43 = vld [vmem:[%s2026_s21 + $0x588] sm:$0xff] }
  0xc9   : > { %1199 = vmatprep.mubr.f32.mxu0 %v287_v45  ;;  %v383_v45 = vld [vmem:[%s2026_s21 + $0x598] sm:$0xff] }
  0xcb   : > { %770 = vmatmul.mubr.f32.gmra.mrb[66].mxu1 %v402_v3  ;;  %v380_v3 = vld [vmem:[%s2026_s21 + $0x580] sm:$0xff] }
  0xcc   : > { %1200 = vmatmul.mubr.f32.gmra.mrb[26].mxu0 %v286_v34  ;;  %774 = vmatprep.mubr.f32.mxu1 %v409_v46  ;;  %v382_v34 = vld [vmem:[%s2026_s21 + $0x590] sm:$0xff]  ;;  %v387_v46 = vld [vmem:[%s2026_s21 + $0x5b8] sm:$0xff] }
  0xcd   : > { %1204 = vmatprep.mubr.f32.mxu0 %v293_v36  ;;  %v389_v36 = vld [vmem:[%s2026_s21 + $0x5c8] sm:$0xff] }
  0xcf   : > { %775 = vmatmul.mubr.f32.gmra.mrb[68].mxu1 %v408_v47  ;;  %v386_v47 = vld [vmem:[%s2026_s21 + $0x5b0] sm:$0xff] }
  0xd0   : > { %1205 = vmatmul.mubr.f32.gmra.mrb[28].mxu0 %v292_v41  ;;  %779 = vmatprep.mubr.f32.mxu1 %v415_v48  ;;  %v388_v41 = vld [vmem:[%s2026_s21 + $0x5c0] sm:$0xff]  ;;  %v393_v48 = vld [vmem:[%s2026_s21 + $0x5e8] sm:$0xff] }
  0xd1   : > { %1209 = vmatprep.mubr.f32.mxu0 %v299_v49  ;;  %v395_v49 = vld [vmem:[%s2026_s21 + $0x5f8] sm:$0xff] }
  0xd3   : > { %780 = vmatmul.mubr.f32.gmra.mrb[70].mxu1 %v414_v51  ;;  %v392_v51 = vld [vmem:[%s2026_s21 + $0x5e0] sm:$0xff] }
  0xd4   : > { %1210 = vmatmul.mubr.f32.gmra.mrb[30].mxu0 %v298_v52  ;;  %784 = vmatprep.mubr.f32.mxu1 %v421_v53  ;;  %v394_v52 = vld [vmem:[%s2026_s21 + $0x5f0] sm:$0xff]  ;;  %v399_v53 = vld [vmem:[%s2026_s21 + $0x618] sm:$0xff] }
  0xd5   : > { %1214 = vmatprep.mubr.f32.mxu0 %v305_v44  ;;  %v401_v44 = vld [vmem:[%s2026_s21 + $0x628] sm:$0xff] }
  0xd7   : > { %785 = vmatmul.mubr.f32.gmra.mrb[72].mxu1 %v420_v54  ;;  %v398_v54 = vld [vmem:[%s2026_s21 + $0x610] sm:$0xff] }
  0xd8   : > { %1215 = vmatmul.mubr.f32.gmra.mrb[32].mxu0 %v304_v55  ;;  %789 = vmatprep.mubr.f32.mxu1 %v427_v57  ;;  %v400_v55 = vld [vmem:[%s2026_s21 + $0x620] sm:$0xff]  ;;  %v405_v57 = vld [vmem:[%s2026_s21 + $0x648] sm:$0xff] }
  0xd9   : > { %1219 = vmatprep.mubr.f32.mxu0 %v311_v58  ;;  %v407_v58 = vld [vmem:[%s2026_s21 + $0x658] sm:$0xff] }
  0xdb   : > { %790 = vmatmul.mubr.f32.gmra.mrb[74].mxu1 %v426_v59  ;;  %v404_v59 = vld [vmem:[%s2026_s21 + $0x640] sm:$0xff] }
  0xdc   : > { %1220 = vmatmul.mubr.f32.gmra.mrb[34].mxu0 %v310_v8  ;;  %794 = vmatprep.mubr.f32.mxu1 %v433_v50  ;;  %v406_v8 = vld [vmem:[%s2026_s21 + $0x650] sm:$0xff]  ;;  %v411_v50 = vld [vmem:[%s2026_s21 + $0x678] sm:$0xff] }
  0xdd   : > { %1224 = vmatprep.mubr.f32.mxu0 %v317_v60 }
  0xdf   : > { %795 = vmatmul.mubr.f32.gmra.mrb[76].mxu1 %v432_v61  ;;  %v413_v61 = vld [vmem:[%s2026_s21 + $0x688] sm:$0xff] }
  0xe0   : > { %1225 = vmatmul.mubr.f32.gmra.mrb[36].mxu0 %v316_v63  ;;  %799 = vmatprep.mubr.f32.mxu1 %v439_v0  ;;  %v410_v0 = vld [vmem:[%s2026_s21 + $0x670] sm:$0xff] }
  0xe1   : > { %1229 = vmatprep.mubr.f32.mxu0 %v323_v1  ;;  %v412_v1 = vld [vmem:[%s2026_s21 + $0x680] sm:$0xff] }
  0xe3   : > { %800 = vmatmul.mubr.f32.gmra.mrb[78].mxu1 %v438_v2  ;;  %v417_v2 = vld [vmem:[%s2026_s21 + $0x6a8] sm:$0xff] }
  0xe4   : > { %1230 = vmatmul.mubr.f32.gmra.mrb[38].mxu0 %v322_v56  ;;  %969 = vmatprep.mubr.f32.mxu1 %v327_v4  ;;  %v419_v4 = vld [vmem:[%s2026_s21 + $0x6b8] sm:$0xff] }
  0xe5   : > { %1234 = vmatprep.mubr.f32.mxu0 %v329_v6 }
  0xe7   : > { %970 = vmatmul.mubr.f32.vlgmr.msra.gmra.mrb[40].mxu1 %v326_v12  ;;  %v416_v12 = vld [vmem:[%s2026_s21 + $0x6a0] sm:$0xff] }
  0xe8   : > { %1235 = vmatmul.mubr.f32.gmra.mrb[40].mxu0 %v328_v7  ;;  %974 = vmatprep.mubr.f32.mxu1 %v333_v9  ;;  %v418_v7 = vld [vmem:[%s2026_s21 + $0x6b0] sm:$0xff]  ;;  %v423_v9 = vld [vmem:[%s2026_s21 + $0x6d8] sm:$0xff] }
  0xe9   : > { %1239 = vmatprep.mubr.f32.mxu0 %v335_v10 }
  0xeb   : > { %975 = vmatmul.mubr.f32.gmra.mrb[42].mxu1 %v332_v62  ;;  %v425_v62 = vld [vmem:[%s2026_s21 + $0x6e8] sm:$0xff] }
  0xec   : > { %1240 = vmatmul.mubr.f32.gmra.mrb[42].mxu0 %v334_v11  ;;  %979 = vmatprep.mubr.f32.mxu1 %v339_v14  ;;  %v422_v14 = vld [vmem:[%s2026_s21 + $0x6d0] sm:$0xff] }
  0xed   : > { %1244 = vmatprep.mubr.f32.mxu0 %v341_v15  ;;  %v424_v15 = vld [vmem:[%s2026_s21 + $0x6e0] sm:$0xff] }
  0xef   : > { %980 = vmatmul.mubr.f32.gmra.mrb[44].mxu1 %v338_v16  ;;  %v429_v16 = vld [vmem:[%s2026_s21 + $0x708] sm:$0xff] }
  0xf0   : > { %1245 = vmatmul.mubr.f32.gmra.mrb[44].mxu0 %v340_v18  ;;  %984 = vmatprep.mubr.f32.mxu1 %v345_v17  ;;  %v431_v17 = vld [vmem:[%s2026_s21 + $0x718] sm:$0xff] }
  0xf1   : > { %1249 = vmatprep.mubr.f32.mxu0 %v347_v5 }
  0xf3   : > { %985 = vmatmul.mubr.f32.gmra.mrb[46].mxu1 %v344_v19  ;;  %v428_v19 = vld [vmem:[%s2026_s21 + $0x700] sm:$0xff] }
  0xf4   : > { %1250 = vmatmul.mubr.f32.gmra.mrb[46].mxu0 %v346_v21  ;;  %989 = vmatprep.mubr.f32.mxu1 %v351_v22  ;;  %v430_v21 = vld [vmem:[%s2026_s21 + $0x710] sm:$0xff]  ;;  %v435_v22 = vld [vmem:[%s2026_s21 + $0x738] sm:$0xff] }
  0xf5   : > { %1254 = vmatprep.mubr.f32.mxu0 %v353_v23 }
  0xf7   : > { %990 = vmatmul.mubr.f32.gmra.mrb[48].mxu1 %v350_v25  ;;  %v437_v25 = vld [vmem:[%s2026_s21 + $0x748] sm:$0xff] }
  0xf8   : > { %1255 = vmatmul.mubr.f32.gmra.mrb[48].mxu0 %v352_v26  ;;  %994 = vmatprep.mubr.f32.mxu1 %v357_v13  ;;  %v434_v13 = vld [vmem:[%s2026_s21 + $0x730] sm:$0xff] }
  0xf9   : > { %1259 = vmatprep.mubr.f32.mxu0 %v359_v28  ;;  %v436_v28 = vld [vmem:[%s2026_s21 + $0x740] sm:$0xff] }
  0xfb   : > { %995 = vmatmul.mubr.f32.gmra.mrb[50].mxu1 %v356_v29  ;;  %v441_v29 = vld [vmem:[%s2026_s21 + $0x768] sm:$0xff] }
  0xfc   : > { %1260 = vmatmul.mubr.f32.gmra.mrb[50].mxu0 %v358_v24  ;;  %999 = vmatprep.mubr.f32.mxu1 %v363_v31  ;;  %v443_v31 = vld [vmem:[%s2026_s21 + $0x778] sm:$0xff] }
  0xfd   : > { %1264 = vmatprep.mubr.f32.mxu0 %v365_v32 }
  0xff   : > { %1000 = vmatmul.mubr.f32.gmra.mrb[52].mxu1 %v362_v33  ;;  %v440_v33 = vld [vmem:[%s2026_s21 + $0x760] sm:$0xff] }
 0x100   : > { %1265 = vmatmul.mubr.f32.gmra.mrb[52].mxu0 %v364_v20  ;;  %1004 = vmatprep.mubr.f32.mxu1 %v369_v35  ;;  %v442_v20 = vld [vmem:[%s2026_s21 + $0x770] sm:$0xff] }
 0x101   : > { %1269 = vmatprep.mubr.f32.mxu0 %v371_v37 }
 0x103   : > { %1005 = vmatmul.mubr.f32.gmra.mrb[54].mxu1 %v368_v38 }
 0x104   : > { %1270 = vmatmul.mubr.f32.gmra.mrb[54].mxu0 %v370_v30  ;;  %1009 = vmatprep.mubr.f32.mxu1 %v375_v39 }
 0x105   : > { %1274 = vmatprep.mubr.f32.mxu0 %v377_v40 }
 0x107   : > { %1010 = vmatmul.mubr.f32.gmra.mrb[56].mxu1 %v374_v27 }
 0x108   : > { %1275 = vmatmul.mubr.f32.gmra.mrb[56].mxu0 %v376_v42  ;;  %1014 = vmatprep.mubr.f32.mxu1 %v381_v43 }
 0x109   : > { %1279 = vmatprep.mubr.f32.mxu0 %v383_v45 }
 0x10b   : > { %1015 = vmatmul.mubr.f32.gmra.mrb[58].mxu1 %v380_v3 }
 0x10c   : > { %1280 = vmatmul.mubr.f32.gmra.mrb[58].mxu0 %v382_v34  ;;  %1019 = vmatprep.mubr.f32.mxu1 %v387_v46 }
 0x10d   : > { %1284 = vmatprep.mubr.f32.mxu0 %v389_v36 }
 0x10f   : > { %1020 = vmatmul.mubr.f32.gmra.mrb[60].mxu1 %v386_v47 }
 0x110   : > { %1285 = vmatmul.mubr.f32.gmra.mrb[60].mxu0 %v388_v41  ;;  %1024 = vmatprep.mubr.f32.mxu1 %v393_v48 }
 0x111   : > { %1289 = vmatprep.mubr.f32.mxu0 %v395_v49 }
 0x113   : > { %1025 = vmatmul.mubr.f32.gmra.mrb[62].mxu1 %v392_v51 }
 0x114   : > { %1290 = vmatmul.mubr.f32.gmra.mrb[62].mxu0 %v394_v52  ;;  %1029 = vmatprep.mubr.f32.mxu1 %v399_v53 }
 0x115   : > { %1294 = vmatprep.mubr.f32.mxu0 %v401_v44 }
 0x117   : > { %1030 = vmatmul.mubr.f32.gmra.mrb[64].mxu1 %v398_v54 }
 0x118   : > { %1295 = vmatmul.mubr.f32.gmra.mrb[64].mxu0 %v400_v55  ;;  %1034 = vmatprep.mubr.f32.mxu1 %v405_v57 }
 0x119   : > { %1299 = vmatprep.mubr.f32.mxu0 %v407_v58 }
 0x11a   : > { %v2565_v60 = vpop.f32.mrb[0].mxu1 }
 0x11b   : > { %v608_v63 = vpop.f32.mrb[1].mxu1  ;;  %1035 = vmatmul.mubr.f32.gmra.mrb[66].mxu1 %v404_v59 }
 0x11c   : > { %1300 = vmatmul.mubr.f32.gmra.mrb[66].mxu0 %v406_v8  ;;  %1039 = vmatprep.mubr.f32.mxu1 %v411_v50 }
 0x11d   : > { %1304 = vmatprep.mubr.f32.mxu0 %v413_v61 }
 0x11e   : > { %v2571_v56 = vpop.f32.mrb[2].mxu1 }
 0x11f   : > { %v613_v6 = vpop.f32.mrb[3].mxu1  ;;  %1040 = vmatmul.mubr.f32.gmra.mrb[68].mxu1 %v410_v0 }
 0x120   : > { %1305 = vmatmul.mubr.f32.gmra.mrb[68].mxu0 %v412_v1  ;;  %1044 = vmatprep.mubr.f32.mxu1 %v417_v2 }
 0x121   : > { %1309 = vmatprep.mubr.f32.mxu0 %v419_v4 }
 0x122   : > { %v2577_v10 = vpop.f32.mrb[4].mxu1 }
 0x123   : > { %v618_v11 = vpop.f32.mrb[5].mxu1  ;;  %1045 = vmatmul.mubr.f32.gmra.mrb[70].mxu1 %v416_v12 }
 0x124   : > { %1310 = vmatmul.mubr.f32.gmra.mrb[70].mxu0 %v418_v7  ;;  %1049 = vmatprep.mubr.f32.mxu1 %v423_v9 }
 0x125   : > { %1314 = vmatprep.mubr.f32.mxu0 %v425_v62 }
 0x126   : > { %v2583_v18 = vpop.f32.mrb[6].mxu1 }
 0x127   : > { %v623_v5 = vpop.f32.mrb[7].mxu1  ;;  %1050 = vmatmul.mubr.f32.gmra.mrb[72].mxu1 %v422_v14 }
 0x128   : > { %1315 = vmatmul.mubr.f32.gmra.mrb[72].mxu0 %v424_v15  ;;  %1054 = vmatprep.mubr.f32.mxu1 %v429_v16 }
 0x129   : > { %1319 = vmatprep.mubr.f32.mxu0 %v431_v17 }
 0x12a   : > { %v626_v23 = vpop.f32.mrb[8].mxu1 }
 0x12b   : > { %v628_v26 = vpop.f32.mrb[9].mxu1  ;;  %1055 = vmatmul.mubr.f32.gmra.mrb[74].mxu1 %v428_v19 }
 0x12c   : > { %1320 = vmatmul.mubr.f32.gmra.mrb[74].mxu0 %v430_v21  ;;  %1059 = vmatprep.mubr.f32.mxu1 %v435_v22 }
 0x12d   : > { %1324 = vmatprep.mubr.f32.mxu0 %v437_v25 }
 0x12e   : > { %v631_v24 = vpop.f32.mrb[10].mxu1 }
 0x12f   : > { %v633_v32 = vpop.f32.mrb[11].mxu1  ;;  %1060 = vmatmul.mubr.f32.gmra.mrb[76].mxu1 %v434_v13 }
 0x130   : > { %1325 = vmatmul.mubr.f32.gmra.mrb[76].mxu0 %v436_v28  ;;  %1064 = vmatprep.mubr.f32.mxu1 %v441_v29 }
 0x131   : > { %1329 = vmatprep.mubr.f32.mxu0 %v443_v31 }
 0x132   : > { %v636_v35 = vpop.f32.mrb[12].mxu1 }
 0x133   : > { %v638_v37 = vpop.f32.mrb[13].mxu1  ;;  %1065 = vmatmul.mubr.f32.gmra.mrb[78].mxu1 %v440_v33 }
 0x134   : > { %1330 = vmatmul.mubr.f32.gmra.mrb[78].mxu0 %v442_v20  ;;  %v2631_v20 = vld [vmem:[%s2857_s3] ss:$0 sm:$0xff] }
 0x136   : > { %v641_v38 = vpop.f32.mrb[14].mxu1 }
 0x137   : > { %v643_v30 = vpop.f32.mrb[15].mxu1 }
 0x13a   : > { %v646_v39 = vpop.f32.mrb[16].mxu1 }
 0x13b   : > { %v648_v40 = vpop.f32.mrb[17].mxu1 }
 0x13e   : > { %v651_v27 = vpop.f32.mrb[18].mxu1 }
 0x13f   : > { %v653_v42 = vpop.f32.mrb[19].mxu1 }
 0x142   : > { %v656_v43 = vpop.f32.mrb[20].mxu1 }
 0x143   : > { %v658_v45 = vpop.f32.mrb[21].mxu1 }
 0x146   : > { %v661_v3 = vpop.f32.mrb[22].mxu1 }
 0x147   : > { %v663_v34 = vpop.f32.mrb[23].mxu1 }
 0x14a   : > { %v2596_v46 = vpop.f32.mrb[24].mxu1 }
 0x14b   : > { %v668_v36 = vpop.f32.mrb[25].mxu1 }
 0x14e   : > { %v2598_v47 = vpop.f32.mrb[26].mxu1 }
 0x14f   : > { %v673_v41 = vpop.f32.mrb[27].mxu1 }
 0x152   : > { %v2600_v48 = vpop.f32.mrb[28].mxu1 }
 0x153   : > { %v678_v49 = vpop.f32.mrb[29].mxu1 }
 0x156   : > { %v2602_v51 = vpop.f32.mrb[30].mxu1 }
 0x157   : > { %v683_v52 = vpop.f32.mrb[31].mxu1 }
 0x15a   : > { %v2604_v53 = vpop.f32.mrb[32].mxu1 }
 0x15b   : > { %v688_v44 = vpop.f32.mrb[33].mxu1 }
 0x15e   : > { %v2606_v54 = vpop.f32.mrb[34].mxu1 }
 0x15f   : > { %v693_v55 = vpop.f32.mrb[35].mxu1 }
 0x162   : > { %v2608_v57 = vpop.f32.mrb[36].mxu1 }
 0x163   : > { %v698_v58 = vpop.f32.mrb[37].mxu1 }
 0x166   : > { %v2610_v59 = vpop.f32.mrb[38].mxu1 }
 0x167   : > { %v703_v8 = vpop.f32.mrb[39].mxu1 }
 0x16b   : > { %v1136_v50 = vpop.f32.mrb[0].mxu0 }
 0x16c   : > { %v1753_v61 = vadd.f32 %v1136_v50, %v2565_v60  ;;  %v1138_v63 = vpop.f32.mrb[1].mxu0 }
 0x16f   : > { %v1141_v0 = vpop.f32.mrb[2].mxu0 }
 0x170   : > { %v1754_v1 = vadd.f32 %v1141_v0, %v2571_v56  ;;  %v1143_v2 = vpop.f32.mrb[3].mxu0 }
 0x173   : > { %v1146_v4 = vpop.f32.mrb[4].mxu0 }
 0x174   : > { %v1755_v6 = vadd.f32 %v1146_v4, %v2577_v10  ;;  %v1148_v12 = vpop.f32.mrb[5].mxu0 }
 0x177   : > { %v1151_v7 = vpop.f32.mrb[6].mxu0 }
 0x178   : > { %v1756_v9 = vadd.f32 %v1151_v7, %v2583_v18  ;;  %v1153_v62 = vpop.f32.mrb[7].mxu0 }
 0x17b   : > { %v1156_v11 = vpop.f32.mrb[8].mxu0 }
 0x17c   : > { %v1757_v14 = vadd.f32 %v1156_v11, %v626_v23  ;;  %v1158_v15 = vpop.f32.mrb[9].mxu0  ;;  %v2625_v23 = vld [vmem:[%s2856_s2] ss:$0 sm:$0xff] }
 0x17d   : > { %v1342_v31 = vmul.f32 %v1753_v61, %v2625_v23  ;;  %v1343_v30 = vmul.f32 %v1754_v1, %v2625_v23  ;;  %v1344_v36 = vmul.f32 %v1755_v6, %v2625_v23  ;;  %v1345_v8 = vmul.f32 %v1756_v9, %v2625_v23 }
 0x17e   : > { %v1346_v4 = vmul.f32 %v1757_v14, %v2625_v23 }
 0x17f   : > { %v1161_v16 = vpop.f32.mrb[10].mxu0  ;;  %v2645_v34 = vadd.f32 %v2631_v20, %v1343_v30  ;;  %v2656_v58 = vadd.f32 %v2631_v20, %v1344_v36  ;;  %v2667_v2 = vadd.f32 %v2631_v20, %v1345_v8 }
 0x180   : > { %v1758_v17 = vadd.f32 %v1161_v16, %v631_v24  ;;  %v1163_v5 = vpop.f32.mrb[11].mxu0  ;;  %v2678_v11 = vadd.f32 %v2631_v20, %v1346_v4 }
 0x182   : > { %v1347_v15 = vmul.f32 %v1758_v17, %v2625_v23 }
 0x183   : > { %v1166_v60 = vpop.f32.mrb[12].mxu0 }
 0x184   : > { %v1759_v19 = vadd.f32 %v1166_v60, %v636_v35  ;;  %v1168_v21 = vpop.f32.mrb[13].mxu0 }
 0x187   : > { %v1171_v22 = vpop.f32.mrb[14].mxu0 }
 0x188   : > { %v2616_v56 = vadd.f32 %v1171_v22, %v641_v38  ;;  %v1173_v25 = vpop.f32.mrb[15].mxu0  ;;  %v2635_v38 = vadd.f32 %v2631_v20, %v1342_v31  ;;  %v2689_v22 = vadd.f32 %v2631_v20, %v1347_v15 }
 0x189   : > { %v1348_v25 = vmul.f32 %v1759_v19, %v2625_v23 }
 0x18a   : > { %v1349_v31 = vmul.f32 %v2616_v56, %v2625_v23 }
 0x18b   : > { %v1176_v26 = vpop.f32.mrb[16].mxu0 }
 0x18c   : > { %v2618_v10 = vadd.f32 %v1176_v26, %v646_v39  ;;  %v1178_v13 = vpop.f32.mrb[17].mxu0  ;;  %v2712_v30 = vadd.f32 %v2631_v20, %v1349_v31 }
 0x18f   : > { %v1181_v28 = vpop.f32.mrb[18].mxu0 }
 0x190   : > { %v2620_v18 = vadd.f32 %v1181_v28, %v651_v27  ;;  %v1183_v29 = vpop.f32.mrb[19].mxu0 }
 0x193   : > { %v1186_v24 = vpop.f32.mrb[20].mxu0 }
 0x194   : > { %v1763_v32 = vadd.f32 %v1186_v24, %v656_v43  ;;  %v1188_v33 = vpop.f32.mrb[21].mxu0  ;;  %v2700_v24 = vadd.f32 %v2631_v20, %v1348_v25 }
 0x196   : > { %v1352_v35 = vmul.f32 %v1763_v32, %v2625_v23 }
 0x197   : > { %v1191_v37 = vpop.f32.mrb[22].mxu0 }
 0x198   : > { %v2639_v39 = vadd.f32 %v2631_v20, %v1352_v35  ;;  %v1764_v40 = vadd.f32 %v1191_v37, %v661_v3  ;;  %v1193_v27 = vpop.f32.mrb[23].mxu0 }
 0x19a   : > { %v1429_v42 = vmax.f32 %v2635_v38, %v2639_v39  ;;  %v1353_v43 = vmul.f32 %v1764_v40, %v2625_v23  ;;  %v1350_v40 = vmul.f32 %v2618_v10, %v2625_v23 }
 0x19b   : > { %v1196_v45 = vpop.f32.mrb[24].mxu0 }
 0x19c   : > { %v2649_v41 = vadd.f32 %v2631_v20, %v1353_v43  ;;  %v1765_v49 = vadd.f32 %v1196_v45, %v2596_v46  ;;  %v1198_v52 = vpop.f32.mrb[25].mxu0 }
 0x19d   : > { %v1351_v52 = vmul.f32 %v2620_v18, %v2625_v23 }
 0x19e   : > { %v1430_v3 = vmax.f32 %v2645_v34, %v2649_v41  ;;  %v1354_v44 = vmul.f32 %v1765_v49, %v2625_v23  ;;  %v2724_v49 = vadd.f32 %v2631_v20, %v1350_v40 }
 0x19f   : > { %v1201_v55 = vpop.f32.mrb[26].mxu0 }
 0x1a0   : > { %v2660_v50 = vadd.f32 %v2631_v20, %v1354_v44  ;;  %v1766_v61 = vadd.f32 %v1201_v55, %v2598_v47  ;;  %v1203_v63 = vpop.f32.mrb[27].mxu0 }
 0x1a2   : > { %v1431_v46 = vmax.f32 %v2656_v58, %v2660_v50  ;;  %v1355_v0 = vmul.f32 %v1766_v61, %v2625_v23 }
 0x1a3   : > { %v1206_v1 = vpop.f32.mrb[28].mxu0 }
 0x1a4   : > { %v2671_v6 = vadd.f32 %v2631_v20, %v1355_v0  ;;  %v1767_v12 = vadd.f32 %v1206_v1, %v2600_v48  ;;  %v1208_v7 = vpop.f32.mrb[29].mxu0  ;;  %v2736_v1 = vadd.f32 %v2631_v20, %v1351_v52 }
 0x1a6   : > { %v1432_v47 = vmax.f32 %v2667_v2, %v2671_v6  ;;  %v1356_v9 = vmul.f32 %v1767_v12, %v2625_v23 }
 0x1a7   : > { %v1211_v62 = vpop.f32.mrb[30].mxu0 }
 0x1a8   : > { %v2682_v16 = vadd.f32 %v2631_v20, %v1356_v9  ;;  %v1768_v14 = vadd.f32 %v1211_v62, %v2602_v51  ;;  %v1213_v5 = vpop.f32.mrb[31].mxu0 }
 0x1aa   : > { %v1433_v48 = vmax.f32 %v2678_v11, %v2682_v16  ;;  %v1357_v60 = vmul.f32 %v1768_v14, %v2625_v23 }
 0x1ab   : > { %v1216_v21 = vpop.f32.mrb[32].mxu0 }
 0x1ac   : > { %v2693_v26 = vadd.f32 %v2631_v20, %v1357_v60  ;;  %v1769_v17 = vadd.f32 %v1216_v21, %v2604_v53  ;;  %v1218_v13 = vpop.f32.mrb[33].mxu0 }
 0x1ae   : > { %v1434_v51 = vmax.f32 %v2689_v22, %v2693_v26  ;;  %v1358_v28 = vmul.f32 %v1769_v17, %v2625_v23 }
 0x1af   : > { %v1221_v29 = vpop.f32.mrb[34].mxu0 }
 0x1b0   : > { %v2705_v19 = vadd.f32 %v2631_v20, %v1358_v28  ;;  %v1770_v32 = vadd.f32 %v1221_v29, %v2606_v54  ;;  %v1223_v33 = vpop.f32.mrb[35].mxu0 }
 0x1b2   : > { %v1435_v53 = vmax.f32 %v2700_v24, %v2705_v19  ;;  %v1359_v35 = vmul.f32 %v1770_v32, %v2625_v23 }
 0x1b3   : > { %v1226_v37 = vpop.f32.mrb[36].mxu0 }
 0x1b4   : > { %v2717_v56 = vadd.f32 %v2631_v20, %v1359_v35  ;;  %v1771_v27 = vadd.f32 %v1226_v37, %v2608_v57  ;;  %v1228_v43 = vpop.f32.mrb[37].mxu0 }
 0x1b6   : > { %v1436_v54 = vmax.f32 %v2712_v30, %v2717_v56  ;;  %v1360_v45 = vmul.f32 %v1771_v27, %v2625_v23 }
 0x1b7   : > { %v1231_v36 = vpop.f32.mrb[38].mxu0 }
 0x1b8   : > { %v2729_v10 = vadd.f32 %v2631_v20, %v1360_v45  ;;  %v1772_v44 = vadd.f32 %v1231_v36, %v2610_v59  ;;  %v1233_v55 = vpop.f32.mrb[39].mxu0 }
 0x1ba   : > { %v1437_v57 = vmax.f32 %v2724_v49, %v2729_v10  ;;  %v1361_v8 = vmul.f32 %v1772_v44, %v2625_v23  ;;  %v971_v61 = vpop.f32.mrb[40].mxu1 }
 0x1bb   : > { %v1236_v63 = vpop.f32.mrb[40].mxu0  ;;  %v973_v0 = vpop.f32.mrb[41].mxu1 }
 0x1bc   : > { %v2739_v4 = vadd.f32 %v2631_v20, %v1361_v8  ;;  %v1773_v18 = vadd.f32 %v1236_v63, %v971_v61  ;;  %v1238_v12 = vpop.f32.mrb[41].mxu0 }
 0x1be   : > { %v1438_v59 = vmax.f32 %v2736_v1, %v2739_v4  ;;  %v976_v7 = vpop.f32.mrb[42].mxu1 }
 0x1bf   : > { %v1241_v9 = vpop.f32.mrb[42].mxu0  ;;  %v978_v62 = vpop.f32.mrb[43].mxu1 }
 0x1c0   : > { %v1774_v15 = vadd.f32 %v1241_v9, %v976_v7  ;;  %v1243_v14 = vpop.f32.mrb[43].mxu0 }
 0x1c2   : > { %v981_v5 = vpop.f32.mrb[44].mxu1 }
 0x1c3   : > { %v1246_v60 = vpop.f32.mrb[44].mxu0  ;;  %v983_v21 = vpop.f32.mrb[45].mxu1 }
 0x1c4   : > { %v1775_v25 = vadd.f32 %v1246_v60, %v981_v5  ;;  %v1248_v17 = vpop.f32.mrb[45].mxu0 }
 0x1c6   : > { %v986_v13 = vpop.f32.mrb[46].mxu1 }
 0x1c7   : > { %v1251_v28 = vpop.f32.mrb[46].mxu0  ;;  %v988_v29 = vpop.f32.mrb[47].mxu1 }
 0x1c8   : > { %v2743_v31 = vadd.f32 %v1251_v28, %v986_v13  ;;  %v1253_v32 = vpop.f32.mrb[47].mxu0 }
 0x1ca   : > { %v991_v33 = vpop.f32.mrb[48].mxu1  ;;  %v1365_v39 = vmul.f32 %v2743_v31, %v2625_v23 }
 0x1cb   : > { %v1256_v35 = vpop.f32.mrb[48].mxu0  ;;  %v993_v37 = vpop.f32.mrb[49].mxu1 }
 0x1cc   : > { %v2745_v40 = vadd.f32 %v1256_v35, %v991_v33  ;;  %v1258_v27 = vpop.f32.mrb[49].mxu0 }
 0x1ce   : > { %v996_v43 = vpop.f32.mrb[50].mxu1 }
 0x1cf   : > { %v1261_v45 = vpop.f32.mrb[50].mxu0  ;;  %v998_v36 = vpop.f32.mrb[51].mxu1 }
 0x1d0   : > { %v2747_v52 = vadd.f32 %v1261_v45, %v996_v43  ;;  %v1263_v44 = vpop.f32.mrb[51].mxu0  ;;  %v1362_v45 = vmul.f32 %v1773_v18, %v2625_v23 }
 0x1d2   : > { %v1001_v55 = vpop.f32.mrb[52].mxu1 }
 0x1d3   : > { %v1266_v8 = vpop.f32.mrb[52].mxu0  ;;  %v1003_v61 = vpop.f32.mrb[53].mxu1 }
 0x1d4   : > { %v2749_v63 = vadd.f32 %v1266_v8, %v1001_v55  ;;  %v1268_v0 = vpop.f32.mrb[53].mxu0 }
 0x1d6   : > { %v1006_v12 = vpop.f32.mrb[54].mxu1 }
 0x1d7   : > { %v1271_v7 = vpop.f32.mrb[54].mxu0  ;;  %v1008_v9 = vpop.f32.mrb[55].mxu1 }
 0x1d8   : > { %v2751_v62 = vadd.f32 %v1271_v7, %v1006_v12  ;;  %v1273_v14 = vpop.f32.mrb[55].mxu0  ;;  %v1409_v12 = vadd.f32 %v2631_v20, %v1362_v45  ;;  %v1363_v7 = vmul.f32 %v1774_v15, %v2625_v23 }
 0x1da   : > { %v1011_v5 = vpop.f32.mrb[56].mxu1 }
 0x1db   : > { %v1276_v60 = vpop.f32.mrb[56].mxu0  ;;  %v1013_v21 = vpop.f32.mrb[57].mxu1 }
 0x1dc   : > { %v2753_v17 = vadd.f32 %v1276_v60, %v1011_v5  ;;  %v1278_v13 = vpop.f32.mrb[57].mxu0 }
 0x1dd   : > { %v1364_v13 = vmul.f32 %v1775_v25, %v2625_v23 }
 0x1de   : > { %v1016_v28 = vpop.f32.mrb[58].mxu1 }
 0x1df   : > { %v1281_v29 = vpop.f32.mrb[58].mxu0  ;;  %v1018_v32 = vpop.f32.mrb[59].mxu1 }
 0x1e0   : > { %v2757_v33 = vadd.f32 %v1281_v29, %v1016_v28  ;;  %v1283_v35 = vpop.f32.mrb[59].mxu0  ;;  %v1410_v32 = vadd.f32 %v2631_v20, %v1363_v7 }
 0x1e2   : > { %v1021_v37 = vpop.f32.mrb[60].mxu1 }
 0x1e3   : > { %v1286_v27 = vpop.f32.mrb[60].mxu0  ;;  %v1023_v43 = vpop.f32.mrb[61].mxu1 }
 0x1e4   : > { %v1783_v36 = vadd.f32 %v1286_v27, %v1021_v37  ;;  %v1288_v44 = vpop.f32.mrb[61].mxu0 }
 0x1e5   : > { %v1411_v44 = vadd.f32 %v2631_v20, %v1364_v13 }
 0x1e6   : > { %v1372_v55 = vmul.f32 %v1783_v36, %v2625_v23  ;;  %v1026_v8 = vpop.f32.mrb[62].mxu1 }
 0x1e7   : > { %v1291_v61 = vpop.f32.mrb[62].mxu0  ;;  %v1028_v0 = vpop.f32.mrb[63].mxu1 }
 0x1e8   : > { %v1419_v9 = vadd.f32 %v2631_v20, %v1372_v55  ;;  %v1784_v14 = vadd.f32 %v1291_v61, %v1026_v8  ;;  %v1293_v5 = vpop.f32.mrb[63].mxu0 }
 0x1e9   : > { %v1366_v5 = vmul.f32 %v2745_v40, %v2625_v23 }
 0x1ea   : > { %v1439_v60 = vmax.f32 %v1409_v12, %v1419_v9  ;;  %v1373_v18 = vmul.f32 %v1784_v14, %v2625_v23  ;;  %v1031_v21 = vpop.f32.mrb[64].mxu1 }
 0x1eb   : > { %v1296_v28 = vpop.f32.mrb[64].mxu0  ;;  %v1033_v29 = vpop.f32.mrb[65].mxu1  ;;  %v1413_v40 = vadd.f32 %v2631_v20, %v1366_v5 }
 0x1ec   : > { %v1449_v35 = vmax.f32 %v1429_v42, %v1439_v60  ;;  %v1420_v15 = vadd.f32 %v2631_v20, %v1373_v18  ;;  %v1785_v37 = vadd.f32 %v1296_v28, %v1031_v21  ;;  %v1298_v27 = vpop.f32.mrb[65].mxu0  ;;  %v1412_v18 = vadd.f32 %v2631_v20, %v1365_v39 }
 0x1ee   : > { %v1459_v43 = vmax.f32 %v1449_v35, 0.0  ;;  %v1440_v25 = vmax.f32 %v1410_v32, %v1420_v15  ;;  %v1374_v45 = vmul.f32 %v1785_v37, %v2625_v23  ;;  %v1036_v36 = vpop.f32.mrb[66].mxu1  ;;  %v1367_v37 = vmul.f32 %v2747_v52, %v2625_v23 }
 0x1ef   : > { %v1301_v55 = vpop.f32.mrb[66].mxu0  ;;  %v1038_v38 = vpop.f32.mrb[67].mxu1 }
 0x1f0   : > { %1500 = vst [vmem:[%s2774_s9] sm:$0xff] %v1459_v43  ;;  %v1450_v42 = vmax.f32 %v1430_v3, %v1440_v25  ;;  %v1421_v8 = vadd.f32 %v2631_v20, %v1374_v45  ;;  %v1786_v61 = vadd.f32 %v1301_v55, %v1036_v36  ;;  %v1303_v0 = vpop.f32.mrb[67].mxu0  ;;  %v1414_v38 = vadd.f32 %v2631_v20, %v1367_v37 }
 0x1f1   : > { %v1371_v37 = vmul.f32 %v2757_v33, %v2625_v23 }
 0x1f2   : > { %v1460_v12 = vmax.f32 %v1450_v42, 0.0  ;;  %v1441_v7 = vmax.f32 %v1411_v44, %v1421_v8  ;;  %v1375_v9 = vmul.f32 %v1786_v61, %v2625_v23  ;;  %v1041_v14 = vpop.f32.mrb[68].mxu1  ;;  %v1368_v44 = vmul.f32 %v2749_v63, %v2625_v23 }
 0x1f3   : > { %v1306_v60 = vpop.f32.mrb[68].mxu0  ;;  %v1043_v31 = vpop.f32.mrb[69].mxu1 }
 0x1f4   : > { %1501 = vst [vmem:[%s2774_s9 + $0x8] sm:$0xff] %v1460_v12  ;;  %v1451_v34 = vmax.f32 %v1431_v46, %v1441_v7  ;;  %v1422_v41 = vadd.f32 %v2631_v20, %v1375_v9  ;;  %v1787_v3 = vadd.f32 %v1306_v60, %v1041_v14  ;;  %v1308_v21 = vpop.f32.mrb[69].mxu0  ;;  %v1415_v63 = vadd.f32 %v2631_v20, %v1368_v44 }
 0x1f5   : > { %v1369_v9 = vmul.f32 %v2751_v62, %v2625_v23 }
 0x1f6   : > { %v1461_v13 = vmax.f32 %v1451_v34, 0.0  ;;  %v1442_v28 = vmax.f32 %v1412_v18, %v1422_v41  ;;  %v1376_v29 = vmul.f32 %v1787_v3, %v2625_v23  ;;  %v1046_v32 = vpop.f32.mrb[70].mxu1  ;;  %v1370_v34 = vmul.f32 %v2753_v17, %v2625_v23 }
 0x1f7   : > { %v1311_v35 = vpop.f32.mrb[70].mxu0  ;;  %v1048_v15 = vpop.f32.mrb[71].mxu1  ;;  %v1416_v62 = vadd.f32 %v2631_v20, %v1369_v9 }
 0x1f8   : > { %1502 = vst [vmem:[%s2774_s9 + $0x10] sm:$0xff] %v1461_v13  ;;  %v1452_v58 = vmax.f32 %v1432_v47, %v1442_v28  ;;  %v1423_v50 = vadd.f32 %v2631_v20, %v1376_v29  ;;  %v1788_v46 = vadd.f32 %v1311_v35, %v1046_v32  ;;  %v1313_v27 = vpop.f32.mrb[71].mxu0  ;;  %v1469_v13 = vlaneseq }
 0x1fa   : > { %v1462_v43 = vmax.f32 %v1452_v58, 0.0  ;;  %v1443_v25 = vmax.f32 %v1413_v40, %v1423_v50  ;;  %v1377_v45 = vmul.f32 %v1788_v46, %v2625_v23  ;;  %v1051_v36 = vpop.f32.mrb[72].mxu1  ;;  %v1417_v40 = vadd.f32 %v2631_v20, %v1370_v34 }
 0x1fb   : > { %v1316_v55 = vpop.f32.mrb[72].mxu0  ;;  %v1053_v52 = vpop.f32.mrb[73].mxu1  ;;  %v1470_v50 = vshrl.u32 %v1469_v13, 7 }
 0x1fc   : > { %1503 = vst [vmem:[%s2774_s9 + $0x18] sm:$0xff] %v1462_v43  ;;  %v1453_v2 = vmax.f32 %v1433_v48, %v1443_v25  ;;  %v1424_v6 = vadd.f32 %v2631_v20, %v1377_v45  ;;  %v1789_v47 = vadd.f32 %v1316_v55, %v1051_v36  ;;  %v1318_v39 = vpop.f32.mrb[73].mxu0  ;;  %v1418_v25 = vadd.f32 %v2631_v20, %v1371_v37 }
 0x1fd   : > { %v1479_v56 = vadd.s32 72, %v1470_v50 }
 0x1fe   : > { %v1463_v42 = vmax.f32 %v1453_v2, 0.0  ;;  %v1444_v8 = vmax.f32 %v1414_v38, %v1424_v6  ;;  %v1378_v61 = vmul.f32 %v1789_v47, %v2625_v23  ;;  %v1056_v0 = vpop.f32.mrb[74].mxu1 }
 0x1ff   : > { %v1321_v12 = vpop.f32.mrb[74].mxu0  ;;  %v1058_v7 = vpop.f32.mrb[75].mxu1  ;;  %vm1489_vm0 = vcmp.lt.s32.totalorder %v1479_v56, 77 }
 0x200   : > { %1504 = vst [vmem:[%s2774_s9 + $0x20] sm:$0xff] %v1463_v42  ;;  %v1454_v11 = vmax.f32 %v1434_v51, %v1444_v8  ;;  %v1425_v16 = vadd.f32 %v2631_v20, %v1378_v61  ;;  %v1790_v48 = vadd.f32 %v1321_v12, %v1056_v0  ;;  %v1323_v14 = vpop.f32.mrb[75].mxu0 }
 0x202   : > { %v1464_v5 = vmax.f32 %v1454_v11, 0.0  ;;  %v1445_v60 = vmax.f32 %v1415_v63, %v1425_v16  ;;  %v1379_v31 = vmul.f32 %v1790_v48, %v2625_v23  ;;  %v1061_v18 = vpop.f32.mrb[76].mxu1 }
 0x203   : > { %v1326_v41 = vpop.f32.mrb[76].mxu0  ;;  %v1063_v3 = vpop.f32.mrb[77].mxu1 }
 0x204   : > { %1505 = vst [vmem:[%s2774_s9 + $0x28] sm:$0xff] %v1464_v5  ;;  %v1455_v22 = vmax.f32 %v1435_v53, %v1445_v60  ;;  %v1426_v26 = vadd.f32 %v2631_v20, %v1379_v31  ;;  %v1791_v51 = vadd.f32 %v1326_v41, %v1061_v18  ;;  %v1328_v21 = vpop.f32.mrb[77].mxu0 }
 0x206   : > { %v1465_v28 = vmax.f32 %v1455_v22, 0.0  ;;  %v1446_v29 = vmax.f32 %v1416_v62, %v1426_v26  ;;  %v1380_v32 = vmul.f32 %v1791_v51, %v2625_v23  ;;  %v1066_v17 = vpop.f32.mrb[78].mxu1 }
 0x207   : > { %v1331_v35 = vpop.f32.mrb[78].mxu0  ;;  %v1068_v15 = vpop.f32.mrb[79].mxu1 }
 0x208   : > { %1506 = vst [vmem:[%s2774_s9 + $0x30] sm:$0xff] %v1465_v28  ;;  %v1456_v24 = vmax.f32 %v1436_v54, %v1446_v29  ;;  %v1427_v19 = vadd.f32 %v2631_v20, %v1380_v32  ;;  %v1792_v53 = vadd.f32 %v1331_v35, %v1066_v17  ;;  %v1333_v58 = vpop.f32.mrb[79].mxu0 }
 0x20a   : > { %v1466_v46 = vmax.f32 %v1456_v24, 0.0  ;;  %v1447_v27 = vmax.f32 %v1417_v40, %v1427_v19  ;;  %v1381_v43 = vmul.f32 %v1792_v53, %v2625_v23 }
 0x20c   : > { %1507 = vst [vmem:[%s2774_s9 + $0x38] sm:$0xff] %v1466_v46  ;;  %v1457_v33 = vmax.f32 %v1437_v57, %v1447_v27  ;;  %v1428_v30 = vadd.f32 %v2631_v20, %v1381_v43 }
 0x20e   : > { %v1467_v54 = vmax.f32 %v1457_v33, 0.0  ;;  %v1448_v45 = vmax.f32 %v1418_v25, %v1428_v30 }
 0x210   : > { %1508 = vst [vmem:[%s2774_s9 + $0x40] sm:$0xff] %v1467_v54  ;;  %v1458_v36 = vmax.f32 %v1438_v59, %v1448_v45 }
 0x212   : > { %v1468_v44 = vmax.f32 %v1458_v36, 0.0 }
 0x214   : > { %v1499_v23 = vsel %vm1489_vm0, %v1468_v44, 0.0 }
 0x215   : > { %1509 = vst [vmem:[%s2774_s9 + $0x48] sm:$0xff] %v1499_v23 }
 0x216 PF: > { %s14_s15 = sadd.s32 1, %s1889_s15  }
 0x217   : > { %p11_p5 = scmp.ge.s32.totalorder %s14_s15, 4  }
 0x219   :  { %13 = sbr.rel (!%p11_p5) target bundleno = 1 (0x1), region = 66 }

// kernel: sheep_classifier_forward.3
= control target key start
LH: loop header
LB: loop body
LE: loop exit
PB: predicated region body
PF: predicated region fallthrough
CT: control target
= control target key end

     0   :  { %15 = vsyncpa [#allocation4], 0  ;;  %s7955_s13 = smov 0   ;;  %s9336_s0 = inlined_call_operand.vmem [shape: f32[2,5632], index: 0, kind: input, shape index: {}]   ;;  %s9337_s1 = inlined_call_operand.vmem [shape: s8[5632,896], index: 1, kind: input, shape index: {}]   ;;  %s9338_s2 = inlined_call_operand.vmem [shape: f32[1,896], index: 2, kind: input, shape index: {}]   ;;  %s9339_s3 = inlined_call_operand.vmem [shape: f32[1,896], index: 3, kind: input, shape index: {}]   ;;  %s9340_s4 = inlined_call_operand.vmem [shape: f32[896,256], index: 4, kind: input, shape index: {}]   ;;  %s9341_s5 = inlined_call_operand.vmem [shape: f32[1,256], index: 5, kind: input, shape index: {}]   ;;  %s9342_s6 = inlined_call_operand.vmem [shape: f32[256,128], index: 6, kind: input, shape index: {}]   ;;  %s9343_s7 = inlined_call_operand.vmem [shape: f32[1,128], index: 7, kind: input, shape index: {}]   ;;  %s9344_s8 = inlined_call_operand.vmem [shape: f32[128,128], index: 8, kind: input, shape index: {}]   ;;  %s9345_s9 = inlined_call_operand.vmem [shape: f32[1,128], index: 9, kind: input, shape index: {}]   ;;  %s9346_s10 = inlined_call_operand.hbm [shape: f32[2,128], index: 10, kind: output, shape index: {}]  }
   0x1 LB: > { %s7961_s14 = sadd.s32 4294967295, %s7889_s13   ;;  %p5935_p0 = scmp.ge.s32.totalorder %s7889_s13, 1  ;;  %s7889_s13 = sphi %s7955_s13, %s21_s13  }
   0x2   : > { %p321_p1 = scmp.lt.s32.totalorder %s7889_s13, 5 }
   0x4   : > { %p322_p2 = pnand %p5935_p0, %p321_p1 }
   0x5   : > { %s360_s15 = smul.u32 (!%p322_p2), 11, %s7961_s14  ;;  %p5938_p5 = scmp.ne.s32.totalorder (!%p322_p2), %s7961_s14, 0 }
   0x6   : > { %325 = sbr.rel (%p322_p2) target bundleno = 1698 (0x6a2), region = 60 }
   0x7   : > { %s366_s16 = smul.u32 (!%p322_p2), 44, %s7961_s14  ;;  %p361_p3 = scmp.lt.s32.totalorder (!%p322_p2), %s360_s15, 43 }
   0x9   : > { %p367_p4 = scmp.lt.s32.totalorder (!%p322_p2), %s366_s16, 175 }
   0xd   : > { %s9348_s15 = smov (!%p361_p3, %s360_s15), 43  ;;  %s9350_s16 = smov (!%p367_p4, %s366_s16), 175 }
   0xe   : > { %s5936_s17 = sshll.u32 %s9348_s15, 1  ;;  %s7826_s21 = smul.u32 56, %s9350_s16  ;;  %v7891_v0 = vmov (!%p5938_p5), 0.0  }
   0xf   : > { %s7970_s20 = scalar_lea.vmem %s9336_s0, %s5936_s17  ;;  %376 = sbr.rel (%p5938_p5) target bundleno = 22 (0x16), region = 64  ;;  %377 = vst [vmem:[#allocation2] sm:$0xff] (!%p5938_p5), %v7891_v0  ;;  %378 = vst [vmem:[#allocation2 + $0x8] sm:$0x3f] (!%p5938_p5), %v7891_v0 }
  0x10   : > { %s7975_s24 = scalar_lea.vmem %s9337_s1, %s7826_s21 }
  0x16 PF: > { %v380_v1 = vld [vmem:[%s7975_s24 + $0x8] sm:$0xff]  ;;  %v379_v3 = vld [vmem:[%s7975_s24] sm:$0xff]  ;;  %v386_v17 = vld [vmem:[%s7975_s24 + $0x38] sm:$0xff]  ;;  %v3163_v31 = vlaneseq  ;;  %v7892_v37 = vmov 1983009808   ;;  %vm7895_vm0 = vmmov 0  }
  0x17   : > { %v436_v2 = vld [vmem:[%s7975_s24 + $0x1c8] sm:$0xff]  ;;  %v6260_v4 = vunpack.c.l.s8.bf16 %v380_v1  ;;  %v6264_v5 = vunpack.c.h.s8.bf16 %v380_v1  ;;  %v435_v8 = vld [vmem:[%s7975_s24 + $0x1c0] sm:$0xff]  ;;  %v6262_v9 = vunpack.c.l.s8.bf16 %v379_v3  ;;  %v6266_v13 = vunpack.c.h.s8.bf16 %v379_v3  ;;  %v442_v18 = vld [vmem:[%s7975_s24 + $0x1f8] sm:$0xff]  ;;  %p5939_p6 = scmp.ne.s32.totalorder %s7961_s14, 3 }
  0x18   : > { %v6324_v6 = vunpack.c.l.s8.bf16 %v436_v2  ;;  %v6328_v7 = vunpack.c.h.s8.bf16 %v436_v2  ;;  %v6326_v10 = vunpack.c.l.s8.bf16 %v435_v8  ;;  %v387_v11 = vld [vmem:[%s7975_s24 + $0x40] sm:$0xff]  ;;  %v6330_v14 = vunpack.c.h.s8.bf16 %v435_v8  ;;  %v394_v23 = vld [vmem:[%s7975_s24 + $0x78] sm:$0xff]  ;;  %v393_v29 = vld [vmem:[%s7975_s24 + $0x70] sm:$0xff] }
  0x19   : > { %v443_v12 = vld [vmem:[%s7975_s24 + $0x200] sm:$0xff]  ;;  %6261 = vmatprep.subr.bf16.mxu1 %v6260_v4  ;;  %v6268_v15 = vunpack.c.l.s8.bf16 %v387_v11  ;;  %v6270_v19 = vunpack.c.l.s8.bf16 %v386_v17  ;;  %v6334_v20 = vunpack.c.l.s8.bf16 %v442_v18  ;;  %v6272_v21 = vunpack.c.h.s8.bf16 %v387_v11  ;;  %v450_v24 = vld [vmem:[%s7975_s24 + $0x238] sm:$0xff]  ;;  %v449_v30 = vld [vmem:[%s7975_s24 + $0x230] sm:$0xff] }
  0x1a   : > { %6325 = vmatprep.subr.bf16.mxu0 %v6324_v6  ;;  %6263 = vmatpush1.bf16.msra.mxu1 %v6262_v9  ;;  %v6332_v16 = vunpack.c.l.s8.bf16 %v443_v12  ;;  %v6336_v22 = vunpack.c.h.s8.bf16 %v443_v12  ;;  %v6274_v25 = vunpack.c.h.s8.bf16 %v386_v17  ;;  %v6338_v26 = vunpack.c.h.s8.bf16 %v442_v18  ;;  %v3153_v34 = vld [vmem:[%s7970_s20] sm:$0xff]  ;;  %v401_v40 = vld [vmem:[%s7975_s24 + $0xb0] sm:$0xff]  ;;  %v400_v48 = vld [vmem:[%s7975_s24 + $0xa8] sm:$0xff] }
  0x1b   : > { %6327 = vmatpush1.bf16.msra.mxu0 %v6326_v10  ;;  %6265 = vmatprep.subr.bf16.mxu1 %v6264_v5  ;;  %v6276_v27 = vunpack.c.l.s8.bf16 %v394_v23  ;;  %v6340_v28 = vunpack.c.l.s8.bf16 %v450_v24  ;;  %v6278_v32 = vunpack.c.l.s8.bf16 %v393_v29  ;;  %v6342_v33 = vunpack.c.l.s8.bf16 %v449_v30  ;;  %v457_v41 = vld [vmem:[%s7975_s24 + $0x270] sm:$0xff]  ;;  %v456_v49 = vld [vmem:[%s7975_s24 + $0x268] sm:$0xff]  ;;  %v407_v1 = vld [vmem:[%s7975_s24 + $0xe0] sm:$0xff] }
  0x1c   : > { %6329 = vmatprep.subr.bf16.mxu0 %v6328_v7  ;;  %v6280_v35 = vunpack.c.h.s8.bf16 %v394_v23  ;;  %v6344_v36 = vunpack.c.h.s8.bf16 %v450_v24  ;;  %v3161_v38 = vunpack.c.l.s4 %v7892_v37  ;;  %v7991_v39 = vshrl.u32 %v3163_v31, 7  ;;  %v408_v59 = vld [vmem:[%s7975_s24 + $0xe8] sm:$0xff]  ;;  %v463_v2 = vld [vmem:[%s7975_s24 + $0x2a0] sm:$0xff]  ;;  %v429_v31 = vld [vmem:[%s7975_s24 + $0x190] sm:$0xff] }
  0x1d   : > { %v3159_v43 = vcombine.high %v3153_v34, %v3153_v34  ;;  %v6282_v44 = vunpack.c.h.s8.bf16 %v393_v29  ;;  %v6346_v45 = vunpack.c.h.s8.bf16 %v449_v30  ;;  %v6284_v46 = vunpack.c.l.s8.bf16 %v401_v40  ;;  %v464_v60 = vld [vmem:[%s7975_s24 + $0x2a8] sm:$0xff]  ;;  %v415_v7 = vld [vmem:[%s7975_s24 + $0x120] sm:$0xff] }
  0x1e   : > { %6267 = vmatpush1.bf16.msra.mxu1 %v6266_v13  ;;  %v3162_v42 = vunpack.c.0.s8 %v3161_v38  ;;  %v6348_v47 = vunpack.c.l.s8.bf16 %v457_v41  ;;  %v6286_v53 = vunpack.c.l.s8.bf16 %v400_v48  ;;  %v6350_v54 = vunpack.c.l.s8.bf16 %v456_v49  ;;  %v471_v8 = vld [vmem:[%s7975_s24 + $0x2e0] sm:$0xff]  ;;  %v414_v13 = vld [vmem:[%s7975_s24 + $0x118] sm:$0xff]  ;;  %v428_v37 = vld [vmem:[%s7975_s24 + $0x188] sm:$0xff] }
  0x1f   : > { %6331 = vmatpush1.bf16.msra.mxu0 %v6330_v14  ;;  %6269 = vmatprep.subr.bf16.mxu1 %v6268_v15  ;;  %v6288_v55 = vunpack.c.h.s8.bf16 %v401_v40  ;;  %v6352_v56 = vunpack.c.h.s8.bf16 %v457_v41  ;;  %v6290_v61 = vunpack.c.h.s8.bf16 %v400_v48  ;;  %v6354_v62 = vunpack.c.h.s8.bf16 %v456_v49  ;;  %v470_v14 = vld [vmem:[%s7975_s24 + $0x2d8] sm:$0xff]  ;;  %v484_v38 = vld [vmem:[%s7975_s24 + $0x348] sm:$0xff] }
  0x20   : > { %6333 = vmatprep.subr.bf16.mxu0 %v6332_v16  ;;  %v7998_v50 = vsub.s32 %v3162_v42, %v7991_v39  ;;  %v6292_v63 = vunpack.c.l.s8.bf16 %v408_v59  ;;  %v6356_v0 = vunpack.c.l.s8.bf16 %v464_v60  ;;  %v6294_v3 = vunpack.c.l.s8.bf16 %v407_v1 }
  0x21   : > { %v6358_v4 = vunpack.c.l.s8.bf16 %v463_v2  ;;  %v6296_v5 = vunpack.c.h.s8.bf16 %v408_v59  ;;  %v6360_v6 = vunpack.c.h.s8.bf16 %v464_v60  ;;  %v6298_v9 = vunpack.c.h.s8.bf16 %v407_v1 }
  0x22   : > { %6271 = vmatpush1.bf16.msra.mxu1 %v6270_v19  ;;  %v8001_v51 = vrot.slane %v3153_v34, %v7998_v50  ;;  %v8004_v52 = vrot.slane %v3159_v43, %v7998_v50  ;;  %v6362_v10 = vunpack.c.h.s8.bf16 %v463_v2  ;;  %v6300_v11 = vunpack.c.l.s8.bf16 %v415_v7  ;;  %v422_v19 = vld [vmem:[%s7975_s24 + $0x158] sm:$0xff] }
  0x23   : > { %6335 = vmatpush1.bf16.msra.mxu0 %v6334_v20  ;;  %6273 = vmatprep.subr.bf16.mxu1 %v6272_v21  ;;  %v6364_v12 = vunpack.c.l.s8.bf16 %v471_v8  ;;  %v6302_v15 = vunpack.c.l.s8.bf16 %v414_v13  ;;  %v6366_v16 = vunpack.c.l.s8.bf16 %v470_v14  ;;  %v6304_v17 = vunpack.c.h.s8.bf16 %v415_v7  ;;  %v478_v20 = vld [vmem:[%s7975_s24 + $0x318] sm:$0xff]  ;;  %v388_v7 = vld [vmem:[%s7975_s24 + $0x48] sm:$0xff] }
  0x24   : > { %6337 = vmatprep.subr.bf16.mxu0 %v6336_v22  ;;  %v8008_v57 = vcombine.high %v8001_v51, %v8001_v51  ;;  %v8012_v58 = vcombine.high %v8004_v52, %v8004_v52  ;;  %v6368_v18 = vunpack.c.h.s8.bf16 %v471_v8  ;;  %v6306_v21 = vunpack.c.h.s8.bf16 %v414_v13  ;;  %v396_v13 = vld [vmem:[%s7975_s24 + $0x88] sm:$0xff] }
  0x25   : > { %v6370_v22 = vunpack.c.h.s8.bf16 %v470_v14  ;;  %v6308_v23 = vunpack.c.l.s8.bf16 %v422_v19  ;;  %v6372_v24 = vunpack.c.l.s8.bf16 %v478_v20  ;;  %v6312_v29 = vunpack.c.h.s8.bf16 %v422_v19  ;;  %v395_v19 = vld [vmem:[%s7975_s24 + $0x80] sm:$0xff] }
  0x26   : > { %6275 = vmatpush1.bf16.msra.mxu1 %v6274_v25  ;;  %3284 = vmatprep.mubr.f32.mxu1 %v8008_v57  ;;  %v421_v25 = vld [vmem:[%s7975_s24 + $0x150] sm:$0xff]  ;;  %v6376_v30 = vunpack.c.h.s8.bf16 %v478_v20  ;;  %v6318_v40 = vunpack.c.l.s8.bf16 %v428_v37  ;;  %v6382_v41 = vunpack.c.l.s8.bf16 %v484_v38  ;;  %v6320_v42 = vunpack.c.h.s8.bf16 %v429_v31 }
  0x27   : > { %6339 = vmatpush1.bf16.msra.mxu0 %v6338_v26  ;;  %6277 = vmatprep.subr.bf16.mxu1 %v6276_v27  ;;  %v477_v26 = vld [vmem:[%s7975_s24 + $0x310] sm:$0xff]  ;;  %v6310_v27 = vunpack.c.l.s8.bf16 %v421_v25  ;;  %v6386_v48 = vunpack.c.h.s8.bf16 %v484_v38  ;;  %vm7898_vm1 = vmmov (!%p5939_p6), 0  }
  0x28   : > { %6341 = vmatprep.subr.bf16.mxu0 %v6340_v28  ;;  %3355 = vmatprep.mubr.f32.mxu0 %v8012_v58  ;;  %v6374_v28 = vunpack.c.l.s8.bf16 %v477_v26  ;;  %v6378_v34 = vunpack.c.h.s8.bf16 %v477_v26 }
  0x2a   : > { %6279 = vmatpush1.bf16.msra.mxu1 %v6278_v32  ;;  %v485_v32 = vld [vmem:[%s7975_s24 + $0x350] sm:$0xff] }
  0x2b   : > { %6343 = vmatpush1.bf16.msra.mxu0 %v6342_v33  ;;  %6281 = vmatprep.subr.bf16.mxu1 %v6280_v35  ;;  %v6314_v33 = vunpack.c.h.s8.bf16 %v421_v25  ;;  %v6316_v35 = vunpack.c.l.s8.bf16 %v429_v31  ;;  %v6384_v43 = vunpack.c.h.s8.bf16 %v485_v32  ;;  %v403_v25 = vld [vmem:[%s7975_s24 + $0xc0] sm:$0xff]  ;;  %v402_v31 = vld [vmem:[%s7975_s24 + $0xb8] sm:$0xff] }
  0x2c   : > { %6345 = vmatprep.subr.bf16.mxu0 %v6344_v36  ;;  %v6380_v36 = vunpack.c.l.s8.bf16 %v485_v32 }
  0x2e   : > { %6283 = vmatpush1.bf16.msra.mxu1 %v6282_v44  ;;  %v492_v44 = vld [vmem:[%s7975_s24 + $0x388] sm:$0xff] }
  0x2f   : > { %6347 = vmatpush1.bf16.msra.mxu0 %v6346_v45  ;;  %6285 = vmatprep.subr.bf16.mxu1 %v6284_v46  ;;  %v382_v45 = vld [vmem:[%s7975_s24 + $0x18] sm:$0xff]  ;;  %v8035_v46 = vld [vmem:[%s7970_s20 + $0x8] sm:$0xff]  ;;  %v6388_v49 = vunpack.c.l.s8.bf16 %v492_v44 }
  0x30   : > { %6349 = vmatprep.subr.bf16.mxu0 %v6348_v47  ;;  %v6322_v47 = vunpack.c.h.s8.bf16 %v428_v37  ;;  %v410_v37 = vld [vmem:[%s7975_s24 + $0xf8] sm:$0xff] }
  0x32   : > { %6287 = vmatpush1.bf16.msra.mxu1 %v6286_v53  ;;  %v6612_v53 = vunpack.c.l.s8.bf16 %v382_v45 }
  0x33   : > { %6351 = vmatpush1.bf16.msra.mxu0 %v6350_v54  ;;  %6289 = vmatprep.subr.bf16.mxu1 %v6288_v55  ;;  %v491_v54 = vld [vmem:[%s7975_s24 + $0x380] sm:$0xff]  ;;  %v381_v55 = vld [vmem:[%s7975_s24 + $0x10] sm:$0xff] }
  0x34   : > { %6353 = vmatprep.subr.bf16.mxu0 %v6352_v56  ;;  %v8041_v56 = vrot.slane %v8035_v46, %v7998_v50  ;;  %v6390_v59 = vunpack.c.l.s8.bf16 %v491_v54  ;;  %v6614_v60 = vunpack.c.l.s8.bf16 %v381_v55  ;;  %v6394_v2 = vunpack.c.h.s8.bf16 %v491_v54  ;;  %v417_v54 = vld [vmem:[%s7975_s24 + $0x130] sm:$0xff] }
  0x36   : > { %6291 = vmatpush1.bf16.msra.mxu1 %v6290_v61  ;;  %v6392_v61 = vunpack.c.h.s8.bf16 %v492_v44  ;;  %v8047_v1 = vcombine.high %v8041_v56, %v8041_v56  ;;  %v409_v44 = vld [vmem:[%s7975_s24 + $0xf0] sm:$0xff] }
  0x37   : > { %6355 = vmatpush1.bf16.msra.mxu0 %v6354_v62  ;;  %6293 = vmatprep.subr.bf16.mxu1 %v6292_v63  ;;  %v6616_v62 = vunpack.c.h.s8.bf16 %v382_v45  ;;  %v499_v63 = vld [vmem:[%s7975_s24 + $0x3c0] sm:$0xff] }
  0x38   : > { %6357 = vmatprep.subr.bf16.mxu0 %v6356_v0  ;;  %v389_v0 = vld [vmem:[%s7975_s24 + $0x50] sm:$0xff] }
  0x3a   : > { %6295 = vmatpush1.bf16.msra.mxu1 %v6294_v3  ;;  %v6618_v3 = vunpack.c.h.s8.bf16 %v381_v55 }
  0x3b   : > { %6359 = vmatpush1.bf16.msra.mxu0 %v6358_v4  ;;  %6297 = vmatprep.subr.bf16.mxu1 %v6296_v5  ;;  %v6396_v4 = vunpack.c.l.s8.bf16 %v499_v63  ;;  %v6620_v5 = vunpack.c.l.s8.bf16 %v389_v0 }
  0x3c   : > { %6361 = vmatprep.subr.bf16.mxu0 %v6360_v6  ;;  %v498_v6 = vld [vmem:[%s7975_s24 + $0x3b8] sm:$0xff] }
  0x3d   : > { %v6398_v8 = vunpack.c.l.s8.bf16 %v498_v6  ;;  %v6402_v14 = vunpack.c.h.s8.bf16 %v498_v6  ;;  %v424_v6 = vld [vmem:[%s7975_s24 + $0x168] sm:$0xff] }
  0x3e   : > { %6299 = vmatpush1.bf16.msra.mxu1 %v6298_v9  ;;  %v6622_v9 = vunpack.c.l.s8.bf16 %v388_v7 }
  0x3f   : > { %6363 = vmatpush1.bf16.msra.mxu0 %v6362_v10  ;;  %6301 = vmatprep.subr.bf16.mxu1 %v6300_v11  ;;  %v6400_v10 = vunpack.c.h.s8.bf16 %v499_v63  ;;  %v6624_v11 = vunpack.c.h.s8.bf16 %v389_v0  ;;  %v416_v63 = vld [vmem:[%s7975_s24 + $0x128] sm:$0xff] }
  0x40   : > { %6365 = vmatprep.subr.bf16.mxu0 %v6364_v12  ;;  %v506_v12 = vld [vmem:[%s7975_s24 + $0x3f8] sm:$0xff] }
  0x42   : > { %6303 = vmatpush1.bf16.msra.mxu1 %v6302_v15  ;;  %v6626_v15 = vunpack.c.h.s8.bf16 %v388_v7 }
  0x43   : > { %6367 = vmatpush1.bf16.msra.mxu0 %v6366_v16  ;;  %6305 = vmatprep.subr.bf16.mxu1 %v6304_v17  ;;  %v6404_v16 = vunpack.c.l.s8.bf16 %v506_v12  ;;  %v6628_v17 = vunpack.c.l.s8.bf16 %v396_v13 }
  0x44   : > { %6369 = vmatprep.subr.bf16.mxu0 %v6368_v18  ;;  %v505_v18 = vld [vmem:[%s7975_s24 + $0x3f0] sm:$0xff] }
  0x45   : > { %v6406_v20 = vunpack.c.l.s8.bf16 %v505_v18  ;;  %v6410_v26 = vunpack.c.h.s8.bf16 %v505_v18  ;;  %v431_v18 = vld [vmem:[%s7975_s24 + $0x1a0] sm:$0xff] }
  0x46   : > { %6307 = vmatpush1.bf16.msra.mxu1 %v6306_v21  ;;  %v6630_v21 = vunpack.c.l.s8.bf16 %v395_v19 }
  0x47   : > { %6371 = vmatpush1.bf16.msra.mxu0 %v6370_v22  ;;  %6309 = vmatprep.subr.bf16.mxu1 %v6308_v23  ;;  %v6408_v22 = vunpack.c.h.s8.bf16 %v506_v12  ;;  %v6632_v23 = vunpack.c.h.s8.bf16 %v396_v13  ;;  %v423_v12 = vld [vmem:[%s7975_s24 + $0x160] sm:$0xff] }
  0x48   : > { %6373 = vmatprep.subr.bf16.mxu0 %v6372_v24  ;;  %v513_v24 = vld [vmem:[%s7975_s24 + $0x430] sm:$0xff] }
  0x4a   : > { %6311 = vmatpush1.bf16.msra.mxu1 %v6310_v27  ;;  %v6634_v27 = vunpack.c.h.s8.bf16 %v395_v19 }
  0x4b   : > { %6375 = vmatpush1.bf16.msra.mxu0 %v6374_v28  ;;  %6313 = vmatprep.subr.bf16.mxu1 %v6312_v29  ;;  %v6412_v28 = vunpack.c.l.s8.bf16 %v513_v24  ;;  %v6636_v29 = vunpack.c.l.s8.bf16 %v403_v25 }
  0x4c   : > { %6377 = vmatprep.subr.bf16.mxu0 %v6376_v30  ;;  %v512_v30 = vld [vmem:[%s7975_s24 + $0x428] sm:$0xff] }
  0x4d   : > { %v6414_v32 = vunpack.c.l.s8.bf16 %v512_v30  ;;  %v6418_v38 = vunpack.c.h.s8.bf16 %v512_v30  ;;  %v438_v30 = vld [vmem:[%s7975_s24 + $0x1d8] sm:$0xff] }
  0x4e   : > { %6315 = vmatpush1.bf16.msra.mxu1 %v6314_v33  ;;  %v6638_v33 = vunpack.c.l.s8.bf16 %v402_v31 }
  0x4f   : > { %6379 = vmatpush1.bf16.msra.mxu0 %v6378_v34  ;;  %6317 = vmatprep.subr.bf16.mxu1 %v6316_v35  ;;  %v6416_v34 = vunpack.c.h.s8.bf16 %v513_v24  ;;  %v6640_v35 = vunpack.c.h.s8.bf16 %v403_v25  ;;  %v430_v24 = vld [vmem:[%s7975_s24 + $0x198] sm:$0xff] }
  0x50   : > { %6381 = vmatprep.subr.bf16.mxu0 %v6380_v36  ;;  %v520_v36 = vld [vmem:[%s7975_s24 + $0x468] sm:$0xff] }
  0x52   : > { %6319 = vmatpush1.bf16.msra.mxu1 %v6318_v40  ;;  %v6642_v40 = vunpack.c.h.s8.bf16 %v402_v31  ;;  %v3176_v31 = vcombine.high %v8035_v46, %v8035_v46 }
  0x53   : > { %6383 = vmatpush1.bf16.msra.mxu0 %v6382_v41  ;;  %6321 = vmatprep.subr.bf16.mxu1 %v6320_v42  ;;  %v6420_v41 = vunpack.c.l.s8.bf16 %v520_v36  ;;  %v6644_v42 = vunpack.c.l.s8.bf16 %v410_v37 }
  0x54   : > { %6385 = vmatprep.subr.bf16.mxu0 %v6384_v43  ;;  %v519_v43 = vld [vmem:[%s7975_s24 + $0x460] sm:$0xff] }
  0x55   : > { %v6422_v45 = vunpack.c.l.s8.bf16 %v519_v43  ;;  %v6426_v55 = vunpack.c.h.s8.bf16 %v519_v43  ;;  %v555_v43 = vld [vmem:[%s7975_s24 + $0x580] sm:$0xff] }
  0x56   : > { %6323 = vmatpush1.bf16.msra.mxu1 %v6322_v47  ;;  %v6646_v47 = vunpack.c.l.s8.bf16 %v409_v44 }
  0x57   : > { %6387 = vmatpush1.bf16.msra.mxu0 %v6386_v48  ;;  %6613 = vmatprep.subr.bf16.mxu1 %v6612_v53  ;;  %v6424_v48 = vunpack.c.h.s8.bf16 %v520_v36  ;;  %v527_v53 = vld [vmem:[%s7975_s24 + $0x4a0] sm:$0xff] }
  0x58   : > { %6389 = vmatprep.subr.bf16.mxu0 %v6388_v49  ;;  %v6648_v49 = vunpack.c.h.s8.bf16 %v410_v37  ;;  %v547_v36 = vld [vmem:[%s7975_s24 + $0x540] sm:$0xff]  ;;  %v437_v37 = vld [vmem:[%s7975_s24 + $0x1d0] sm:$0xff] }
  0x59   : > { %3285 = vmatmul.mubr.f32.vlgmr.msra.gmra.mrb[0].mxu1 %v8001_v51 }
  0x5a   : > { %3356 = vmatmul.mubr.f32.vlgmr.msra.gmra.mrb[0].mxu0 %v8004_v52  ;;  %6615 = vmatpush1.bf16.msra.mxu1 %v6614_v60  ;;  %v6428_v60 = vunpack.c.l.s8.bf16 %v527_v53 }
  0x5b   : > { %6391 = vmatpush1.bf16.msra.mxu0 %v6390_v59  ;;  %6617 = vmatprep.subr.bf16.mxu1 %v6616_v62  ;;  %v6650_v59 = vunpack.c.h.s8.bf16 %v409_v44  ;;  %v526_v62 = vld [vmem:[%s7975_s24 + $0x498] sm:$0xff]  ;;  %v445_v44 = vld [vmem:[%s7975_s24 + $0x210] sm:$0xff] }
  0x5c   : > { %6393 = vmatprep.subr.bf16.mxu0 %v6392_v61  ;;  %3426 = vmatprep.mubr.f32.mxu0 %v8047_v1  ;;  %v6652_v61 = vunpack.c.l.s8.bf16 %v417_v54  ;;  %v6430_v0 = vunpack.c.l.s8.bf16 %v526_v62  ;;  %v6434_v7 = vunpack.c.h.s8.bf16 %v526_v62  ;;  %v6688_v62 = vunpack.c.h.s8.bf16 %v445_v44 }
  0x5d   : > { %3710 = vmatprep.mubr.f32.mxu1 %v8008_v57 }
  0x5e   : > { %6619 = vmatpush1.bf16.msra.mxu1 %v6618_v3  ;;  %v6432_v3 = vunpack.c.h.s8.bf16 %v527_v53  ;;  %v6684_v53 = vunpack.c.l.s8.bf16 %v445_v44  ;;  %v472_v44 = vld [vmem:[%s7975_s24 + $0x2e8] sm:$0xff] }
  0x5f   : > { %6395 = vmatpush1.bf16.msra.mxu0 %v6394_v2  ;;  %6621 = vmatprep.subr.bf16.mxu1 %v6620_v5  ;;  %v6654_v2 = vunpack.c.l.s8.bf16 %v416_v63  ;;  %v534_v5 = vld [vmem:[%s7975_s24 + $0x4d8] sm:$0xff] }
  0x60   : > { %6397 = vmatprep.subr.bf16.mxu0 %v6396_v4  ;;  %v6656_v4 = vunpack.c.h.s8.bf16 %v417_v54  ;;  %v554_v54 = vld [vmem:[%s7975_s24 + $0x578] sm:$0xff] }
  0x62   : > { %6623 = vmatpush1.bf16.msra.mxu1 %v6622_v9  ;;  %v6436_v9 = vunpack.c.l.s8.bf16 %v534_v5 }
  0x63   : > { %6399 = vmatpush1.bf16.msra.mxu0 %v6398_v8  ;;  %6625 = vmatprep.subr.bf16.mxu1 %v6624_v11  ;;  %v6658_v8 = vunpack.c.h.s8.bf16 %v416_v63  ;;  %v533_v11 = vld [vmem:[%s7975_s24 + $0x4d0] sm:$0xff]  ;;  %v562_v63 = vld [vmem:[%s7975_s24 + $0x5b8] sm:$0xff] }
  0x64   : > { %6401 = vmatprep.subr.bf16.mxu0 %v6400_v10  ;;  %v6660_v10 = vunpack.c.l.s8.bf16 %v424_v6  ;;  %v6438_v13 = vunpack.c.l.s8.bf16 %v533_v11  ;;  %v6442_v19 = vunpack.c.h.s8.bf16 %v533_v11 }
  0x66   : > { %6627 = vmatpush1.bf16.msra.mxu1 %v6626_v15  ;;  %v6440_v15 = vunpack.c.h.s8.bf16 %v534_v5 }
  0x67   : > { %6403 = vmatpush1.bf16.msra.mxu0 %v6402_v14  ;;  %6629 = vmatprep.subr.bf16.mxu1 %v6628_v17  ;;  %v6662_v14 = vunpack.c.l.s8.bf16 %v423_v12  ;;  %v541_v17 = vld [vmem:[%s7975_s24 + $0x510] sm:$0xff] }
  0x68   : > { %6405 = vmatprep.subr.bf16.mxu0 %v6404_v16  ;;  %v6664_v16 = vunpack.c.h.s8.bf16 %v424_v6  ;;  %v561_v6 = vld [vmem:[%s7975_s24 + $0x5b0] sm:$0xff] }
  0x6a   : > { %6631 = vmatpush1.bf16.msra.mxu1 %v6630_v21  ;;  %v6444_v21 = vunpack.c.l.s8.bf16 %v541_v17 }
  0x6b   : > { %6407 = vmatpush1.bf16.msra.mxu0 %v6406_v20  ;;  %6633 = vmatprep.subr.bf16.mxu1 %v6632_v23  ;;  %v6666_v20 = vunpack.c.h.s8.bf16 %v423_v12  ;;  %v540_v23 = vld [vmem:[%s7975_s24 + $0x508] sm:$0xff]  ;;  %v569_v12 = vld [vmem:[%s7975_s24 + $0x5f0] sm:$0xff] }
  0x6c   : > { %6409 = vmatprep.subr.bf16.mxu0 %v6408_v22  ;;  %v6668_v22 = vunpack.c.l.s8.bf16 %v431_v18  ;;  %v6446_v25 = vunpack.c.l.s8.bf16 %v540_v23 }
  0x6e   : > { %6635 = vmatpush1.bf16.msra.mxu1 %v6634_v27  ;;  %v6448_v27 = vunpack.c.h.s8.bf16 %v541_v17 }
  0x6f   : > { %6411 = vmatpush1.bf16.msra.mxu0 %v6410_v26  ;;  %6637 = vmatprep.subr.bf16.mxu1 %v6636_v29  ;;  %v6670_v26 = vunpack.c.l.s8.bf16 %v430_v24  ;;  %v548_v29 = vld [vmem:[%s7975_s24 + $0x548] sm:$0xff] }
  0x70   : > { %6413 = vmatprep.subr.bf16.mxu0 %v6412_v28  ;;  %v6672_v28 = vunpack.c.h.s8.bf16 %v431_v18  ;;  %v6456_v46 = vunpack.c.h.s8.bf16 %v548_v29  ;;  %v568_v18 = vld [vmem:[%s7975_s24 + $0x5e8] sm:$0xff] }
  0x72   : > { %6639 = vmatpush1.bf16.msra.mxu1 %v6638_v33  ;;  %v6674_v33 = vunpack.c.h.s8.bf16 %v430_v24  ;;  %v576_v24 = vld [vmem:[%s7975_s24 + $0x628] sm:$0xff] }
  0x73   : > { %6415 = vmatpush1.bf16.msra.mxu0 %v6414_v32  ;;  %6641 = vmatprep.subr.bf16.mxu1 %v6640_v35  ;;  %v6450_v32 = vunpack.c.h.s8.bf16 %v540_v23  ;;  %v6676_v35 = vunpack.c.l.s8.bf16 %v438_v30 }
  0x74   : > { %6417 = vmatprep.subr.bf16.mxu0 %v6416_v34  ;;  %v6452_v34 = vunpack.c.l.s8.bf16 %v548_v29 }
  0x76   : > { %6643 = vmatpush1.bf16.msra.mxu1 %v6642_v40  ;;  %v6454_v40 = vunpack.c.l.s8.bf16 %v547_v36 }
  0x77   : > { %6419 = vmatpush1.bf16.msra.mxu0 %v6418_v38  ;;  %6645 = vmatprep.subr.bf16.mxu1 %v6644_v42  ;;  %v8086_v38 = vrot.slane %v3176_v31, %v7998_v50  ;;  %v6680_v42 = vunpack.c.h.s8.bf16 %v438_v30  ;;  %v575_v30 = vld [vmem:[%s7975_s24 + $0x620] sm:$0xff]  ;;  %v465_v31 = vld [vmem:[%s7975_s24 + $0x2b0] sm:$0xff] }
  0x78   : > { %6421 = vmatprep.subr.bf16.mxu0 %v6420_v41  ;;  %v6678_v41 = vunpack.c.l.s8.bf16 %v437_v37 }
  0x7a   : > { %6647 = vmatpush1.bf16.msra.mxu1 %v6646_v47  ;;  %v6458_v47 = vunpack.c.h.s8.bf16 %v547_v36  ;;  %v583_v36 = vld [vmem:[%s7975_s24 + $0x660] sm:$0xff] }
  0x7b   : > { %6423 = vmatpush1.bf16.msra.mxu0 %v6422_v45  ;;  %6649 = vmatprep.subr.bf16.mxu1 %v6648_v49  ;;  %v8092_v45 = vcombine.high %v8086_v38, %v8086_v38  ;;  %v6460_v49 = vunpack.c.l.s8.bf16 %v555_v43 }
  0x7c   : > { %6425 = vmatprep.subr.bf16.mxu0 %v6424_v48  ;;  %v6682_v48 = vunpack.c.h.s8.bf16 %v437_v37  ;;  %v473_v37 = vld [vmem:[%s7975_s24 + $0x2f0] sm:$0xff] }
  0x7e   : > { %6651 = vmatpush1.bf16.msra.mxu1 %v6650_v59  ;;  %v6462_v59 = vunpack.c.l.s8.bf16 %v554_v54 }
  0x7f   : > { %6427 = vmatpush1.bf16.msra.mxu0 %v6426_v55  ;;  %6653 = vmatprep.subr.bf16.mxu1 %v6652_v61  ;;  %v444_v55 = vld [vmem:[%s7975_s24 + $0x208] sm:$0xff]  ;;  %v6464_v61 = vunpack.c.h.s8.bf16 %v555_v43  ;;  %v582_v43 = vld [vmem:[%s7975_s24 + $0x658] sm:$0xff] }
  0x80   : > { %6429 = vmatprep.subr.bf16.mxu0 %v6428_v60  ;;  %v6686_v60 = vunpack.c.l.s8.bf16 %v444_v55 }
  0x82   : > { %6655 = vmatpush1.bf16.msra.mxu1 %v6654_v2  ;;  %v6466_v2 = vunpack.c.h.s8.bf16 %v554_v54  ;;  %v590_v54 = vld [vmem:[%s7975_s24 + $0x698] sm:$0xff] }
  0x83   : > { %6431 = vmatpush1.bf16.msra.mxu0 %v6430_v0  ;;  %6657 = vmatprep.subr.bf16.mxu1 %v6656_v4  ;;  %v452_v0 = vld [vmem:[%s7975_s24 + $0x248] sm:$0xff]  ;;  %v6468_v4 = vunpack.c.l.s8.bf16 %v562_v63 }
  0x84   : > { %6433 = vmatprep.subr.bf16.mxu0 %v6432_v3  ;;  %v6690_v3 = vunpack.c.h.s8.bf16 %v444_v55  ;;  %v6692_v5 = vunpack.c.l.s8.bf16 %v452_v0  ;;  %v6696_v11 = vunpack.c.h.s8.bf16 %v452_v0  ;;  %v480_v55 = vld [vmem:[%s7975_s24 + $0x328] sm:$0xff]  ;;  %v479_v0 = vld [vmem:[%s7975_s24 + $0x320] sm:$0xff] }
  0x86   : > { %6659 = vmatpush1.bf16.msra.mxu1 %v6658_v8  ;;  %v6470_v8 = vunpack.c.l.s8.bf16 %v561_v6 }
  0x87   : > { %6435 = vmatpush1.bf16.msra.mxu0 %v6434_v7  ;;  %6661 = vmatprep.subr.bf16.mxu1 %v6660_v10  ;;  %v451_v7 = vld [vmem:[%s7975_s24 + $0x240] sm:$0xff]  ;;  %v6472_v10 = vunpack.c.h.s8.bf16 %v562_v63  ;;  %v589_v63 = vld [vmem:[%s7975_s24 + $0x690] sm:$0xff] }
  0x88   : > { %6437 = vmatprep.subr.bf16.mxu0 %v6436_v9  ;;  %v6694_v9 = vunpack.c.l.s8.bf16 %v451_v7 }
  0x8a   : > { %6663 = vmatpush1.bf16.msra.mxu1 %v6662_v14  ;;  %v6474_v14 = vunpack.c.h.s8.bf16 %v561_v6  ;;  %v597_v6 = vld [vmem:[%s7975_s24 + $0x6d0] sm:$0xff] }
  0x8b   : > { %6439 = vmatpush1.bf16.msra.mxu0 %v6438_v13  ;;  %6665 = vmatprep.subr.bf16.mxu1 %v6664_v16  ;;  %v459_v13 = vld [vmem:[%s7975_s24 + $0x280] sm:$0xff]  ;;  %v6476_v16 = vunpack.c.l.s8.bf16 %v569_v12 }
  0x8c   : > { %6441 = vmatprep.subr.bf16.mxu0 %v6440_v15  ;;  %v6698_v15 = vunpack.c.h.s8.bf16 %v451_v7  ;;  %v6700_v17 = vunpack.c.l.s8.bf16 %v459_v13  ;;  %v6704_v23 = vunpack.c.h.s8.bf16 %v459_v13  ;;  %v487_v7 = vld [vmem:[%s7975_s24 + $0x360] sm:$0xff]  ;;  %v486_v13 = vld [vmem:[%s7975_s24 + $0x358] sm:$0xff] }
  0x8e   : > { %6667 = vmatpush1.bf16.msra.mxu1 %v6666_v20  ;;  %v6478_v20 = vunpack.c.l.s8.bf16 %v568_v18 }
  0x8f   : > { %6443 = vmatpush1.bf16.msra.mxu0 %v6442_v19  ;;  %6669 = vmatprep.subr.bf16.mxu1 %v6668_v22  ;;  %v458_v19 = vld [vmem:[%s7975_s24 + $0x278] sm:$0xff]  ;;  %v6480_v22 = vunpack.c.h.s8.bf16 %v569_v12  ;;  %v596_v12 = vld [vmem:[%s7975_s24 + $0x6c8] sm:$0xff] }
  0x90   : > { %6445 = vmatprep.subr.bf16.mxu0 %v6444_v21  ;;  %v6702_v21 = vunpack.c.l.s8.bf16 %v458_v19 }
  0x92   : > { %6671 = vmatpush1.bf16.msra.mxu1 %v6670_v26  ;;  %v6482_v26 = vunpack.c.h.s8.bf16 %v568_v18  ;;  %v604_v18 = vld [vmem:[%s7975_s24 + $0x708] sm:$0xff] }
  0x93   : > { %6447 = vmatpush1.bf16.msra.mxu0 %v6446_v25  ;;  %6673 = vmatprep.subr.bf16.mxu1 %v6672_v28  ;;  %v466_v25 = vld [vmem:[%s7975_s24 + $0x2b8] sm:$0xff]  ;;  %v6484_v28 = vunpack.c.l.s8.bf16 %v576_v24 }
  0x94   : > { %6449 = vmatprep.subr.bf16.mxu0 %v6448_v27  ;;  %v6706_v27 = vunpack.c.h.s8.bf16 %v458_v19  ;;  %v6708_v29 = vunpack.c.l.s8.bf16 %v466_v25  ;;  %v494_v19 = vld [vmem:[%s7975_s24 + $0x398] sm:$0xff] }
  0x96   : > { %6675 = vmatpush1.bf16.msra.mxu1 %v6674_v33  ;;  %v6710_v33 = vunpack.c.l.s8.bf16 %v465_v31 }
  0x97   : > { %6451 = vmatpush1.bf16.msra.mxu0 %v6450_v32  ;;  %6677 = vmatprep.subr.bf16.mxu1 %v6676_v35  ;;  %v6486_v32 = vunpack.c.l.s8.bf16 %v575_v30  ;;  %v6712_v35 = vunpack.c.h.s8.bf16 %v466_v25  ;;  %v603_v25 = vld [vmem:[%s7975_s24 + $0x700] sm:$0xff] }
  0x98   : > { %6453 = vmatprep.subr.bf16.mxu0 %v6452_v34  ;;  %v6488_v34 = vunpack.c.h.s8.bf16 %v576_v24  ;;  %v6740_v24 = vunpack.c.l.s8.bf16 %v494_v19 }
  0x99   : > { %3711 = vmatmul.mubr.f32.vlgmr.msra.gmra.mrb[2].mxu1 %v8001_v51 }
  0x9a   : > { %3427 = vmatmul.mubr.f32.vlgmr.msra.gmra.mrb[0].mxu0 %v8041_v56  ;;  %6679 = vmatpush1.bf16.msra.mxu1 %v6678_v41  ;;  %v6714_v41 = vunpack.c.h.s8.bf16 %v465_v31  ;;  %v6744_v31 = vunpack.c.h.s8.bf16 %v494_v19 }
  0x9b   : > { %6455 = vmatpush1.bf16.msra.mxu0 %v6454_v40  ;;  %6681 = vmatprep.subr.bf16.mxu1 %v6680_v42  ;;  %v6490_v40 = vunpack.c.h.s8.bf16 %v575_v30  ;;  %v6716_v42 = vunpack.c.l.s8.bf16 %v473_v37  ;;  %v6520_v30 = vunpack.c.h.s8.bf16 %v604_v18 }
  0x9c   : > { %6457 = vmatprep.subr.bf16.mxu0 %v6456_v46  ;;  %3497 = vmatprep.mubr.f32.mxu0 %v8092_v45  ;;  %v6492_v46 = vunpack.c.l.s8.bf16 %v583_v36 }
  0x9d   : > { %3781 = vmatprep.mubr.f32.mxu1 %v8012_v58 }
  0x9e   : > { %6683 = vmatpush1.bf16.msra.mxu1 %v6682_v48  ;;  %v6718_v48 = vunpack.c.l.s8.bf16 %v472_v44 }
  0x9f   : > { %6459 = vmatpush1.bf16.msra.mxu0 %v6458_v47  ;;  %6685 = vmatprep.subr.bf16.mxu1 %v6684_v53  ;;  %v6494_v47 = vunpack.c.l.s8.bf16 %v582_v43  ;;  %v6720_v53 = vunpack.c.h.s8.bf16 %v473_v37 }
  0xa0   : > { %6461 = vmatprep.subr.bf16.mxu0 %v6460_v49  ;;  %v6496_v49 = vunpack.c.h.s8.bf16 %v583_v36 }
  0xa2   : > { %6687 = vmatpush1.bf16.msra.mxu1 %v6686_v60  ;;  %v6722_v60 = vunpack.c.h.s8.bf16 %v472_v44 }
  0xa3   : > { %6463 = vmatpush1.bf16.msra.mxu0 %v6462_v59  ;;  %6689 = vmatprep.subr.bf16.mxu1 %v6688_v62  ;;  %v6498_v59 = vunpack.c.h.s8.bf16 %v582_v43  ;;  %v6724_v62 = vunpack.c.l.s8.bf16 %v480_v55 }
  0xa4   : > { %6465 = vmatprep.subr.bf16.mxu0 %v6464_v61  ;;  %v6500_v61 = vunpack.c.l.s8.bf16 %v590_v54 }
  0xa6   : > { %6691 = vmatpush1.bf16.msra.mxu1 %v6690_v3  ;;  %v6726_v3 = vunpack.c.l.s8.bf16 %v479_v0 }
  0xa7   : > { %6467 = vmatpush1.bf16.msra.mxu0 %v6466_v2  ;;  %6693 = vmatprep.subr.bf16.mxu1 %v6692_v5  ;;  %v6502_v2 = vunpack.c.l.s8.bf16 %v589_v63  ;;  %v6728_v5 = vunpack.c.h.s8.bf16 %v480_v55 }
  0xa8   : > { %6469 = vmatprep.subr.bf16.mxu0 %v6468_v4  ;;  %v6504_v4 = vunpack.c.h.s8.bf16 %v590_v54 }
  0xaa   : > { %6695 = vmatpush1.bf16.msra.mxu1 %v6694_v9  ;;  %v6730_v9 = vunpack.c.h.s8.bf16 %v479_v0 }
  0xab   : > { %6471 = vmatpush1.bf16.msra.mxu0 %v6470_v8  ;;  %6697 = vmatprep.subr.bf16.mxu1 %v6696_v11  ;;  %v6506_v8 = vunpack.c.h.s8.bf16 %v589_v63  ;;  %v6732_v11 = vunpack.c.l.s8.bf16 %v487_v7 }
  0xac   : > { %6473 = vmatprep.subr.bf16.mxu0 %v6472_v10  ;;  %v6508_v10 = vunpack.c.l.s8.bf16 %v597_v6 }
  0xae   : > { %6699 = vmatpush1.bf16.msra.mxu1 %v6698_v15  ;;  %v6734_v15 = vunpack.c.l.s8.bf16 %v486_v13 }
  0xaf   : > { %6475 = vmatpush1.bf16.msra.mxu0 %v6474_v14  ;;  %6701 = vmatprep.subr.bf16.mxu1 %v6700_v17  ;;  %v6510_v14 = vunpack.c.l.s8.bf16 %v596_v12  ;;  %v6736_v17 = vunpack.c.h.s8.bf16 %v487_v7 }
  0xb0   : > { %6477 = vmatprep.subr.bf16.mxu0 %v6476_v16  ;;  %v6512_v16 = vunpack.c.h.s8.bf16 %v597_v6 }
  0xb2   : > { %6703 = vmatpush1.bf16.msra.mxu1 %v6702_v21  ;;  %v6514_v21 = vunpack.c.h.s8.bf16 %v596_v12 }
  0xb3   : > { %6479 = vmatpush1.bf16.msra.mxu0 %v6478_v20  ;;  %6705 = vmatprep.subr.bf16.mxu1 %v6704_v23  ;;  %v8127_v20 = vld [vmem:[%s7970_s20 + $0x10] sm:$0x3f]  ;;  %v6516_v23 = vunpack.c.l.s8.bf16 %v604_v18 }
  0xb4   : > { %6481 = vmatprep.subr.bf16.mxu0 %v6480_v22  ;;  %v6738_v22 = vunpack.c.h.s8.bf16 %v486_v13 }
  0xb6   : > { %6707 = vmatpush1.bf16.msra.mxu1 %v6706_v27  ;;  %v8133_v27 = vrot.slane %v8127_v20, %v7998_v50 }
  0xb7   : > { %6483 = vmatpush1.bf16.msra.mxu0 %v6482_v26  ;;  %6709 = vmatprep.subr.bf16.mxu1 %v6708_v29  ;;  %v493_v26 = vld [vmem:[%s7975_s24 + $0x390] sm:$0xff] }
  0xb8   : > { %6485 = vmatprep.subr.bf16.mxu0 %v6484_v28  ;;  %v6518_v28 = vunpack.c.l.s8.bf16 %v603_v25  ;;  %v6742_v29 = vunpack.c.l.s8.bf16 %v493_v26  ;;  %v6746_v36 = vunpack.c.h.s8.bf16 %v493_v26 }
  0xba   : > { %6711 = vmatpush1.bf16.msra.mxu1 %v6710_v33  ;;  %v501_v33 = vld [vmem:[%s7975_s24 + $0x3d0] sm:$0xff] }
  0xbb   : > { %6487 = vmatpush1.bf16.msra.mxu0 %v6486_v32  ;;  %6713 = vmatprep.subr.bf16.mxu1 %v6712_v35  ;;  %v611_v32 = vld [vmem:[%s7975_s24 + $0x740] sm:$0xff]  ;;  %v6522_v35 = vunpack.c.h.s8.bf16 %v603_v25 }
  0xbc   : > { %6489 = vmatprep.subr.bf16.mxu0 %v6488_v34  ;;  %v8139_v34 = vcombine.high %v8133_v27, %v8133_v27  ;;  %v6524_v37 = vunpack.c.l.s8.bf16 %v611_v32  ;;  %v6528_v44 = vunpack.c.h.s8.bf16 %v611_v32 }
  0xbe   : > { %6715 = vmatpush1.bf16.msra.mxu1 %v6714_v41  ;;  %v610_v41 = vld [vmem:[%s7975_s24 + $0x738] sm:$0xff] }
  0xbf   : > { %6491 = vmatpush1.bf16.msra.mxu0 %v6490_v40  ;;  %6717 = vmatprep.subr.bf16.mxu1 %v6716_v42  ;;  %v6748_v40 = vunpack.c.l.s8.bf16 %v501_v33  ;;  %v6526_v42 = vunpack.c.l.s8.bf16 %v610_v41 }
  0xc0   : > { %6493 = vmatprep.subr.bf16.mxu0 %v6492_v46  ;;  %v500_v46 = vld [vmem:[%s7975_s24 + $0x3c8] sm:$0xff] }
  0xc1   : > { %v6750_v43 = vunpack.c.l.s8.bf16 %v500_v46  ;;  %v6754_v54 = vunpack.c.h.s8.bf16 %v500_v46 }
  0xc2   : > { %6719 = vmatpush1.bf16.msra.mxu1 %v6718_v48  ;;  %v618_v48 = vld [vmem:[%s7975_s24 + $0x778] sm:$0xff] }
  0xc3   : > { %6495 = vmatpush1.bf16.msra.mxu0 %v6494_v47  ;;  %6721 = vmatprep.subr.bf16.mxu1 %v6720_v53  ;;  %v6752_v47 = vunpack.c.h.s8.bf16 %v501_v33  ;;  %v6530_v53 = vunpack.c.h.s8.bf16 %v610_v41  ;;  %v6532_v55 = vunpack.c.l.s8.bf16 %v618_v48  ;;  %v6536_v0 = vunpack.c.h.s8.bf16 %v618_v48 }
  0xc4   : > { %6497 = vmatprep.subr.bf16.mxu0 %v6496_v49  ;;  %v508_v49 = vld [vmem:[%s7975_s24 + $0x408] sm:$0xff] }
  0xc6   : > { %6723 = vmatpush1.bf16.msra.mxu1 %v6722_v60  ;;  %v617_v60 = vld [vmem:[%s7975_s24 + $0x770] sm:$0xff] }
  0xc7   : > { %6499 = vmatpush1.bf16.msra.mxu0 %v6498_v59  ;;  %6725 = vmatprep.subr.bf16.mxu1 %v6724_v62  ;;  %v6756_v59 = vunpack.c.l.s8.bf16 %v508_v49  ;;  %v6534_v62 = vunpack.c.l.s8.bf16 %v617_v60 }
  0xc8   : > { %6501 = vmatprep.subr.bf16.mxu0 %v6500_v61  ;;  %v507_v61 = vld [vmem:[%s7975_s24 + $0x400] sm:$0xff] }
  0xc9   : > { %v6758_v63 = vunpack.c.l.s8.bf16 %v507_v61  ;;  %v6762_v6 = vunpack.c.h.s8.bf16 %v507_v61 }
  0xca   : > { %6727 = vmatpush1.bf16.msra.mxu1 %v6726_v3  ;;  %v625_v3 = vld [vmem:[%s7975_s24 + $0x7b0] sm:$0xff] }
  0xcb   : > { %6503 = vmatpush1.bf16.msra.mxu0 %v6502_v2  ;;  %6729 = vmatprep.subr.bf16.mxu1 %v6728_v5  ;;  %v6760_v2 = vunpack.c.h.s8.bf16 %v508_v49  ;;  %v6538_v5 = vunpack.c.h.s8.bf16 %v617_v60  ;;  %v6540_v7 = vunpack.c.l.s8.bf16 %v625_v3  ;;  %v6544_v13 = vunpack.c.h.s8.bf16 %v625_v3 }
  0xcc   : > { %6505 = vmatprep.subr.bf16.mxu0 %v6504_v4  ;;  %v515_v4 = vld [vmem:[%s7975_s24 + $0x440] sm:$0xff] }
  0xce   : > { %6731 = vmatpush1.bf16.msra.mxu1 %v6730_v9  ;;  %v624_v9 = vld [vmem:[%s7975_s24 + $0x7a8] sm:$0xff] }
  0xcf   : > { %6507 = vmatpush1.bf16.msra.mxu0 %v6506_v8  ;;  %6733 = vmatprep.subr.bf16.mxu1 %v6732_v11  ;;  %v6764_v8 = vunpack.c.l.s8.bf16 %v515_v4  ;;  %v6542_v11 = vunpack.c.l.s8.bf16 %v624_v9 }
  0xd0   : > { %6509 = vmatprep.subr.bf16.mxu0 %v6508_v10  ;;  %v514_v10 = vld [vmem:[%s7975_s24 + $0x438] sm:$0xff] }
  0xd1   : > { %v6766_v12 = vunpack.c.l.s8.bf16 %v514_v10  ;;  %v6770_v18 = vunpack.c.h.s8.bf16 %v514_v10 }
  0xd2   : > { %6735 = vmatpush1.bf16.msra.mxu1 %v6734_v15  ;;  %v632_v15 = vld [vmem:[%s7975_s24 + $0x7e8] sm:$0xff] }
  0xd3   : > { %6511 = vmatpush1.bf16.msra.mxu0 %v6510_v14  ;;  %6737 = vmatprep.subr.bf16.mxu1 %v6736_v17  ;;  %v6768_v14 = vunpack.c.h.s8.bf16 %v515_v4  ;;  %v6546_v17 = vunpack.c.h.s8.bf16 %v624_v9  ;;  %v6548_v19 = vunpack.c.l.s8.bf16 %v632_v15  ;;  %v6552_v26 = vunpack.c.h.s8.bf16 %v632_v15 }
  0xd4   : > { %6513 = vmatprep.subr.bf16.mxu0 %v6512_v16  ;;  %v522_v16 = vld [vmem:[%s7975_s24 + $0x478] sm:$0xff] }
  0xd6   : > { %6739 = vmatpush1.bf16.msra.mxu1 %v6738_v22  ;;  %v631_v22 = vld [vmem:[%s7975_s24 + $0x7e0] sm:$0xff] }
  0xd7   : > { %6515 = vmatpush1.bf16.msra.mxu0 %v6514_v21  ;;  %6741 = vmatprep.subr.bf16.mxu1 %v6740_v24  ;;  %v6772_v21 = vunpack.c.l.s8.bf16 %v522_v16  ;;  %v6550_v24 = vunpack.c.l.s8.bf16 %v631_v22 }
  0xd8   : > { %6517 = vmatprep.subr.bf16.mxu0 %v6516_v23  ;;  %v521_v23 = vld [vmem:[%s7975_s24 + $0x470] sm:$0xff] }
  0xd9   : > { %3782 = vmatmul.mubr.f32.vlgmr.msra.gmra.mrb[2].mxu1 %v8004_v52  ;;  %v6774_v25 = vunpack.c.l.s8.bf16 %v521_v23  ;;  %v6778_v32 = vunpack.c.h.s8.bf16 %v521_v23 }
  0xda   : > { %3498 = vmatmul.mubr.f32.vlgmr.msra.gmra.mrb[0].mxu0 %v8086_v38  ;;  %6743 = vmatpush1.bf16.msra.mxu1 %v6742_v29  ;;  %v639_v29 = vld [vmem:[%s7975_s24 + $0x820] sm:$0xff] }
  0xdb   : > { %6519 = vmatpush1.bf16.msra.mxu0 %v6518_v28  ;;  %6745 = vmatprep.subr.bf16.mxu1 %v6744_v31  ;;  %v6776_v28 = vunpack.c.h.s8.bf16 %v522_v16  ;;  %v6554_v31 = vunpack.c.h.s8.bf16 %v631_v22  ;;  %v6556_v33 = vunpack.c.l.s8.bf16 %v639_v29  ;;  %v6560_v46 = vunpack.c.h.s8.bf16 %v639_v29 }
  0xdc   : > { %6521 = vmatprep.subr.bf16.mxu0 %v6520_v30  ;;  %3568 = vmatprep.mubr.f32.mxu0 %v8139_v34  ;;  %v529_v30 = vld [vmem:[%s7975_s24 + $0x4b0] sm:$0xff] }
  0xdd   : > { %3852 = vmatprep.mubr.f32.mxu1 %v8047_v1 }
  0xde   : > { %6747 = vmatpush1.bf16.msra.mxu1 %v6746_v36  ;;  %v638_v36 = vld [vmem:[%s7975_s24 + $0x818] sm:$0xff] }
  0xdf   : > { %6523 = vmatpush1.bf16.msra.mxu0 %v6522_v35  ;;  %6749 = vmatprep.subr.bf16.mxu1 %v6748_v40  ;;  %v6780_v35 = vunpack.c.l.s8.bf16 %v529_v30  ;;  %v6558_v40 = vunpack.c.l.s8.bf16 %v638_v36 }
  0xe0   : > { %6525 = vmatprep.subr.bf16.mxu0 %v6524_v37  ;;  %v528_v37 = vld [vmem:[%s7975_s24 + $0x4a8] sm:$0xff] }
  0xe1   : > { %v6782_v41 = vunpack.c.l.s8.bf16 %v528_v37  ;;  %v6786_v48 = vunpack.c.h.s8.bf16 %v528_v37 }
  0xe2   : > { %6751 = vmatpush1.bf16.msra.mxu1 %v6750_v43  ;;  %v646_v43 = vld [vmem:[%s7975_s24 + $0x858] sm:$0xff] }
  0xe3   : > { %6527 = vmatpush1.bf16.msra.mxu0 %v6526_v42  ;;  %6753 = vmatprep.subr.bf16.mxu1 %v6752_v47  ;;  %v6784_v42 = vunpack.c.h.s8.bf16 %v529_v30  ;;  %v6562_v47 = vunpack.c.h.s8.bf16 %v638_v36  ;;  %v6564_v49 = vunpack.c.l.s8.bf16 %v646_v43  ;;  %v6568_v61 = vunpack.c.h.s8.bf16 %v646_v43 }
  0xe4   : > { %6529 = vmatprep.subr.bf16.mxu0 %v6528_v44  ;;  %v536_v44 = vld [vmem:[%s7975_s24 + $0x4e8] sm:$0xff] }
  0xe6   : > { %6755 = vmatpush1.bf16.msra.mxu1 %v6754_v54  ;;  %v645_v54 = vld [vmem:[%s7975_s24 + $0x850] sm:$0xff] }
  0xe7   : > { %6531 = vmatpush1.bf16.msra.mxu0 %v6530_v53  ;;  %6757 = vmatprep.subr.bf16.mxu1 %v6756_v59  ;;  %v6788_v53 = vunpack.c.l.s8.bf16 %v536_v44  ;;  %v6566_v59 = vunpack.c.l.s8.bf16 %v645_v54 }
  0xe8   : > { %6533 = vmatprep.subr.bf16.mxu0 %v6532_v55  ;;  %v535_v55 = vld [vmem:[%s7975_s24 + $0x4e0] sm:$0xff] }
  0xe9   : > { %v6790_v60 = vunpack.c.l.s8.bf16 %v535_v55  ;;  %v6794_v3 = vunpack.c.h.s8.bf16 %v535_v55 }
  0xea   : > { %6759 = vmatpush1.bf16.msra.mxu1 %v6758_v63  ;;  %v653_v63 = vld [vmem:[%s7975_s24 + $0x890] sm:$0xff] }
  0xeb   : > { %6535 = vmatpush1.bf16.msra.mxu0 %v6534_v62  ;;  %6761 = vmatprep.subr.bf16.mxu1 %v6760_v2  ;;  %v6792_v62 = vunpack.c.h.s8.bf16 %v536_v44  ;;  %v6570_v2 = vunpack.c.h.s8.bf16 %v645_v54  ;;  %v6572_v4 = vunpack.c.l.s8.bf16 %v653_v63  ;;  %v6576_v10 = vunpack.c.h.s8.bf16 %v653_v63 }
  0xec   : > { %6537 = vmatprep.subr.bf16.mxu0 %v6536_v0  ;;  %v543_v0 = vld [vmem:[%s7975_s24 + $0x520] sm:$0xff] }
  0xee   : > { %6763 = vmatpush1.bf16.msra.mxu1 %v6762_v6  ;;  %v652_v6 = vld [vmem:[%s7975_s24 + $0x888] sm:$0xff] }
  0xef   : > { %6539 = vmatpush1.bf16.msra.mxu0 %v6538_v5  ;;  %6765 = vmatprep.subr.bf16.mxu1 %v6764_v8  ;;  %v6796_v5 = vunpack.c.l.s8.bf16 %v543_v0  ;;  %v6574_v8 = vunpack.c.l.s8.bf16 %v652_v6 }
  0xf0   : > { %6541 = vmatprep.subr.bf16.mxu0 %v6540_v7  ;;  %v542_v7 = vld [vmem:[%s7975_s24 + $0x518] sm:$0xff] }
  0xf1   : > { %v6798_v9 = vunpack.c.l.s8.bf16 %v542_v7  ;;  %v6802_v15 = vunpack.c.h.s8.bf16 %v542_v7 }
  0xf2   : > { %6767 = vmatpush1.bf16.msra.mxu1 %v6766_v12  ;;  %v660_v12 = vld [vmem:[%s7975_s24 + $0x8c8] sm:$0xff] }
  0xf3   : > { %6543 = vmatpush1.bf16.msra.mxu0 %v6542_v11  ;;  %6769 = vmatprep.subr.bf16.mxu1 %v6768_v14  ;;  %v6800_v11 = vunpack.c.h.s8.bf16 %v543_v0  ;;  %v6578_v14 = vunpack.c.h.s8.bf16 %v652_v6  ;;  %v6580_v16 = vunpack.c.l.s8.bf16 %v660_v12  ;;  %v6584_v23 = vunpack.c.h.s8.bf16 %v660_v12  ;;  %v578_v12 = vld [vmem:[%s7975_s24 + $0x638] sm:$0xff] }
  0xf4   : > { %6545 = vmatprep.subr.bf16.mxu0 %v6544_v13  ;;  %v550_v13 = vld [vmem:[%s7975_s24 + $0x558] sm:$0xff] }
  0xf6   : > { %6771 = vmatpush1.bf16.msra.mxu1 %v6770_v18  ;;  %v659_v18 = vld [vmem:[%s7975_s24 + $0x8c0] sm:$0xff] }
  0xf7   : > { %6547 = vmatpush1.bf16.msra.mxu0 %v6546_v17  ;;  %6773 = vmatprep.subr.bf16.mxu1 %v6772_v21  ;;  %v6804_v17 = vunpack.c.l.s8.bf16 %v550_v13  ;;  %v6582_v21 = vunpack.c.l.s8.bf16 %v659_v18 }
  0xf8   : > { %6549 = vmatprep.subr.bf16.mxu0 %v6548_v19  ;;  %v549_v19 = vld [vmem:[%s7975_s24 + $0x550] sm:$0xff] }
  0xf9   : > { %v6806_v22 = vunpack.c.l.s8.bf16 %v549_v19  ;;  %v6810_v29 = vunpack.c.h.s8.bf16 %v549_v19  ;;  %v577_v19 = vld [vmem:[%s7975_s24 + $0x630] sm:$0xff] }
  0xfa   : > { %6775 = vmatpush1.bf16.msra.mxu1 %v6774_v25  ;;  %v667_v25 = vld [vmem:[%s7975_s24 + $0x900] sm:$0xff] }
  0xfb   : > { %6551 = vmatpush1.bf16.msra.mxu0 %v6550_v24  ;;  %6777 = vmatprep.subr.bf16.mxu1 %v6776_v28  ;;  %v6808_v24 = vunpack.c.h.s8.bf16 %v550_v13  ;;  %v6586_v28 = vunpack.c.h.s8.bf16 %v659_v18  ;;  %v6588_v30 = vunpack.c.l.s8.bf16 %v667_v25  ;;  %v384_v13 = vld [vmem:[%s7975_s24 + $0x28] sm:$0xff] }
  0xfc   : > { %6553 = vmatprep.subr.bf16.mxu0 %v6552_v26  ;;  %v557_v26 = vld [vmem:[%s7975_s24 + $0x590] sm:$0xff]  ;;  %v6964_v18 = vunpack.c.l.s8.bf16 %v384_v13 }
  0xfe   : > { %6779 = vmatpush1.bf16.msra.mxu1 %v6778_v32  ;;  %v666_v32 = vld [vmem:[%s7975_s24 + $0x8f8] sm:$0xff] }
  0xff   : > { %6555 = vmatpush1.bf16.msra.mxu0 %v6554_v31  ;;  %6781 = vmatprep.subr.bf16.mxu1 %v6780_v35  ;;  %v6812_v31 = vunpack.c.l.s8.bf16 %v557_v26  ;;  %v7893_v35 = vmov 0.0   ;;  %v6590_v36 = vunpack.c.l.s8.bf16 %v666_v32  ;;  %v6594_v43 = vunpack.c.h.s8.bf16 %v666_v32 }
 0x100   : > { %6557 = vmatprep.subr.bf16.mxu0 %v6556_v33  ;;  %v556_v33 = vld [vmem:[%s7975_s24 + $0x588] sm:$0xff] }
 0x101   : > { %v6814_v37 = vunpack.c.l.s8.bf16 %v556_v33  ;;  %v6818_v44 = vunpack.c.h.s8.bf16 %v556_v33  ;;  %v584_v33 = vld [vmem:[%s7975_s24 + $0x668] sm:$0xff] }
 0x102   : > { %6783 = vmatpush1.bf16.msra.mxu1 %v6782_v41  ;;  %v6816_v41 = vunpack.c.h.s8.bf16 %v557_v26  ;;  %v585_v26 = vld [vmem:[%s7975_s24 + $0x670] sm:$0xff] }
 0x103   : > { %6559 = vmatpush1.bf16.msra.mxu0 %v6558_v40  ;;  %6785 = vmatprep.subr.bf16.mxu1 %v6784_v42  ;;  %v6592_v40 = vunpack.c.h.s8.bf16 %v667_v25  ;;  %v564_v42 = vld [vmem:[%s7975_s24 + $0x5c8] sm:$0xff]  ;;  %v6968_v25 = vunpack.c.h.s8.bf16 %v384_v13  ;;  %v606_v13 = vld [vmem:[%s7975_s24 + $0x718] sm:$0xff] }
 0x104   : > { %6561 = vmatprep.subr.bf16.mxu0 %v6560_v46  ;;  %v674_v46 = vld [vmem:[%s7975_s24 + $0x938] sm:$0xff] }
 0x106   : > { %6787 = vmatpush1.bf16.msra.mxu1 %v6786_v48  ;;  %v6820_v48 = vunpack.c.l.s8.bf16 %v564_v42 }
 0x107   : > { %6563 = vmatpush1.bf16.msra.mxu0 %v6562_v47  ;;  %6789 = vmatprep.subr.bf16.mxu1 %v6788_v53  ;;  %v6596_v47 = vunpack.c.l.s8.bf16 %v674_v46  ;;  %v563_v53 = vld [vmem:[%s7975_s24 + $0x5c0] sm:$0xff] }
 0x108   : > { %6565 = vmatprep.subr.bf16.mxu0 %v6564_v49  ;;  %v673_v49 = vld [vmem:[%s7975_s24 + $0x930] sm:$0xff]  ;;  %v6822_v55 = vunpack.c.l.s8.bf16 %v563_v53  ;;  %v6826_v0 = vunpack.c.h.s8.bf16 %v563_v53  ;;  %v591_v53 = vld [vmem:[%s7975_s24 + $0x6a0] sm:$0xff] }
 0x109   : > { %v6598_v54 = vunpack.c.l.s8.bf16 %v673_v49  ;;  %v6602_v63 = vunpack.c.h.s8.bf16 %v673_v49 }
 0x10a   : > { %6791 = vmatpush1.bf16.msra.mxu1 %v6790_v60  ;;  %v6824_v60 = vunpack.c.h.s8.bf16 %v564_v42  ;;  %v592_v42 = vld [vmem:[%s7975_s24 + $0x6a8] sm:$0xff] }
 0x10b   : > { %6567 = vmatpush1.bf16.msra.mxu0 %v6566_v59  ;;  %6793 = vmatprep.subr.bf16.mxu1 %v6792_v62  ;;  %v6600_v59 = vunpack.c.h.s8.bf16 %v674_v46  ;;  %v571_v62 = vld [vmem:[%s7975_s24 + $0x600] sm:$0xff] }
 0x10c   : > { %6569 = vmatprep.subr.bf16.mxu0 %v6568_v61  ;;  %v681_v61 = vld [vmem:[%s7975_s24 + $0x970] sm:$0xff] }
 0x10e   : > { %6795 = vmatpush1.bf16.msra.mxu1 %v6794_v3  ;;  %v6828_v3 = vunpack.c.l.s8.bf16 %v571_v62 }
 0x10f   : > { %6571 = vmatpush1.bf16.msra.mxu0 %v6570_v2  ;;  %6797 = vmatprep.subr.bf16.mxu1 %v6796_v5  ;;  %v6604_v2 = vunpack.c.l.s8.bf16 %v681_v61  ;;  %v570_v5 = vld [vmem:[%s7975_s24 + $0x5f8] sm:$0xff] }
 0x110   : > { %6573 = vmatprep.subr.bf16.mxu0 %v6572_v4  ;;  %v680_v4 = vld [vmem:[%s7975_s24 + $0x968] sm:$0xff] }
 0x112   : > { %6799 = vmatpush1.bf16.msra.mxu1 %v6798_v9  ;;  %v6830_v9 = vunpack.c.l.s8.bf16 %v570_v5 }
 0x113   : > { %6575 = vmatpush1.bf16.msra.mxu0 %v6574_v8  ;;  %6801 = vmatprep.subr.bf16.mxu1 %v6800_v11  ;;  %v6606_v8 = vunpack.c.l.s8.bf16 %v680_v4  ;;  %v6832_v11 = vunpack.c.h.s8.bf16 %v571_v62  ;;  %v599_v62 = vld [vmem:[%s7975_s24 + $0x6e0] sm:$0xff] }
 0x114   : > { %6577 = vmatprep.subr.bf16.mxu0 %v6576_v10  ;;  %v6608_v10 = vunpack.c.h.s8.bf16 %v681_v61 }
 0x116   : > { %6803 = vmatpush1.bf16.msra.mxu1 %v6802_v15  ;;  %v6610_v15 = vunpack.c.h.s8.bf16 %v680_v4 }
 0x117   : > { %6579 = vmatpush1.bf16.msra.mxu0 %v6578_v14  ;;  %6805 = vmatprep.subr.bf16.mxu1 %v6804_v17  ;;  %v3193_v14 = vcombine.high %v8127_v20, %v8127_v20  ;;  %v6836_v17 = vunpack.c.l.s8.bf16 %v578_v12  ;;  %v6840_v20 = vunpack.c.h.s8.bf16 %v578_v12 }
 0x118   : > { %6581 = vmatprep.subr.bf16.mxu0 %v6580_v16  ;;  %v6834_v16 = vunpack.c.h.s8.bf16 %v570_v5  ;;  %v598_v5 = vld [vmem:[%s7975_s24 + $0x6d8] sm:$0xff] }
 0x119   : > { %3853 = vmatmul.mubr.f32.vlgmr.msra.gmra.mrb[2].mxu1 %v8041_v56 }
 0x11a   : > { %3569 = vmatmul.mubr.f32.vlgmr.msra.gmra.mrb[0].mxu0 %v8133_v27  ;;  %6807 = vmatpush1.bf16.msra.mxu1 %v6806_v22  ;;  %v8202_v22 = vrot.slane %v3193_v14, %v7998_v50  ;;  %v412_v14 = vld [vmem:[%s7975_s24 + $0x108] sm:$0xff] }
 0x11b   : > { %6583 = vmatpush1.bf16.msra.mxu0 %v6582_v21  ;;  %6809 = vmatprep.subr.bf16.mxu1 %v6808_v24  ;;  %v383_v21 = vld [vmem:[%s7975_s24 + $0x20] sm:$0xff] }
 0x11c   : > { %6585 = vmatprep.subr.bf16.mxu0 %v6584_v23  ;;  %3639 = vmatprep.mubr.f32.mxu0 %v7893_v35  ;;  %v6838_v23 = vunpack.c.l.s8.bf16 %v577_v19  ;;  %v6966_v24 = vunpack.c.l.s8.bf16 %v383_v21 }
 0x11d   : > { %3923 = vmatprep.mubr.f32.mxu1 %v8092_v45 }
 0x11e   : > { %6811 = vmatpush1.bf16.msra.mxu1 %v6810_v29  ;;  %v6842_v29 = vunpack.c.h.s8.bf16 %v577_v19  ;;  %v605_v19 = vld [vmem:[%s7975_s24 + $0x710] sm:$0xff] }
 0x11f   : > { %6587 = vmatpush1.bf16.msra.mxu0 %v6586_v28  ;;  %6813 = vmatprep.subr.bf16.mxu1 %v6812_v31  ;;  %v391_v28 = vld [vmem:[%s7975_s24 + $0x60] sm:$0xff]  ;;  %v6844_v31 = vunpack.c.l.s8.bf16 %v585_v26 }
 0x120   : > { %6589 = vmatprep.subr.bf16.mxu0 %v6588_v30  ;;  %v6970_v30 = vunpack.c.h.s8.bf16 %v383_v21  ;;  %v6972_v32 = vunpack.c.l.s8.bf16 %v391_v28  ;;  %v6976_v46 = vunpack.c.h.s8.bf16 %v391_v28  ;;  %v411_v21 = vld [vmem:[%s7975_s24 + $0x100] sm:$0xff] }
 0x121   : > { %v419_v28 = vld [vmem:[%s7975_s24 + $0x140] sm:$0xff] }
 0x122   : > { %6815 = vmatpush1.bf16.msra.mxu1 %v6814_v37  ;;  %v6846_v37 = vunpack.c.l.s8.bf16 %v584_v33 }
 0x123   : > { %6591 = vmatpush1.bf16.msra.mxu0 %v6590_v36  ;;  %6817 = vmatprep.subr.bf16.mxu1 %v6816_v41  ;;  %v390_v36 = vld [vmem:[%s7975_s24 + $0x58] sm:$0xff]  ;;  %v6848_v41 = vunpack.c.h.s8.bf16 %v585_v26  ;;  %v613_v26 = vld [vmem:[%s7975_s24 + $0x750] sm:$0xff] }
 0x124   : > { %6593 = vmatprep.subr.bf16.mxu0 %v6592_v40  ;;  %v6974_v40 = vunpack.c.l.s8.bf16 %v390_v36 }
 0x126   : > { %6819 = vmatpush1.bf16.msra.mxu1 %v6818_v44  ;;  %v6850_v44 = vunpack.c.h.s8.bf16 %v584_v33  ;;  %v612_v33 = vld [vmem:[%s7975_s24 + $0x748] sm:$0xff] }
 0x127   : > { %6595 = vmatpush1.bf16.msra.mxu0 %v6594_v43  ;;  %6821 = vmatprep.subr.bf16.mxu1 %v6820_v48  ;;  %v398_v43 = vld [vmem:[%s7975_s24 + $0x98] sm:$0xff]  ;;  %v6852_v48 = vunpack.c.l.s8.bf16 %v592_v42 }
 0x128   : > { %6597 = vmatprep.subr.bf16.mxu0 %v6596_v47  ;;  %v6978_v47 = vunpack.c.h.s8.bf16 %v390_v36  ;;  %v6980_v49 = vunpack.c.l.s8.bf16 %v398_v43  ;;  %v6984_v61 = vunpack.c.h.s8.bf16 %v398_v43  ;;  %v418_v36 = vld [vmem:[%s7975_s24 + $0x138] sm:$0xff] }
 0x129   : > { %v426_v43 = vld [vmem:[%s7975_s24 + $0x178] sm:$0xff] }
 0x12a   : > { %6823 = vmatpush1.bf16.msra.mxu1 %v6822_v55  ;;  %v6854_v55 = vunpack.c.l.s8.bf16 %v591_v53 }
 0x12b   : > { %6599 = vmatpush1.bf16.msra.mxu0 %v6598_v54  ;;  %6825 = vmatprep.subr.bf16.mxu1 %v6824_v60  ;;  %v397_v54 = vld [vmem:[%s7975_s24 + $0x90] sm:$0xff]  ;;  %v6856_v60 = vunpack.c.h.s8.bf16 %v592_v42  ;;  %v620_v42 = vld [vmem:[%s7975_s24 + $0x788] sm:$0xff] }
 0x12c   : > { %6601 = vmatprep.subr.bf16.mxu0 %v6600_v59  ;;  %v8191_v6 = vpop.f32.mrb[0].mxu1  ;;  %v6982_v59 = vunpack.c.l.s8.bf16 %v397_v54 }
 0x12d   : > { %v8193_v7 = vpop.f32.mrb[1].mxu1 }
 0x12e   : > { %6827 = vmatpush1.bf16.msra.mxu1 %v6826_v0  ;;  %v6858_v0 = vunpack.c.h.s8.bf16 %v591_v53  ;;  %v619_v53 = vld [vmem:[%s7975_s24 + $0x780] sm:$0xff] }
 0x12f   : > { %6603 = vmatpush1.bf16.msra.mxu0 %v6602_v63  ;;  %6829 = vmatprep.subr.bf16.mxu1 %v6828_v3  ;;  %v405_v63 = vld [vmem:[%s7975_s24 + $0xd0] sm:$0xff]  ;;  %v6860_v3 = vunpack.c.l.s8.bf16 %v599_v62 }
 0x130   : > { %6605 = vmatprep.subr.bf16.mxu0 %v6604_v2  ;;  %v6986_v2 = vunpack.c.h.s8.bf16 %v397_v54  ;;  %v6988_v4 = vunpack.c.l.s8.bf16 %v405_v63  ;;  %v6992_v12 = vunpack.c.h.s8.bf16 %v405_v63  ;;  %v425_v54 = vld [vmem:[%s7975_s24 + $0x170] sm:$0xff] }
 0x131   : > { %v433_v63 = vld [vmem:[%s7975_s24 + $0x1b0] sm:$0xff] }
 0x132   : > { %6831 = vmatpush1.bf16.msra.mxu1 %v6830_v9  ;;  %v6862_v9 = vunpack.c.l.s8.bf16 %v598_v5 }
 0x133   : > { %6607 = vmatpush1.bf16.msra.mxu0 %v6606_v8  ;;  %6833 = vmatprep.subr.bf16.mxu1 %v6832_v11  ;;  %v404_v8 = vld [vmem:[%s7975_s24 + $0xc8] sm:$0xff]  ;;  %v6864_v11 = vunpack.c.h.s8.bf16 %v599_v62  ;;  %v627_v62 = vld [vmem:[%s7975_s24 + $0x7c0] sm:$0xff] }
 0x134   : > { %6609 = vmatprep.subr.bf16.mxu0 %v6608_v10  ;;  %v6990_v10 = vunpack.c.l.s8.bf16 %v404_v8 }
 0x136   : > { %6835 = vmatpush1.bf16.msra.mxu1 %v6834_v16  ;;  %v6994_v16 = vunpack.c.h.s8.bf16 %v404_v8  ;;  %v432_v8 = vld [vmem:[%s7975_s24 + $0x1a8] sm:$0xff] }
 0x137   : > { %6611 = vmatpush1.bf16.msra.mxu0 %v6610_v15  ;;  %6837 = vmatprep.subr.bf16.mxu1 %v6836_v17  ;;  %v6866_v15 = vunpack.c.h.s8.bf16 %v598_v5  ;;  %v6868_v17 = vunpack.c.l.s8.bf16 %v606_v13  ;;  %v626_v5 = vld [vmem:[%s7975_s24 + $0x7b8] sm:$0xff] }
 0x138   : > { %6965 = vmatprep.subr.bf16.mxu0 %v6964_v18  ;;  %v6996_v18 = vunpack.c.l.s8.bf16 %v412_v14 }
 0x13a   : > { %3640 = vmatmul.mubr.f32.vlgmr.msra.gmra.mrb[0].mxu0 %v8202_v22  ;;  %6839 = vmatpush1.bf16.msra.mxu1 %v6838_v23  ;;  %v6870_v23 = vunpack.c.l.s8.bf16 %v605_v19 }
 0x13b   : > { %6967 = vmatpush1.bf16.msra.mxu0 %v6966_v24  ;;  %6841 = vmatprep.subr.bf16.mxu1 %v6840_v20  ;;  %v6998_v24 = vunpack.c.l.s8.bf16 %v411_v21  ;;  %v6872_v20 = vunpack.c.h.s8.bf16 %v606_v13  ;;  %v634_v13 = vld [vmem:[%s7975_s24 + $0x7f8] sm:$0xff] }
 0x13c   : > { %6969 = vmatprep.subr.bf16.mxu0 %v6968_v25  ;;  %4136 = vmatprep.mubr.f32.mxu0 %v8008_v57  ;;  %v7000_v25 = vunpack.c.h.s8.bf16 %v412_v14  ;;  %v440_v14 = vld [vmem:[%s7975_s24 + $0x1e8] sm:$0xff] }
 0x13e   : > { %6843 = vmatpush1.bf16.msra.mxu1 %v6842_v29  ;;  %v6874_v29 = vunpack.c.h.s8.bf16 %v605_v19  ;;  %v633_v19 = vld [vmem:[%s7975_s24 + $0x7f0] sm:$0xff] }
 0x13f   : > { %6971 = vmatpush1.bf16.msra.mxu0 %v6970_v30  ;;  %6845 = vmatprep.subr.bf16.mxu1 %v6844_v31  ;;  %v7002_v30 = vunpack.c.h.s8.bf16 %v411_v21  ;;  %v6876_v31 = vunpack.c.l.s8.bf16 %v613_v26  ;;  %v439_v21 = vld [vmem:[%s7975_s24 + $0x1e0] sm:$0xff] }
 0x140   : > { %6973 = vmatprep.subr.bf16.mxu0 %v6972_v32  ;;  %v7004_v32 = vunpack.c.l.s8.bf16 %v419_v28 }
 0x142   : > { %6847 = vmatpush1.bf16.msra.mxu1 %v6846_v37  ;;  %v6878_v37 = vunpack.c.l.s8.bf16 %v612_v33 }
 0x143   : > { %6975 = vmatpush1.bf16.msra.mxu0 %v6974_v40  ;;  %6849 = vmatprep.subr.bf16.mxu1 %v6848_v41  ;;  %v7006_v40 = vunpack.c.l.s8.bf16 %v418_v36  ;;  %v6880_v41 = vunpack.c.h.s8.bf16 %v613_v26  ;;  %v641_v26 = vld [vmem:[%s7975_s24 + $0x830] sm:$0xff] }
 0x144   : > { %6977 = vmatprep.subr.bf16.mxu0 %v6976_v46  ;;  %v7008_v46 = vunpack.c.h.s8.bf16 %v419_v28  ;;  %v447_v28 = vld [vmem:[%s7975_s24 + $0x220] sm:$0xff] }
 0x146   : > { %6851 = vmatpush1.bf16.msra.mxu1 %v6850_v44  ;;  %v6882_v44 = vunpack.c.h.s8.bf16 %v612_v33  ;;  %v640_v33 = vld [vmem:[%s7975_s24 + $0x828] sm:$0xff] }
 0x147   : > { %6979 = vmatpush1.bf16.msra.mxu0 %v6978_v47  ;;  %6853 = vmatprep.subr.bf16.mxu1 %v6852_v48  ;;  %v7010_v47 = vunpack.c.h.s8.bf16 %v418_v36  ;;  %v6884_v48 = vunpack.c.l.s8.bf16 %v620_v42  ;;  %v446_v36 = vld [vmem:[%s7975_s24 + $0x218] sm:$0xff] }
 0x148   : > { %6981 = vmatprep.subr.bf16.mxu0 %v6980_v49  ;;  %v7012_v49 = vunpack.c.l.s8.bf16 %v426_v43 }
 0x14a   : > { %6855 = vmatpush1.bf16.msra.mxu1 %v6854_v55  ;;  %v6886_v55 = vunpack.c.l.s8.bf16 %v619_v53 }
 0x14b   : > { %6983 = vmatpush1.bf16.msra.mxu0 %v6982_v59  ;;  %6857 = vmatprep.subr.bf16.mxu1 %v6856_v60  ;;  %v7014_v59 = vunpack.c.l.s8.bf16 %v425_v54  ;;  %v6888_v60 = vunpack.c.h.s8.bf16 %v620_v42  ;;  %v648_v42 = vld [vmem:[%s7975_s24 + $0x868] sm:$0xff] }
 0x14c   : > { %6985 = vmatprep.subr.bf16.mxu0 %v6984_v61  ;;  %v7016_v61 = vunpack.c.h.s8.bf16 %v426_v43  ;;  %v454_v43 = vld [vmem:[%s7975_s24 + $0x258] sm:$0xff] }
 0x14e   : > { %6859 = vmatpush1.bf16.msra.mxu1 %v6858_v0  ;;  %v6890_v0 = vunpack.c.h.s8.bf16 %v619_v53  ;;  %v647_v53 = vld [vmem:[%s7975_s24 + $0x860] sm:$0xff] }
 0x14f   : > { %6987 = vmatpush1.bf16.msra.mxu0 %v6986_v2  ;;  %6861 = vmatprep.subr.bf16.mxu1 %v6860_v3  ;;  %v7018_v2 = vunpack.c.h.s8.bf16 %v425_v54  ;;  %v6892_v3 = vunpack.c.l.s8.bf16 %v627_v62  ;;  %v453_v54 = vld [vmem:[%s7975_s24 + $0x250] sm:$0xff] }
 0x150   : > { %6989 = vmatprep.subr.bf16.mxu0 %v6988_v4  ;;  %v7020_v4 = vunpack.c.l.s8.bf16 %v433_v63 }
 0x152   : > { %6863 = vmatpush1.bf16.msra.mxu1 %v6862_v9  ;;  %v6894_v9 = vunpack.c.l.s8.bf16 %v626_v5 }
 0x153   : > { %6991 = vmatpush1.bf16.msra.mxu0 %v6990_v10  ;;  %6865 = vmatprep.subr.bf16.mxu1 %v6864_v11  ;;  %v7022_v10 = vunpack.c.l.s8.bf16 %v432_v8  ;;  %v6896_v11 = vunpack.c.h.s8.bf16 %v627_v62  ;;  %v655_v62 = vld [vmem:[%s7975_s24 + $0x8a0] sm:$0xff] }
 0x154   : > { %6993 = vmatprep.subr.bf16.mxu0 %v6992_v12  ;;  %v7024_v12 = vunpack.c.h.s8.bf16 %v433_v63  ;;  %v461_v63 = vld [vmem:[%s7975_s24 + $0x290] sm:$0xff] }
 0x156   : > { %6867 = vmatpush1.bf16.msra.mxu1 %v6866_v15  ;;  %v6898_v15 = vunpack.c.h.s8.bf16 %v626_v5  ;;  %v654_v5 = vld [vmem:[%s7975_s24 + $0x898] sm:$0xff] }
 0x157   : > { %6995 = vmatpush1.bf16.msra.mxu0 %v6994_v16  ;;  %6869 = vmatprep.subr.bf16.mxu1 %v6868_v17  ;;  %v7026_v16 = vunpack.c.h.s8.bf16 %v432_v8  ;;  %v6900_v17 = vunpack.c.l.s8.bf16 %v634_v13  ;;  %v460_v8 = vld [vmem:[%s7975_s24 + $0x288] sm:$0xff] }
 0x158   : > { %6997 = vmatprep.subr.bf16.mxu0 %v6996_v18  ;;  %v7028_v18 = vunpack.c.l.s8.bf16 %v440_v14 }
 0x159   : > { %3924 = vmatmul.mubr.f32.vlgmr.msra.gmra.mrb[2].mxu1 %v8086_v38 }
 0x15a   : > { %6871 = vmatpush1.bf16.msra.mxu1 %v6870_v23  ;;  %3994 = vmatprep.mubr.f32.mxu1 %v8139_v34  ;;  %v6902_v23 = vunpack.c.l.s8.bf16 %v633_v19 }
 0x15b   : > { %6999 = vmatpush1.bf16.msra.mxu0 %v6998_v24  ;;  %6873 = vmatprep.subr.bf16.mxu1 %v6872_v20  ;;  %v7030_v24 = vunpack.c.l.s8.bf16 %v439_v21  ;;  %v6904_v20 = vunpack.c.h.s8.bf16 %v634_v13  ;;  %v662_v13 = vld [vmem:[%s7975_s24 + $0x8d8] sm:$0xff] }
 0x15c   : > { %7001 = vmatprep.subr.bf16.mxu0 %v7000_v25  ;;  %v7032_v25 = vunpack.c.h.s8.bf16 %v440_v14  ;;  %v468_v14 = vld [vmem:[%s7975_s24 + $0x2c8] sm:$0xff] }
 0x15e   : > { %6875 = vmatpush1.bf16.msra.mxu1 %v6874_v29  ;;  %v6906_v29 = vunpack.c.h.s8.bf16 %v633_v19  ;;  %v661_v19 = vld [vmem:[%s7975_s24 + $0x8d0] sm:$0xff] }
 0x15f   : > { %7003 = vmatpush1.bf16.msra.mxu0 %v7002_v30  ;;  %6877 = vmatprep.subr.bf16.mxu1 %v6876_v31  ;;  %v7034_v30 = vunpack.c.h.s8.bf16 %v439_v21  ;;  %v6908_v31 = vunpack.c.l.s8.bf16 %v641_v26  ;;  %v467_v21 = vld [vmem:[%s7975_s24 + $0x2c0] sm:$0xff] }
 0x160   : > { %7005 = vmatprep.subr.bf16.mxu0 %v7004_v32  ;;  %v7036_v32 = vunpack.c.l.s8.bf16 %v447_v28 }
 0x162   : > { %6879 = vmatpush1.bf16.msra.mxu1 %v6878_v37  ;;  %v6910_v37 = vunpack.c.l.s8.bf16 %v640_v33 }
 0x163   : > { %7007 = vmatpush1.bf16.msra.mxu0 %v7006_v40  ;;  %6881 = vmatprep.subr.bf16.mxu1 %v6880_v41  ;;  %v7038_v40 = vunpack.c.l.s8.bf16 %v446_v36  ;;  %v6912_v41 = vunpack.c.h.s8.bf16 %v641_v26  ;;  %v669_v26 = vld [vmem:[%s7975_s24 + $0x910] sm:$0xff] }
 0x164   : > { %7009 = vmatprep.subr.bf16.mxu0 %v7008_v46  ;;  %v7040_v46 = vunpack.c.h.s8.bf16 %v447_v28  ;;  %v475_v28 = vld [vmem:[%s7975_s24 + $0x300] sm:$0xff] }
 0x166   : > { %6883 = vmatpush1.bf16.msra.mxu1 %v6882_v44  ;;  %v6914_v44 = vunpack.c.h.s8.bf16 %v640_v33  ;;  %v668_v33 = vld [vmem:[%s7975_s24 + $0x908] sm:$0xff] }
 0x167   : > { %7011 = vmatpush1.bf16.msra.mxu0 %v7010_v47  ;;  %6885 = vmatprep.subr.bf16.mxu1 %v6884_v48  ;;  %v7042_v47 = vunpack.c.h.s8.bf16 %v446_v36  ;;  %v6916_v48 = vunpack.c.l.s8.bf16 %v648_v42  ;;  %v474_v36 = vld [vmem:[%s7975_s24 + $0x2f8] sm:$0xff] }
 0x168   : > { %7013 = vmatprep.subr.bf16.mxu0 %v7012_v49  ;;  %v7044_v49 = vunpack.c.l.s8.bf16 %v454_v43 }
 0x16a   : > { %6887 = vmatpush1.bf16.msra.mxu1 %v6886_v55  ;;  %v6918_v55 = vunpack.c.l.s8.bf16 %v647_v53 }
 0x16b   : > { %7015 = vmatpush1.bf16.msra.mxu0 %v7014_v59  ;;  %6889 = vmatprep.subr.bf16.mxu1 %v6888_v60  ;;  %v7046_v59 = vunpack.c.l.s8.bf16 %v453_v54  ;;  %v6920_v60 = vunpack.c.h.s8.bf16 %v648_v42  ;;  %v676_v42 = vld [vmem:[%s7975_s24 + $0x948] sm:$0xff] }
 0x16c   : > { %7017 = vmatprep.subr.bf16.mxu0 %v7016_v61  ;;  %v7048_v61 = vunpack.c.h.s8.bf16 %v454_v43  ;;  %v482_v43 = vld [vmem:[%s7975_s24 + $0x338] sm:$0xff] }
 0x16e   : > { %6891 = vmatpush1.bf16.msra.mxu1 %v6890_v0  ;;  %v6922_v0 = vunpack.c.h.s8.bf16 %v647_v53  ;;  %v675_v53 = vld [vmem:[%s7975_s24 + $0x940] sm:$0xff] }
 0x16f   : > { %7019 = vmatpush1.bf16.msra.mxu0 %v7018_v2  ;;  %6893 = vmatprep.subr.bf16.mxu1 %v6892_v3  ;;  %v7050_v2 = vunpack.c.h.s8.bf16 %v453_v54  ;;  %v6924_v3 = vunpack.c.l.s8.bf16 %v655_v62  ;;  %v481_v54 = vld [vmem:[%s7975_s24 + $0x330] sm:$0xff] }
 0x170   : > { %7021 = vmatprep.subr.bf16.mxu0 %v7020_v4  ;;  %v7052_v4 = vunpack.c.l.s8.bf16 %v461_v63 }
 0x172   : > { %6895 = vmatpush1.bf16.msra.mxu1 %v6894_v9  ;;  %v6926_v9 = vunpack.c.l.s8.bf16 %v654_v5 }
 0x173   : > { %7023 = vmatpush1.bf16.msra.mxu0 %v7022_v10  ;;  %6897 = vmatprep.subr.bf16.mxu1 %v6896_v11  ;;  %v7054_v10 = vunpack.c.l.s8.bf16 %v460_v8  ;;  %v6928_v11 = vunpack.c.h.s8.bf16 %v655_v62  ;;  %v683_v62 = vld [vmem:[%s7975_s24 + $0x980] sm:$0xff] }
 0x174   : > { %7025 = vmatprep.subr.bf16.mxu0 %v7024_v12  ;;  %v7056_v12 = vunpack.c.h.s8.bf16 %v461_v63  ;;  %v489_v63 = vld [vmem:[%s7975_s24 + $0x370] sm:$0xff] }
 0x176   : > { %6899 = vmatpush1.bf16.msra.mxu1 %v6898_v15  ;;  %v6930_v15 = vunpack.c.h.s8.bf16 %v654_v5  ;;  %v682_v5 = vld [vmem:[%s7975_s24 + $0x978] sm:$0xff] }
 0x177   : > { %7027 = vmatpush1.bf16.msra.mxu0 %v7026_v16  ;;  %6901 = vmatprep.subr.bf16.mxu1 %v6900_v17  ;;  %v7058_v16 = vunpack.c.h.s8.bf16 %v460_v8  ;;  %v6932_v17 = vunpack.c.l.s8.bf16 %v662_v13  ;;  %v488_v8 = vld [vmem:[%s7975_s24 + $0x368] sm:$0xff] }
 0x178   : > { %7029 = vmatprep.subr.bf16.mxu0 %v7028_v18  ;;  %v7060_v18 = vunpack.c.l.s8.bf16 %v468_v14 }
 0x17a   : > { %4137 = vmatmul.mubr.f32.vlgmr.msra.gmra.mrb[2].mxu0 %v8001_v51  ;;  %6903 = vmatpush1.bf16.msra.mxu1 %v6902_v23  ;;  %v6934_v23 = vunpack.c.l.s8.bf16 %v661_v19 }
 0x17b   : > { %7031 = vmatpush1.bf16.msra.mxu0 %v7030_v24  ;;  %6905 = vmatprep.subr.bf16.mxu1 %v6904_v20  ;;  %v7062_v24 = vunpack.c.l.s8.bf16 %v467_v21  ;;  %v6936_v20 = vunpack.c.h.s8.bf16 %v662_v13  ;;  %v496_v13 = vld [vmem:[%s7975_s24 + $0x3a8] sm:$0xff] }
 0x17c   : > { %7033 = vmatprep.subr.bf16.mxu0 %v7032_v25  ;;  %4207 = vmatprep.mubr.f32.mxu0 %v8012_v58  ;;  %v7064_v25 = vunpack.c.h.s8.bf16 %v468_v14  ;;  %v413_v14 = vld [vmem:[%s7975_s24 + $0x110] sm:$0xff] }
 0x17e   : > { %6907 = vmatpush1.bf16.msra.mxu1 %v6906_v29  ;;  %v6938_v29 = vunpack.c.h.s8.bf16 %v661_v19  ;;  %v495_v19 = vld [vmem:[%s7975_s24 + $0x3a0] sm:$0xff] }
 0x17f   : > { %7035 = vmatpush1.bf16.msra.mxu0 %v7034_v30  ;;  %6909 = vmatprep.subr.bf16.mxu1 %v6908_v31  ;;  %v7066_v30 = vunpack.c.h.s8.bf16 %v467_v21  ;;  %v6940_v31 = vunpack.c.l.s8.bf16 %v669_v26  ;;  %v385_v21 = vld [vmem:[%s7975_s24 + $0x30] sm:$0xff] }
 0x180   : > { %7037 = vmatprep.subr.bf16.mxu0 %v7036_v32  ;;  %v7068_v32 = vunpack.c.l.s8.bf16 %v475_v28 }
 0x182   : > { %6911 = vmatpush1.bf16.msra.mxu1 %v6910_v37  ;;  %v6942_v37 = vunpack.c.l.s8.bf16 %v668_v33 }
 0x183   : > { %7039 = vmatpush1.bf16.msra.mxu0 %v7038_v40  ;;  %6913 = vmatprep.subr.bf16.mxu1 %v6912_v41  ;;  %v7070_v40 = vunpack.c.l.s8.bf16 %v474_v36  ;;  %v6944_v41 = vunpack.c.h.s8.bf16 %v669_v26  ;;  %v503_v26 = vld [vmem:[%s7975_s24 + $0x3e0] sm:$0xff] }
 0x184   : > { %7041 = vmatprep.subr.bf16.mxu0 %v7040_v46  ;;  %v7072_v46 = vunpack.c.h.s8.bf16 %v475_v28  ;;  %v420_v28 = vld [vmem:[%s7975_s24 + $0x148] sm:$0xff] }
 0x186   : > { %6915 = vmatpush1.bf16.msra.mxu1 %v6914_v44  ;;  %v6946_v44 = vunpack.c.h.s8.bf16 %v668_v33  ;;  %v502_v33 = vld [vmem:[%s7975_s24 + $0x3d8] sm:$0xff] }
 0x187   : > { %7043 = vmatpush1.bf16.msra.mxu0 %v7042_v47  ;;  %6917 = vmatprep.subr.bf16.mxu1 %v6916_v48  ;;  %v7074_v47 = vunpack.c.h.s8.bf16 %v474_v36  ;;  %v6948_v48 = vunpack.c.l.s8.bf16 %v676_v42  ;;  %v392_v36 = vld [vmem:[%s7975_s24 + $0x68] sm:$0xff] }
 0x188   : > { %7045 = vmatprep.subr.bf16.mxu0 %v7044_v49  ;;  %v7076_v49 = vunpack.c.l.s8.bf16 %v482_v43 }
 0x18a   : > { %6919 = vmatpush1.bf16.msra.mxu1 %v6918_v55  ;;  %v6950_v55 = vunpack.c.l.s8.bf16 %v675_v53 }
 0x18b   : > { %7047 = vmatpush1.bf16.msra.mxu0 %v7046_v59  ;;  %6921 = vmatprep.subr.bf16.mxu1 %v6920_v60  ;;  %v7078_v59 = vunpack.c.l.s8.bf16 %v481_v54  ;;  %v6952_v60 = vunpack.c.h.s8.bf16 %v676_v42  ;;  %v510_v42 = vld [vmem:[%s7975_s24 + $0x418] sm:$0xff] }
 0x18c   : > { %7049 = vmatprep.subr.bf16.mxu0 %v7048_v61  ;;  %v7080_v61 = vunpack.c.h.s8.bf16 %v482_v43  ;;  %v427_v43 = vld [vmem:[%s7975_s24 + $0x180] sm:$0xff] }
 0x18e   : > { %6923 = vmatpush1.bf16.msra.mxu1 %v6922_v0  ;;  %v6954_v0 = vunpack.c.h.s8.bf16 %v675_v53  ;;  %v399_v53 = vld [vmem:[%s7975_s24 + $0xa0] sm:$0xff] }
 0x18f   : > { %7051 = vmatpush1.bf16.msra.mxu0 %v7050_v2  ;;  %6925 = vmatprep.subr.bf16.mxu1 %v6924_v3  ;;  %v7082_v2 = vunpack.c.h.s8.bf16 %v481_v54  ;;  %v6956_v3 = vunpack.c.l.s8.bf16 %v683_v62 }
 0x190   : > { %7053 = vmatprep.subr.bf16.mxu0 %v7052_v4  ;;  %v7084_v4 = vunpack.c.l.s8.bf16 %v489_v63 }
 0x192   : > { %6927 = vmatpush1.bf16.msra.mxu1 %v6926_v9  ;;  %v6958_v9 = vunpack.c.l.s8.bf16 %v682_v5 }
 0x193   : > { %7055 = vmatpush1.bf16.msra.mxu0 %v7054_v10  ;;  %6929 = vmatprep.subr.bf16.mxu1 %v6928_v11  ;;  %v7086_v10 = vunpack.c.l.s8.bf16 %v488_v8  ;;  %v6960_v11 = vunpack.c.h.s8.bf16 %v683_v62  ;;  %v434_v62 = vld [vmem:[%s7975_s24 + $0x1b8] sm:$0xff] }
 0x194   : > { %7057 = vmatprep.subr.bf16.mxu0 %v7056_v12  ;;  %v7088_v12 = vunpack.c.h.s8.bf16 %v489_v63 }
 0x196   : > { %6931 = vmatpush1.bf16.msra.mxu1 %v6930_v15  ;;  %v6962_v15 = vunpack.c.h.s8.bf16 %v682_v5  ;;  %v406_v5 = vld [vmem:[%s7975_s24 + $0xd8] sm:$0xff] }
 0x197   : > { %7059 = vmatpush1.bf16.msra.mxu0 %v7058_v16  ;;  %6933 = vmatprep.subr.bf16.mxu1 %v6932_v17  ;;  %v7090_v16 = vunpack.c.h.s8.bf16 %v488_v8  ;;  %v7092_v17 = vunpack.c.l.s8.bf16 %v496_v13 }
 0x198   : > { %7061 = vmatprep.subr.bf16.mxu0 %v7060_v18  ;;  %v7316_v18 = vunpack.c.l.s8.bf16 %v413_v14 }
 0x199   : > { %3995 = vmatmul.mubr.f32.vlgmr.msra.gmra.mrb[2].mxu1 %v8133_v27 }
 0x19a   : > { %6935 = vmatpush1.bf16.msra.mxu1 %v6934_v23  ;;  %4065 = vmatprep.mubr.f32.mxu1 %v7893_v35  ;;  %v7094_v23 = vunpack.c.l.s8.bf16 %v495_v19 }
 0x19b   : > { %7063 = vmatpush1.bf16.msra.mxu0 %v7062_v24  ;;  %6937 = vmatprep.subr.bf16.mxu1 %v6936_v20  ;;  %v7318_v24 = vunpack.c.l.s8.bf16 %v385_v21  ;;  %v7096_v20 = vunpack.c.h.s8.bf16 %v496_v13  ;;  %v469_v13 = vld [vmem:[%s7975_s24 + $0x2d0] sm:$0xff] }
 0x19c   : > { %7065 = vmatprep.subr.bf16.mxu0 %v7064_v25  ;;  %v7320_v25 = vunpack.c.h.s8.bf16 %v413_v14 }
 0x19e   : > { %6939 = vmatpush1.bf16.msra.mxu1 %v6938_v29  ;;  %v7098_v29 = vunpack.c.h.s8.bf16 %v495_v19  ;;  %v441_v19 = vld [vmem:[%s7975_s24 + $0x1f0] sm:$0xff] }
 0x19f   : > { %7067 = vmatpush1.bf16.msra.mxu0 %v7066_v30  ;;  %6941 = vmatprep.subr.bf16.mxu1 %v6940_v31  ;;  %v7322_v30 = vunpack.c.h.s8.bf16 %v385_v21  ;;  %v7100_v31 = vunpack.c.l.s8.bf16 %v503_v26 }
 0x1a0   : > { %7069 = vmatprep.subr.bf16.mxu0 %v7068_v32  ;;  %v7324_v32 = vunpack.c.l.s8.bf16 %v420_v28 }
 0x1a2   : > { %6943 = vmatpush1.bf16.msra.mxu1 %v6942_v37  ;;  %v7102_v37 = vunpack.c.l.s8.bf16 %v502_v33 }
 0x1a3   : > { %7071 = vmatpush1.bf16.msra.mxu0 %v7070_v40  ;;  %6945 = vmatprep.subr.bf16.mxu1 %v6944_v41  ;;  %v7326_v40 = vunpack.c.l.s8.bf16 %v392_v36  ;;  %v7104_v41 = vunpack.c.h.s8.bf16 %v503_v26  ;;  %v476_v26 = vld [vmem:[%s7975_s24 + $0x308] sm:$0xff] }
 0x1a4   : > { %7073 = vmatprep.subr.bf16.mxu0 %v7072_v46  ;;  %v7328_v46 = vunpack.c.h.s8.bf16 %v420_v28 }
 0x1a6   : > { %6947 = vmatpush1.bf16.msra.mxu1 %v6946_v44  ;;  %v7106_v44 = vunpack.c.h.s8.bf16 %v502_v33  ;;  %v448_v33 = vld [vmem:[%s7975_s24 + $0x228] sm:$0xff] }
 0x1a7   : > { %7075 = vmatpush1.bf16.msra.mxu0 %v7074_v47  ;;  %6949 = vmatprep.subr.bf16.mxu1 %v6948_v48  ;;  %v7330_v47 = vunpack.c.h.s8.bf16 %v392_v36  ;;  %v7332_v48 = vunpack.c.l.s8.bf16 %v427_v43 }
 0x1a8   : > { %7077 = vmatprep.subr.bf16.mxu0 %v7076_v49  ;;  %v509_v49 = vld [vmem:[%s7975_s24 + $0x410] sm:$0xff] }
 0x1a9   : > { %v7110_v54 = vunpack.c.l.s8.bf16 %v509_v49  ;;  %v7114_v63 = vunpack.c.h.s8.bf16 %v509_v49 }
 0x1aa   : > { %6951 = vmatpush1.bf16.msra.mxu1 %v6950_v55  ;;  %v7334_v55 = vunpack.c.l.s8.bf16 %v399_v53 }
 0x1ab   : > { %7079 = vmatpush1.bf16.msra.mxu0 %v7078_v59  ;;  %6953 = vmatprep.subr.bf16.mxu1 %v6952_v60  ;;  %v7112_v59 = vunpack.c.h.s8.bf16 %v510_v42  ;;  %v7336_v60 = vunpack.c.h.s8.bf16 %v427_v43  ;;  %v7362_v43 = vunpack.c.h.s8.bf16 %v448_v33 }
 0x1ac   : > { %7081 = vmatprep.subr.bf16.mxu0 %v7080_v61  ;;  %v517_v61 = vld [vmem:[%s7975_s24 + $0x450] sm:$0xff] }
 0x1ae   : > { %6955 = vmatpush1.bf16.msra.mxu1 %v6954_v0  ;;  %v7338_v0 = vunpack.c.h.s8.bf16 %v399_v53 }
 0x1af   : > { %7083 = vmatpush1.bf16.msra.mxu0 %v7082_v2  ;;  %6957 = vmatprep.subr.bf16.mxu1 %v6956_v3  ;;  %v7116_v2 = vunpack.c.l.s8.bf16 %v517_v61  ;;  %v7340_v3 = vunpack.c.l.s8.bf16 %v434_v62 }
 0x1b0   : > { %7085 = vmatprep.subr.bf16.mxu0 %v7084_v4  ;;  %v516_v4 = vld [vmem:[%s7975_s24 + $0x448] sm:$0xff] }
 0x1b1   : > { %v7118_v8 = vunpack.c.l.s8.bf16 %v516_v4  ;;  %v7122_v14 = vunpack.c.h.s8.bf16 %v516_v4 }
 0x1b2   : > { %6959 = vmatpush1.bf16.msra.mxu1 %v6958_v9  ;;  %v7342_v9 = vunpack.c.l.s8.bf16 %v406_v5 }
 0x1b3   : > { %7087 = vmatpush1.bf16.msra.mxu0 %v7086_v10  ;;  %6961 = vmatprep.subr.bf16.mxu1 %v6960_v11  ;;  %v7120_v10 = vunpack.c.h.s8.bf16 %v517_v61  ;;  %v7344_v11 = vunpack.c.h.s8.bf16 %v434_v62 }
 0x1b4   : > { %7089 = vmatprep.subr.bf16.mxu0 %v7088_v12  ;;  %v524_v12 = vld [vmem:[%s7975_s24 + $0x488] sm:$0xff] }
 0x1b6   : > { %6963 = vmatpush1.bf16.msra.mxu1 %v6962_v15  ;;  %v7346_v15 = vunpack.c.h.s8.bf16 %v406_v5 }
 0x1b7   : > { %7091 = vmatpush1.bf16.msra.mxu0 %v7090_v16  ;;  %7317 = vmatprep.subr.bf16.mxu1 %v7316_v18  ;;  %v7124_v16 = vunpack.c.l.s8.bf16 %v524_v12  ;;  %v523_v18 = vld [vmem:[%s7975_s24 + $0x480] sm:$0xff] }
 0x1b8   : > { %7093 = vmatprep.subr.bf16.mxu0 %v7092_v17  ;;  %v7348_v17 = vunpack.c.l.s8.bf16 %v469_v13  ;;  %v7126_v21 = vunpack.c.l.s8.bf16 %v523_v18  ;;  %v7130_v28 = vunpack.c.h.s8.bf16 %v523_v18 }
 0x1b9   : > { %4066 = vmatmul.mubr.f32.vlgmr.msra.gmra.mrb[2].mxu1 %v8202_v22 }
 0x1ba   : > { %4208 = vmatmul.mubr.f32.vlgmr.msra.gmra.mrb[2].mxu0 %v8004_v52  ;;  %7319 = vmatpush3.bf16.msra.mxu1 %v7318_v24  ;;  %v7128_v24 = vunpack.c.h.s8.bf16 %v524_v12 }
 0x1bb   : > { %7095 = vmatpush1.bf16.msra.mxu0 %v7094_v23  ;;  %7321 = vmatprep.subr.bf16.mxu1 %v7320_v25  ;;  %v7350_v23 = vunpack.c.l.s8.bf16 %v441_v19  ;;  %v531_v25 = vld [vmem:[%s7975_s24 + $0x4c0] sm:$0xff] }
 0x1bc   : > { %7097 = vmatprep.subr.bf16.mxu0 %v7096_v20  ;;  %4562 = vmatprep.mubr.f32.mxu1 %v8008_v57  ;;  %v7108_v57 = vunpack.c.l.s8.bf16 %v510_v42  ;;  %v7352_v20 = vunpack.c.h.s8.bf16 %v469_v13 }
 0x1bd   : > { %4278 = vmatprep.mubr.f32.mxu0 %v8047_v1 }
 0x1be   : > { %7323 = vmatpush3.bf16.msra.mxu1 %v7322_v30  ;;  %v7132_v30 = vunpack.c.l.s8.bf16 %v531_v25 }
 0x1bf   : > { %7099 = vmatpush1.bf16.msra.mxu0 %v7098_v29  ;;  %7325 = vmatprep.subr.bf16.mxu1 %v7324_v32  ;;  %v7354_v29 = vunpack.c.h.s8.bf16 %v441_v19  ;;  %v530_v32 = vld [vmem:[%s7975_s24 + $0x4b8] sm:$0xff] }
 0x1c0   : > { %7101 = vmatprep.subr.bf16.mxu0 %v7100_v31  ;;  %v7356_v31 = vunpack.c.l.s8.bf16 %v476_v26  ;;  %v7134_v36 = vunpack.c.l.s8.bf16 %v530_v32  ;;  %v7138_v42 = vunpack.c.h.s8.bf16 %v530_v32 }
 0x1c2   : > { %7327 = vmatpush3.bf16.msra.mxu1 %v7326_v40  ;;  %v7360_v40 = vunpack.c.h.s8.bf16 %v476_v26 }
 0x1c3   : > { %7103 = vmatpush1.bf16.msra.mxu0 %v7102_v37  ;;  %7329 = vmatprep.subr.bf16.mxu1 %v7328_v46  ;;  %v7358_v37 = vunpack.c.l.s8.bf16 %v448_v33  ;;  %v483_v46 = vld [vmem:[%s7975_s24 + $0x340] sm:$0xff] }
 0x1c4   : > { %7105 = vmatprep.subr.bf16.mxu0 %v7104_v41  ;;  %v538_v41 = vld [vmem:[%s7975_s24 + $0x4f8] sm:$0xff] }
 0x1c5   : > { %v7144_v53 = vunpack.c.h.s8.bf16 %v538_v41 }
 0x1c6   : > { %7331 = vmatpush3.bf16.msra.mxu1 %v7330_v47  ;;  %v537_v47 = vld [vmem:[%s7975_s24 + $0x4f0] sm:$0xff] }
 0x1c7   : > { %7107 = vmatpush1.bf16.msra.mxu0 %v7106_v44  ;;  %7333 = vmatprep.subr.bf16.mxu1 %v7332_v48  ;;  %v7364_v44 = vunpack.c.l.s8.bf16 %v483_v46  ;;  %v7142_v48 = vunpack.c.l.s8.bf16 %v537_v47 }
 0x1c8   : > { %7109 = vmatprep.subr.bf16.mxu0 %v7108_v57  ;;  %v455_v57 = vld [vmem:[%s7975_s24 + $0x260] sm:$0xff] }
 0x1c9   : > { %v7366_v49 = vunpack.c.l.s8.bf16 %v455_v57  ;;  %v7370_v61 = vunpack.c.h.s8.bf16 %v455_v57  ;;  %v573_v57 = vld [vmem:[%s7975_s24 + $0x610] sm:$0xff] }
 0x1ca   : > { %7335 = vmatpush3.bf16.msra.mxu1 %v7334_v55  ;;  %v545_v55 = vld [vmem:[%s7975_s24 + $0x530] sm:$0xff] }
 0x1cb   : > { %7111 = vmatpush1.bf16.msra.mxu0 %v7110_v54  ;;  %7337 = vmatprep.subr.bf16.mxu1 %v7336_v60  ;;  %v7368_v54 = vunpack.c.h.s8.bf16 %v483_v46  ;;  %v7146_v60 = vunpack.c.h.s8.bf16 %v537_v47  ;;  %v7148_v62 = vunpack.c.l.s8.bf16 %v545_v55  ;;  %v7152_v5 = vunpack.c.h.s8.bf16 %v545_v55  ;;  %v565_v46 = vld [vmem:[%s7975_s24 + $0x5d0] sm:$0xff] }
 0x1cc   : > { %7113 = vmatprep.subr.bf16.mxu0 %v7112_v59  ;;  %v490_v59 = vld [vmem:[%s7975_s24 + $0x378] sm:$0xff] }
 0x1ce   : > { %7339 = vmatpush3.bf16.msra.mxu1 %v7338_v0  ;;  %v544_v0 = vld [vmem:[%s7975_s24 + $0x528] sm:$0xff] }
 0x1cf   : > { %7115 = vmatpush1.bf16.msra.mxu0 %v7114_v63  ;;  %7341 = vmatprep.subr.bf16.mxu1 %v7340_v3  ;;  %v7372_v63 = vunpack.c.l.s8.bf16 %v490_v59  ;;  %v7150_v3 = vunpack.c.l.s8.bf16 %v544_v0 }
 0x1d0   : > { %7117 = vmatprep.subr.bf16.mxu0 %v7116_v2  ;;  %v462_v2 = vld [vmem:[%s7975_s24 + $0x298] sm:$0xff] }
 0x1d1   : > { %v7374_v4 = vunpack.c.l.s8.bf16 %v462_v2  ;;  %v7378_v12 = vunpack.c.h.s8.bf16 %v462_v2 }
 0x1d2   : > { %7343 = vmatpush3.bf16.msra.mxu1 %v7342_v9  ;;  %v552_v9 = vld [vmem:[%s7975_s24 + $0x568] sm:$0xff] }
 0x1d3   : > { %7119 = vmatpush1.bf16.msra.mxu0 %v7118_v8  ;;  %7345 = vmatprep.subr.bf16.mxu1 %v7344_v11  ;;  %v7376_v8 = vunpack.c.h.s8.bf16 %v490_v59  ;;  %v7154_v11 = vunpack.c.h.s8.bf16 %v544_v0  ;;  %v7156_v13 = vunpack.c.l.s8.bf16 %v552_v9  ;;  %v7160_v19 = vunpack.c.h.s8.bf16 %v552_v9  ;;  %v572_v59 = vld [vmem:[%s7975_s24 + $0x608] sm:$0xff] }
 0x1d4   : > { %7121 = vmatprep.subr.bf16.mxu0 %v7120_v10  ;;  %v525_v10 = vld [vmem:[%s7975_s24 + $0x490] sm:$0xff]  ;;  %v7182_v2 = vunpack.c.l.s8.bf16 %v572_v59  ;;  %v580_v9 = vld [vmem:[%s7975_s24 + $0x648] sm:$0xff] }
 0x1d6   : > { %7347 = vmatpush3.bf16.msra.mxu1 %v7346_v15  ;;  %v551_v15 = vld [vmem:[%s7975_s24 + $0x560] sm:$0xff] }
 0x1d7   : > { %7123 = vmatpush1.bf16.msra.mxu0 %v7122_v14  ;;  %7349 = vmatprep.subr.bf16.mxu1 %v7348_v17  ;;  %v7380_v14 = vunpack.c.l.s8.bf16 %v525_v10  ;;  %v7158_v17 = vunpack.c.l.s8.bf16 %v551_v15 }
 0x1d8   : > { %7125 = vmatprep.subr.bf16.mxu0 %v7124_v16  ;;  %v497_v16 = vld [vmem:[%s7975_s24 + $0x3b0] sm:$0xff] }
 0x1d9   : > { %4563 = vmatmul.mubr.f32.vlgmr.msra.gmra.mrb[4].mxu1 %v8001_v51  ;;  %v7136_v51 = vunpack.c.h.s8.bf16 %v531_v25  ;;  %v7382_v18 = vunpack.c.l.s8.bf16 %v497_v16  ;;  %v7386_v25 = vunpack.c.h.s8.bf16 %v497_v16 }
 0x1da   : > { %7351 = vmatpush3.bf16.msra.mxu1 %v7350_v23  ;;  %4632 = vmatprep.mubr.f32.mxu1 %v8012_v58  ;;  %v7140_v58 = vunpack.c.l.s8.bf16 %v538_v41  ;;  %v559_v23 = vld [vmem:[%s7975_s24 + $0x5a0] sm:$0xff] }
 0x1db   : > { %7127 = vmatpush1.bf16.msra.mxu0 %v7126_v21  ;;  %7353 = vmatprep.subr.bf16.mxu1 %v7352_v20  ;;  %v7384_v21 = vunpack.c.h.s8.bf16 %v525_v10  ;;  %v7162_v20 = vunpack.c.h.s8.bf16 %v551_v15  ;;  %v7164_v26 = vunpack.c.l.s8.bf16 %v559_v23  ;;  %v7168_v32 = vunpack.c.h.s8.bf16 %v559_v23 }
 0x1dc   : > { %7129 = vmatprep.subr.bf16.mxu0 %v7128_v24  ;;  %v532_v24 = vld [vmem:[%s7975_s24 + $0x4c8] sm:$0xff]  ;;  %v7186_v10 = vunpack.c.h.s8.bf16 %v572_v59 }
 0x1dd   : > { %v7392_v33 = vunpack.c.h.s8.bf16 %v532_v24 }
 0x1de   : > { %7355 = vmatpush3.bf16.msra.mxu1 %v7354_v29  ;;  %v558_v29 = vld [vmem:[%s7975_s24 + $0x598] sm:$0xff] }
 0x1df   : > { %7131 = vmatpush1.bf16.msra.mxu0 %v7130_v28  ;;  %7357 = vmatprep.subr.bf16.mxu1 %v7356_v31  ;;  %v7388_v28 = vunpack.c.l.s8.bf16 %v532_v24  ;;  %v7166_v31 = vunpack.c.l.s8.bf16 %v558_v29 }
 0x1e0   : > { %7133 = vmatprep.subr.bf16.mxu0 %v7132_v30  ;;  %v504_v30 = vld [vmem:[%s7975_s24 + $0x3e8] sm:$0xff] }
 0x1e2   : > { %7359 = vmatpush3.bf16.msra.mxu1 %v7358_v37  ;;  %v539_v37 = vld [vmem:[%s7975_s24 + $0x500] sm:$0xff] }
 0x1e3   : > { %7135 = vmatpush1.bf16.msra.mxu0 %v7134_v36  ;;  %7361 = vmatprep.subr.bf16.mxu1 %v7360_v40  ;;  %v566_v36 = vld [vmem:[%s7975_s24 + $0x5d8] sm:$0xff]  ;;  %v7394_v40 = vunpack.c.h.s8.bf16 %v504_v30  ;;  %v7396_v41 = vunpack.c.l.s8.bf16 %v539_v37  ;;  %v7400_v47 = vunpack.c.h.s8.bf16 %v539_v37 }
 0x1e4   : > { %7137 = vmatprep.subr.bf16.mxu0 %v7136_v51  ;;  %v7170_v51 = vunpack.c.h.s8.bf16 %v558_v29 }
 0x1e6   : > { %7363 = vmatpush3.bf16.msra.mxu1 %v7362_v43  ;;  %v7174_v43 = vunpack.c.l.s8.bf16 %v565_v46 }
 0x1e7   : > { %7139 = vmatpush1.bf16.msra.mxu0 %v7138_v42  ;;  %7365 = vmatprep.subr.bf16.mxu1 %v7364_v44  ;;  %v511_v42 = vld [vmem:[%s7975_s24 + $0x420] sm:$0xff]  ;;  %v7176_v44 = vunpack.c.h.s8.bf16 %v566_v36 }
 0x1e8   : > { %7141 = vmatprep.subr.bf16.mxu0 %v7140_v58  ;;  %v7398_v58 = vunpack.c.l.s8.bf16 %v511_v42 }
 0x1ea   : > { %7367 = vmatpush3.bf16.msra.mxu1 %v7366_v49  ;;  %v7178_v49 = vunpack.c.h.s8.bf16 %v565_v46 }
 0x1eb   : > { %7143 = vmatpush1.bf16.msra.mxu0 %v7142_v48  ;;  %7369 = vmatprep.subr.bf16.mxu1 %v7368_v54  ;;  %v546_v48 = vld [vmem:[%s7975_s24 + $0x538] sm:$0xff]  ;;  %v7180_v54 = vunpack.c.l.s8.bf16 %v573_v57 }
 0x1ec   : > { %7145 = vmatprep.subr.bf16.mxu0 %v7144_v53  ;;  %v7402_v53 = vunpack.c.h.s8.bf16 %v511_v42  ;;  %v7404_v55 = vunpack.c.l.s8.bf16 %v546_v48 }
 0x1ee   : > { %7371 = vmatpush3.bf16.msra.mxu1 %v7370_v61 }
 0x1ef   : > { %7147 = vmatpush1.bf16.msra.mxu0 %v7146_v60  ;;  %7373 = vmatprep.subr.bf16.mxu1 %v7372_v63  ;;  %v518_v60 = vld [vmem:[%s7975_s24 + $0x458] sm:$0xff] }
 0x1f0   : > { %7149 = vmatprep.subr.bf16.mxu0 %v7148_v62 }
 0x1f2   : > { %7375 = vmatpush3.bf16.msra.mxu1 %v7374_v4  ;;  %v7184_v4 = vunpack.c.h.s8.bf16 %v573_v57 }
 0x1f3   : > { %7151 = vmatpush1.bf16.msra.mxu0 %v7150_v3  ;;  %7377 = vmatprep.subr.bf16.mxu1 %v7376_v8  ;;  %v7406_v3 = vunpack.c.l.s8.bf16 %v518_v60 }
 0x1f4   : > { %7153 = vmatprep.subr.bf16.mxu0 %v7152_v5  ;;  %v7408_v5 = vunpack.c.h.s8.bf16 %v546_v48 }
 0x1f6   : > { %7379 = vmatpush3.bf16.msra.mxu1 %v7378_v12 }
 0x1f7   : > { %7155 = vmatpush1.bf16.msra.mxu0 %v7154_v11  ;;  %7381 = vmatprep.subr.bf16.mxu1 %v7380_v14  ;;  %v7188_v11 = vunpack.c.l.s8.bf16 %v580_v9  ;;  %v553_v14 = vld [vmem:[%s7975_s24 + $0x570] sm:$0xff] }
 0x1f8   : > { %7157 = vmatprep.subr.bf16.mxu0 %v7156_v13  ;;  %v579_v13 = vld [vmem:[%s7975_s24 + $0x640] sm:$0xff]  ;;  %v7414_v16 = vunpack.c.l.s8.bf16 %v553_v14  ;;  %v7418_v24 = vunpack.c.h.s8.bf16 %v553_v14  ;;  %v644_v14 = vld [vmem:[%s7975_s24 + $0x848] sm:$0xff] }
 0x1f9   : > { %4633 = vmatmul.mubr.f32.vlgmr.msra.gmra.mrb[6].mxu1 %v8004_v52  ;;  %v7390_v52 = vunpack.c.l.s8.bf16 %v504_v30  ;;  %v7190_v15 = vunpack.c.l.s8.bf16 %v579_v13  ;;  %v7194_v23 = vunpack.c.h.s8.bf16 %v579_v13  ;;  %v615_v13 = vld [vmem:[%s7975_s24 + $0x760] sm:$0xff] }
 0x1fa   : > { %4279 = vmatmul.mubr.f32.vlgmr.msra.gmra.mrb[2].mxu0 %v8041_v56  ;;  %7383 = vmatpush3.bf16.msra.mxu1 %v7382_v18 }
 0x1fb   : > { %7159 = vmatpush1.bf16.msra.mxu0 %v7158_v17  ;;  %7385 = vmatprep.subr.bf16.mxu1 %v7384_v21  ;;  %v7192_v17 = vunpack.c.h.s8.bf16 %v580_v9  ;;  %v588_v21 = vld [vmem:[%s7975_s24 + $0x688] sm:$0xff]  ;;  %v607_v9 = vld [vmem:[%s7975_s24 + $0x720] sm:$0xff] }
 0x1fc   : > { %7161 = vmatprep.subr.bf16.mxu0 %v7160_v19  ;;  %4702 = vmatprep.mubr.f32.mxu1 %v8047_v1  ;;  %v7172_v1 = vunpack.c.l.s8.bf16 %v566_v36  ;;  %v587_v19 = vld [vmem:[%s7975_s24 + $0x680] sm:$0xff] }
 0x1fd   : > { %4349 = vmatprep.mubr.f32.mxu0 %v8092_v45 }
 0x1fe   : > { %7387 = vmatpush3.bf16.msra.mxu1 %v7386_v25  ;;  %v7420_v25 = vunpack.c.l.s8.bf16 %v588_v21 }
 0x1ff   : > { %7163 = vmatpush1.bf16.msra.mxu0 %v7162_v20  ;;  %7389 = vmatprep.subr.bf16.mxu1 %v7388_v28  ;;  %v7196_v20 = vunpack.c.l.s8.bf16 %v587_v19  ;;  %v560_v28 = vld [vmem:[%s7975_s24 + $0x5a8] sm:$0xff] }
 0x200   : > { %7165 = vmatprep.subr.bf16.mxu0 %v7164_v26  ;;  %v586_v26 = vld [vmem:[%s7975_s24 + $0x678] sm:$0xff]  ;;  %v7422_v30 = vunpack.c.l.s8.bf16 %v560_v28  ;;  %v7426_v36 = vunpack.c.h.s8.bf16 %v560_v28 }
 0x201   : > { %v7198_v29 = vunpack.c.l.s8.bf16 %v586_v26 }
 0x202   : > { %7391 = vmatpush3.bf16.msra.mxu1 %v7390_v52  ;;  %v594_v52 = vld [vmem:[%s7975_s24 + $0x6b8] sm:$0xff] }
 0x203   : > { %7167 = vmatpush1.bf16.msra.mxu0 %v7166_v31  ;;  %7393 = vmatprep.subr.bf16.mxu1 %v7392_v33  ;;  %v7424_v31 = vunpack.c.h.s8.bf16 %v588_v21  ;;  %v7202_v33 = vunpack.c.h.s8.bf16 %v586_v26  ;;  %v7208_v46 = vunpack.c.h.s8.bf16 %v594_v52  ;;  %v616_v21 = vld [vmem:[%s7975_s24 + $0x768] sm:$0xff]  ;;  %v651_v26 = vld [vmem:[%s7975_s24 + $0x880] sm:$0xff] }
 0x204   : > { %7169 = vmatprep.subr.bf16.mxu0 %v7168_v32  ;;  %v595_v32 = vld [vmem:[%s7975_s24 + $0x6c0] sm:$0xff] }
 0x205   : > { %v7428_v37 = vunpack.c.l.s8.bf16 %v595_v32  ;;  %v7432_v42 = vunpack.c.h.s8.bf16 %v595_v32 }
 0x206   : > { %7395 = vmatpush3.bf16.msra.mxu1 %v7394_v40  ;;  %v567_v40 = vld [vmem:[%s7975_s24 + $0x5e0] sm:$0xff] }
 0x207   : > { %7171 = vmatpush1.bf16.msra.mxu0 %v7170_v51  ;;  %7397 = vmatprep.subr.bf16.mxu1 %v7396_v41  ;;  %v593_v51 = vld [vmem:[%s7975_s24 + $0x6b0] sm:$0xff]  ;;  %v7430_v41 = vunpack.c.l.s8.bf16 %v567_v40 }
 0x208   : > { %7173 = vmatprep.subr.bf16.mxu0 %v7172_v1  ;;  %v7206_v1 = vunpack.c.l.s8.bf16 %v593_v51 }
 0x20a   : > { %7399 = vmatpush3.bf16.msra.mxu1 %v7398_v58  ;;  %v602_v58 = vld [vmem:[%s7975_s24 + $0x6f8] sm:$0xff] }
 0x20b   : > { %7175 = vmatpush1.bf16.msra.mxu0 %v7174_v43  ;;  %7401 = vmatprep.subr.bf16.mxu1 %v7400_v47  ;;  %v601_v43 = vld [vmem:[%s7975_s24 + $0x6f0] sm:$0xff]  ;;  %v7434_v47 = vunpack.c.h.s8.bf16 %v567_v40  ;;  %v7436_v48 = vunpack.c.l.s8.bf16 %v602_v58 }
 0x20c   : > { %7177 = vmatprep.subr.bf16.mxu0 %v7176_v44  ;;  %v7210_v44 = vunpack.c.h.s8.bf16 %v593_v51  ;;  %v7212_v57 = vunpack.c.l.s8.bf16 %v601_v43  ;;  %v7216_v59 = vunpack.c.h.s8.bf16 %v601_v43 }
 0x20d   : > { %v3641_v61 = vpop.f32.mrb[0].mxu0 }
 0x20e   : > { %v8331_v62 = vadd.f32 %v3641_v61, %v8191_v6  ;;  %v3643_v63 = vpop.f32.mrb[1].mxu0  ;;  %7403 = vmatpush3.bf16.msra.mxu1 %v7402_v53  ;;  %v581_v6 = vld [vmem:[%s7975_s24 + $0x650] sm:$0xff]  ;;  %v574_v53 = vld [vmem:[%s7975_s24 + $0x618] sm:$0xff]  ;;  %v608_v61 = vld [vmem:[%s7975_s24 + $0x728] sm:$0xff] }
 0x20f   : > { %v8334_v0 = vadd.f32 %v3643_v63, %v8193_v7  ;;  %7179 = vmatpush1.bf16.msra.mxu0 %v7178_v49  ;;  %7405 = vmatprep.subr.bf16.mxu1 %v7404_v55  ;;  %v7410_v7 = vunpack.c.h.s8.bf16 %v518_v60  ;;  %v7412_v12 = vunpack.c.l.s8.bf16 %v581_v6  ;;  %v7416_v18 = vunpack.c.h.s8.bf16 %v581_v6  ;;  %v600_v49 = vld [vmem:[%s7975_s24 + $0x6e8] sm:$0xff]  ;;  %v637_v63 = vld [vmem:[%s7975_s24 + $0x810] sm:$0xff] }
 0x210   : > { %7181 = vmatprep.subr.bf16.mxu0 %v7180_v54  ;;  %v7214_v54 = vunpack.c.l.s8.bf16 %v600_v49  ;;  %v7438_v55 = vunpack.c.l.s8.bf16 %v574_v53  ;;  %v7440_v60 = vunpack.c.h.s8.bf16 %v602_v58  ;;  %v609_v6 = vld [vmem:[%s7975_s24 + $0x730] sm:$0xff] }
 0x211   : > { %v4925_v8 = vcombine.low %v8331_v62, %v8334_v0 }
 0x212   : > { %7407 = vmatpush3.bf16.msra.mxu1 %v7406_v3  ;;  %v7442_v3 = vunpack.c.h.s8.bf16 %v574_v53 }
 0x213   : > { %7183 = vmatpush1.bf16.msra.mxu0 %v7182_v2  ;;  %7409 = vmatprep.subr.bf16.mxu1 %v7408_v5  ;;  %v7218_v2 = vunpack.c.h.s8.bf16 %v600_v49  ;;  %v7444_v5 = vunpack.c.l.s8.bf16 %v637_v63 }
 0x214   : > { %7185 = vmatprep.subr.bf16.mxu0 %v7184_v4  ;;  %v7220_v4 = vunpack.c.l.s8.bf16 %v608_v61 }
 0x216   : > { %7411 = vmatpush3.bf16.msra.mxu1 %v7410_v7  ;;  %v7446_v7 = vunpack.c.l.s8.bf16 %v609_v6 }
 0x217   : > { %7187 = vmatpush1.bf16.msra.mxu0 %v7186_v10  ;;  %7413 = vmatprep.subr.bf16.mxu1 %v7412_v12  ;;  %v7222_v10 = vunpack.c.l.s8.bf16 %v607_v9  ;;  %v7448_v12 = vunpack.c.h.s8.bf16 %v637_v63 }
 0x218   : > { %7189 = vmatprep.subr.bf16.mxu0 %v7188_v11  ;;  %v7224_v11 = vunpack.c.h.s8.bf16 %v608_v61  ;;  %v7894_v61 = vmov 0.0|0.0  }
 0x219   : > { %4703 = vmatmul.mubr.f32.vlgmr.msra.gmra.mrb[8].mxu1 %v8041_v56  ;;  %v7200_v56 = vunpack.c.h.s8.bf16 %v587_v19  ;;  %v614_v19 = vld [vmem:[%s7975_s24 + $0x758] sm:$0xff] }
 0x21a   : > { %7415 = vmatpush3.bf16.msra.mxu1 %v7414_v16  ;;  %4772 = vmatprep.mubr.f32.mxu1 %v8092_v45  ;;  %v7204_v45 = vunpack.c.l.s8.bf16 %v594_v52  ;;  %v7450_v16 = vunpack.c.h.s8.bf16 %v609_v6  ;;  %v7234_v28 = vunpack.c.h.s8.bf16 %v614_v19  ;;  %v672_v6 = vld [vmem:[%s7975_s24 + $0x928] sm:$0xff] }
 0x21b   : > { %7191 = vmatpush1.bf16.msra.mxu0 %v7190_v15  ;;  %7417 = vmatprep.subr.bf16.mxu1 %v7416_v18  ;;  %v7226_v15 = vunpack.c.h.s8.bf16 %v607_v9  ;;  %v7452_v18 = vunpack.c.l.s8.bf16 %v644_v14  ;;  %v642_v9 = vld [vmem:[%s7975_s24 + $0x838] sm:$0xff] }
 0x21c   : > { %7193 = vmatprep.subr.bf16.mxu0 %v7192_v17  ;;  %v7228_v17 = vunpack.c.l.s8.bf16 %v615_v13 }
 0x21e   : > { %7419 = vmatpush3.bf16.msra.mxu1 %v7418_v24  ;;  %v7232_v24 = vunpack.c.h.s8.bf16 %v615_v13  ;;  %v7266_v13 = vunpack.c.h.s8.bf16 %v642_v9 }
 0x21f   : > { %7195 = vmatpush1.bf16.msra.mxu0 %v7194_v23  ;;  %7421 = vmatprep.subr.bf16.mxu1 %v7420_v25  ;;  %v7230_v23 = vunpack.c.l.s8.bf16 %v614_v19  ;;  %v622_v25 = vld [vmem:[%s7975_s24 + $0x798] sm:$0xff] }
 0x220   : > { %7197 = vmatprep.subr.bf16.mxu0 %v7196_v20  ;;  %v7456_v20 = vunpack.c.h.s8.bf16 %v644_v14  ;;  %v7821_v14 = vunpack.c.h.s8.bf16 %v672_v6 }
 0x222   : > { %7423 = vmatpush3.bf16.msra.mxu1 %v7422_v30  ;;  %v7460_v30 = vunpack.c.l.s8.bf16 %v651_v26 }
 0x223   : > { %7199 = vmatpush1.bf16.msra.mxu0 %v7198_v29  ;;  %7425 = vmatprep.subr.bf16.mxu1 %v7424_v31  ;;  %v7458_v29 = vunpack.c.h.s8.bf16 %v616_v21  ;;  %v623_v31 = vld [vmem:[%s7975_s24 + $0x7a0] sm:$0xff] }
 0x224   : > { %7201 = vmatprep.subr.bf16.mxu0 %v7200_v56  ;;  %v621_v56 = vld [vmem:[%s7975_s24 + $0x790] sm:$0xff]  ;;  %v7462_v32 = vunpack.c.l.s8.bf16 %v623_v31  ;;  %v7466_v40 = vunpack.c.h.s8.bf16 %v623_v31 }
 0x225   : > { %v7238_v52 = vunpack.c.l.s8.bf16 %v621_v56  ;;  %v7242_v51 = vunpack.c.h.s8.bf16 %v621_v56 }
 0x226   : > { %7427 = vmatpush3.bf16.msra.mxu1 %v7426_v36  ;;  %v7464_v36 = vunpack.c.h.s8.bf16 %v651_v26  ;;  %v686_v26 = vld [vmem:[%s7975_s24 + $0x998] sm:$0xff] }
 0x227   : > { %7203 = vmatpush1.bf16.msra.mxu0 %v7202_v33  ;;  %7429 = vmatprep.subr.bf16.mxu1 %v7428_v37  ;;  %v7240_v33 = vunpack.c.h.s8.bf16 %v622_v25  ;;  %v658_v37 = vld [vmem:[%s7975_s24 + $0x8b8] sm:$0xff]  ;;  %v7825_v31 = vunpack.c.h.s8.bf16 %v686_v26 }
 0x228   : > { %7205 = vmatprep.subr.bf16.mxu0 %v7204_v45  ;;  %v629_v45 = vld [vmem:[%s7975_s24 + $0x7d0] sm:$0xff] }
 0x22a   : > { %7431 = vmatpush3.bf16.msra.mxu1 %v7430_v41  ;;  %v7468_v41 = vunpack.c.l.s8.bf16 %v658_v37 }
 0x22b   : > { %7207 = vmatpush1.bf16.msra.mxu0 %v7206_v1  ;;  %7433 = vmatprep.subr.bf16.mxu1 %v7432_v42  ;;  %v7244_v1 = vunpack.c.l.s8.bf16 %v629_v45  ;;  %v630_v42 = vld [vmem:[%s7975_s24 + $0x7d8] sm:$0xff] }
 0x22c   : > { %7209 = vmatprep.subr.bf16.mxu0 %v7208_v46  ;;  %v628_v46 = vld [vmem:[%s7975_s24 + $0x7c8] sm:$0xff]  ;;  %v7470_v58 = vunpack.c.l.s8.bf16 %v630_v42  ;;  %v7474_v49 = vunpack.c.h.s8.bf16 %v630_v42 }
 0x22d   : > { %v7246_v43 = vunpack.c.l.s8.bf16 %v628_v46 }
 0x22e   : > { %7435 = vmatpush3.bf16.msra.mxu1 %v7434_v47  ;;  %v7472_v47 = vunpack.c.h.s8.bf16 %v658_v37 }
 0x22f   : > { %7211 = vmatpush1.bf16.msra.mxu0 %v7210_v44  ;;  %7437 = vmatprep.subr.bf16.mxu1 %v7436_v48  ;;  %v7248_v44 = vunpack.c.h.s8.bf16 %v629_v45  ;;  %v7250_v48 = vunpack.c.h.s8.bf16 %v628_v46  ;;  %v671_v45 = vld [vmem:[%s7975_s24 + $0x920] sm:$0xff]  ;;  %v678_v46 = vld [vmem:[%s7975_s24 + $0x958] sm:$0xff] }
 0x230   : > { %7213 = vmatprep.subr.bf16.mxu0 %v7212_v57  ;;  %v636_v57 = vld [vmem:[%s7975_s24 + $0x808] sm:$0xff] }
 0x231   : > { %v7252_v53 = vunpack.c.l.s8.bf16 %v636_v57  ;;  %v7256_v63 = vunpack.c.h.s8.bf16 %v636_v57 }
 0x232   : > { %7439 = vmatpush3.bf16.msra.mxu1 %v7438_v55  ;;  %v665_v55 = vld [vmem:[%s7975_s24 + $0x8f0] sm:$0xff] }
 0x233   : > { %7215 = vmatpush1.bf16.msra.mxu0 %v7214_v54  ;;  %7441 = vmatprep.subr.bf16.mxu1 %v7440_v60  ;;  %v635_v54 = vld [vmem:[%s7975_s24 + $0x800] sm:$0xff]  ;;  %v7818_v60 = vunpack.c.l.s8.bf16 %v665_v55 }
 0x234   : > { %7217 = vmatprep.subr.bf16.mxu0 %v7216_v59  ;;  %v7254_v59 = vunpack.c.l.s8.bf16 %v635_v54 }
 0x236   : > { %7443 = vmatpush3.bf16.msra.mxu1 %v7442_v3  ;;  %v7258_v3 = vunpack.c.h.s8.bf16 %v635_v54 }
 0x237   : > { %7219 = vmatpush1.bf16.msra.mxu0 %v7218_v2  ;;  %7445 = vmatprep.subr.bf16.mxu1 %v7444_v5  ;;  %v643_v2 = vld [vmem:[%s7975_s24 + $0x840] sm:$0xff] }
 0x238   : > { %7221 = vmatprep.subr.bf16.mxu0 %v7220_v4  ;;  %v7819_v4 = vunpack.c.h.s8.bf16 %v665_v55  ;;  %v7260_v5 = vunpack.c.l.s8.bf16 %v643_v2 }
 0x239   : > { %4773 = vmatmul.mubr.f32.vlgmr.msra.gmra.mrb[10].mxu1 %v8086_v38 }
 0x23a   : > { %4350 = vmatmul.mubr.f32.vlgmr.msra.gmra.mrb[2].mxu0 %v8086_v38  ;;  %7447 = vmatpush3.bf16.msra.mxu1 %v7446_v7  ;;  %v7454_v38 = vunpack.c.l.s8.bf16 %v616_v21  ;;  %v7820_v7 = vunpack.c.l.s8.bf16 %v672_v6 }
 0x23b   : > { %7223 = vmatpush1.bf16.msra.mxu0 %v7222_v10  ;;  %7449 = vmatprep.subr.bf16.mxu1 %v7448_v12  ;;  %v7262_v10 = vunpack.c.l.s8.bf16 %v642_v9  ;;  %v650_v12 = vld [vmem:[%s7975_s24 + $0x878] sm:$0xff] }
 0x23c   : > { %7225 = vmatprep.subr.bf16.mxu0 %v7224_v11  ;;  %4842 = vmatprep.mubr.f32.mxu1 %v8139_v34  ;;  %v7264_v11 = vunpack.c.h.s8.bf16 %v643_v2  ;;  %v7272_v21 = vunpack.c.h.s8.bf16 %v650_v12 }
 0x23d   : > { %4420 = vmatprep.mubr.f32.mxu0 %v8139_v34  ;;  %v7236_v34 = vunpack.c.l.s8.bf16 %v622_v25  ;;  %v656_v25 = vld [vmem:[%s7975_s24 + $0x8a8] sm:$0xff] }
 0x23e   : > { %7451 = vmatpush3.bf16.msra.mxu1 %v7450_v16  ;;  %v649_v16 = vld [vmem:[%s7975_s24 + $0x870] sm:$0xff]  ;;  %v7282_v56 = vunpack.c.h.s8.bf16 %v656_v25 }
 0x23f   : > { %7227 = vmatpush1.bf16.msra.mxu0 %v7226_v15  ;;  %7453 = vmatprep.subr.bf16.mxu1 %v7452_v18  ;;  %v7268_v15 = vunpack.c.l.s8.bf16 %v650_v12  ;;  %v7270_v18 = vunpack.c.l.s8.bf16 %v649_v16 }
 0x240   : > { %7229 = vmatprep.subr.bf16.mxu0 %v7228_v17  ;;  %v679_v17 = vld [vmem:[%s7975_s24 + $0x960] sm:$0xff] }
 0x241   : > { %v7822_v19 = vunpack.c.l.s8.bf16 %v679_v17 }
 0x242   : > { %7455 = vmatpush3.bf16.msra.mxu1 %v7454_v38  ;;  %v7274_v38 = vunpack.c.h.s8.bf16 %v649_v16 }
 0x243   : > { %7231 = vmatpush1.bf16.msra.mxu0 %v7230_v23  ;;  %7457 = vmatprep.subr.bf16.mxu1 %v7456_v20  ;;  %v657_v23 = vld [vmem:[%s7975_s24 + $0x8b0] sm:$0xff] }
 0x244   : > { %7233 = vmatprep.subr.bf16.mxu0 %v7232_v24  ;;  %v7823_v24 = vunpack.c.h.s8.bf16 %v679_v17  ;;  %v7276_v20 = vunpack.c.l.s8.bf16 %v657_v23 }
 0x246   : > { %7459 = vmatpush3.bf16.msra.mxu1 %v7458_v29  ;;  %v7824_v29 = vunpack.c.l.s8.bf16 %v686_v26 }
 0x247   : > { %7235 = vmatpush1.bf16.msra.mxu0 %v7234_v28  ;;  %7461 = vmatprep.subr.bf16.mxu1 %v7460_v30  ;;  %v7278_v28 = vunpack.c.l.s8.bf16 %v656_v25  ;;  %v664_v30 = vld [vmem:[%s7975_s24 + $0x8e8] sm:$0xff] }
 0x248   : > { %7237 = vmatprep.subr.bf16.mxu0 %v7236_v34  ;;  %v7280_v34 = vunpack.c.h.s8.bf16 %v657_v23 }
 0x24a   : > { %7463 = vmatpush3.bf16.msra.mxu1 %v7462_v32  ;;  %v663_v32 = vld [vmem:[%s7975_s24 + $0x8e0] sm:$0xff] }
 0x24b   : > { %7239 = vmatpush1.bf16.msra.mxu0 %v7238_v52  ;;  %7465 = vmatprep.subr.bf16.mxu1 %v7464_v36  ;;  %v7284_v52 = vunpack.c.l.s8.bf16 %v664_v30  ;;  %v7288_v36 = vunpack.c.h.s8.bf16 %v664_v30  ;;  %v7290_v37 = vunpack.c.h.s8.bf16 %v663_v32 }
 0x24c   : > { %7241 = vmatprep.subr.bf16.mxu0 %v7240_v33  ;;  %v7286_v33 = vunpack.c.l.s8.bf16 %v663_v32  ;;  %v5170_v32 = vld [vmem:[%s9340_s4 + $0x200] sm:$0xff] (!%p5939_p6) }
 0x24e   : > { %7467 = vmatpush3.bf16.msra.mxu1 %v7466_v40  ;;  %v670_v40 = vld [vmem:[%s7975_s24 + $0x918] sm:$0xff] }
 0x24f   : > { %7243 = vmatpush1.bf16.msra.mxu0 %v7242_v51  ;;  %7469 = vmatprep.subr.bf16.mxu1 %v7468_v41  ;;  %v7292_v51 = vunpack.c.l.s8.bf16 %v671_v45  ;;  %v7296_v41 = vunpack.c.h.s8.bf16 %v671_v45  ;;  %v7298_v42 = vunpack.c.h.s8.bf16 %v670_v40  ;;  %v5175_v45 = vld [vmem:[%s9340_s4 + $0x228] sm:$0xff] (!%p5939_p6) }
 0x250   : > { %7245 = vmatprep.subr.bf16.mxu0 %v7244_v1  ;;  %v7294_v1 = vunpack.c.l.s8.bf16 %v670_v40 }
 0x252   : > { %7471 = vmatpush3.bf16.msra.mxu1 %v7470_v58 }
 0x253   : > { %7247 = vmatpush1.bf16.msra.mxu0 %v7246_v43  ;;  %7473 = vmatprep.subr.bf16.mxu1 %v7472_v47  ;;  %v7300_v43 = vunpack.c.l.s8.bf16 %v678_v46 }
 0x254   : > { %7249 = vmatprep.subr.bf16.mxu0 %v7248_v44  ;;  %v7304_v44 = vunpack.c.h.s8.bf16 %v678_v46  ;;  %v5179_v46 = vld [vmem:[%s9340_s4 + $0x248] sm:$0xff] (!%p5939_p6) }
 0x256   : > { %7475 = vmatpush3.bf16.msra.mxu1 %v7474_v49 }
 0x257   : > { %7251 = vmatpush1.bf16.msra.mxu0 %v7250_v48  ;;  %7476 = vmatprep.subr.bf16.mxu1 %v7894_v61  ;;  %v684_v48 = vld [vmem:[%s7975_s24 + $0x988] sm:$0xff] }
 0x258   : > { %7253 = vmatprep.subr.bf16.mxu0 %v7252_v53  ;;  %v7310_v55 = vunpack.c.l.s8.bf16 %v684_v48 }
 0x259   : > { %4843 = vmatmul.mubr.f32.vlgmr.msra.gmra.mrb[12].mxu1 %v8133_v27 }
 0x25a   : > { %7478 = vmatpush3.bf16.msra.mxu1 %v7818_v60  ;;  %6222 = vmatprep.mubr.msk.f32.mxu1 %vm7895_vm0, %v7893_v35  ;;  %v4933_v60 = vrot.slane %v4925_v8, %v7998_v50 }
 0x25b   : > { %7255 = vmatpush1.bf16.msra.mxu0 %v7254_v59  ;;  %7479 = vmatprep.subr.bf16.mxu1 %v7894_v61 }
 0x25c   : > { %7257 = vmatprep.subr.bf16.mxu0 %v7256_v63  ;;  %v3151_v63 = vld [vmem:[#allocation2] sm:$0xff] }
 0x25e   : > { %7481 = vmatpush3.bf16.msra.mxu1 %v7819_v4 }
 0x25f   : > { %7259 = vmatpush1.bf16.msra.mxu0 %v7258_v3  ;;  %7482 = vmatprep.subr.bf16.mxu1 %v7894_v61  ;;  %v7314_v3 = vunpack.c.h.s8.bf16 %v684_v48 }
 0x260   : > { %7261 = vmatprep.subr.bf16.mxu0 %v7260_v5 }
 0x262   : > { %7484 = vmatpush3.bf16.msra.mxu1 %v7820_v7 }
 0x263   : > { %7263 = vmatpush1.bf16.msra.mxu0 %v7262_v10  ;;  %7485 = vmatprep.subr.bf16.mxu1 %v7894_v61 }
 0x264   : > { %7265 = vmatprep.subr.bf16.mxu0 %v7264_v11 }
 0x266   : > { %7487 = vmatpush3.bf16.msra.mxu1 %v7821_v14 }
 0x267   : > { %7267 = vmatpush1.bf16.msra.mxu0 %v7266_v13  ;;  %7488 = vmatprep.subr.bf16.mxu1 %v7894_v61 }
 0x268   : > { %7269 = vmatprep.subr.bf16.mxu0 %v7268_v15 }
 0x26a   : > { %7490 = vmatpush3.bf16.msra.mxu1 %v7822_v19 }
 0x26b   : > { %7271 = vmatpush1.bf16.msra.mxu0 %v7270_v18  ;;  %7491 = vmatprep.subr.bf16.mxu1 %v7894_v61 }
 0x26c   : > { %7273 = vmatprep.subr.bf16.mxu0 %v7272_v21 }
 0x26e   : > { %7493 = vmatpush3.bf16.msra.mxu1 %v7823_v24 }
 0x26f   : > { %7275 = vmatpush1.bf16.msra.mxu0 %v7274_v38  ;;  %7494 = vmatprep.subr.bf16.mxu1 %v7894_v61 }
 0x270   : > { %7277 = vmatprep.subr.bf16.mxu0 %v7276_v20 }
 0x272   : > { %7496 = vmatpush3.bf16.msra.mxu1 %v7824_v29 }
 0x273   : > { %7279 = vmatpush1.bf16.msra.mxu0 %v7278_v28  ;;  %7497 = vmatprep.subr.bf16.mxu1 %v7894_v61 }
 0x274   : > { %7281 = vmatprep.subr.bf16.mxu0 %v7280_v34  ;;  %v3152_v34 = vld [vmem:[#allocation2 + $0x8] sm:$0x3f] }
 0x276   : > { %7499 = vmatpush3.bf16.msra.mxu1 %v7825_v31  ;;  %v5171_v31 = vld [vmem:[%s9340_s4 + $0x208] sm:$0xff] (!%p5939_p6) }
 0x277   : > { %7283 = vmatpush1.bf16.msra.mxu0 %v7282_v56 }
 0x278   : > { %7285 = vmatprep.subr.bf16.mxu0 %v7284_v52  ;;  %v5173_v52 = vld [vmem:[%s9340_s4 + $0x218] sm:$0xff] (!%p5939_p6) }
 0x279   : > { %6223 = vmatmul.mubr.f32.vlgmr.msra.gmra.mrb[14].mxu1 %v8202_v22 }
 0x27a   : > { %4421 = vmatmul.mubr.f32.vlgmr.msra.gmra.mrb[2].mxu0 %v8133_v27  ;;  %v677_v27 = vld [vmem:[%s7975_s24 + $0x950] sm:$0xff] }
 0x27b   : > { %7287 = vmatpush1.bf16.msra.mxu0 %v7286_v33  ;;  %4491 = vmatprep.mubr.f32.mxu0 %v7893_v35  ;;  %v7302_v58 = vunpack.c.l.s8.bf16 %v677_v27  ;;  %v685_v35 = vld [vmem:[%s7975_s24 + $0x990] sm:$0xff]  ;;  %v7306_v47 = vunpack.c.h.s8.bf16 %v677_v27  ;;  %v7564_v33 = vpack.c.bf16 (!%p5939_p6), %v5173_v52, %v5171_v31 }
 0x27c   : > { %7289 = vmatprep.subr.bf16.mxu0 %v7288_v36  ;;  %v7308_v57 = vunpack.c.l.s8.bf16 %v685_v35  ;;  %v7312_v59 = vunpack.c.h.s8.bf16 %v685_v35  ;;  %v5172_v36 = vld [vmem:[%s9340_s4 + $0x210] sm:$0xff] (!%p5939_p6)  ;;  %v5183_v35 = vld [vmem:[%s9340_s4 + $0x268] sm:$0xff] (!%p5939_p6) }
 0x27f   : > { %7291 = vmatpush1.bf16.msra.mxu0 %v7290_v37  ;;  %v5177_v37 = vld [vmem:[%s9340_s4 + $0x238] sm:$0xff] (!%p5939_p6) }
 0x280   : > { %7293 = vmatprep.subr.bf16.mxu0 %v7292_v51  ;;  %v7566_v51 = vpack.c.bf16 (!%p5939_p6), %v5172_v36, %v5170_v32  ;;  %v7568_v40 = vpack.c.bf16 (!%p5939_p6), %v5177_v37, %v5175_v45  ;;  %v5203_v32 = vld [vmem:[%s9340_s4 + $0x308] sm:$0xff] (!%p5939_p6) }
 0x283   : > { %7295 = vmatpush1.bf16.msra.mxu0 %v7294_v1  ;;  %v5174_v1 = vld [vmem:[%s9340_s4 + $0x220] sm:$0xff] (!%p5939_p6) }
 0x284   : > { %7297 = vmatprep.subr.bf16.mxu0 %v7296_v41  ;;  %v5176_v41 = vld [vmem:[%s9340_s4 + $0x230] sm:$0xff] (!%p5939_p6) }
 0x287   : > { %7299 = vmatpush1.bf16.msra.mxu0 %v7298_v42  ;;  %v5181_v42 = vld [vmem:[%s9340_s4 + $0x258] sm:$0xff] (!%p5939_p6) }
 0x288   : > { %7301 = vmatprep.subr.bf16.mxu0 %v7300_v43  ;;  %v7570_v43 = vpack.c.bf16 (!%p5939_p6), %v5176_v41, %v5174_v1  ;;  %v7572_v27 = vpack.c.bf16 (!%p5939_p6), %v5181_v42, %v5179_v46  ;;  %v5202_v42 = vld [vmem:[%s9340_s4 + $0x300] sm:$0xff] (!%p5939_p6) }
 0x28b   : > { %7303 = vmatpush1.bf16.msra.mxu0 %v7302_v58  ;;  %v5178_v58 = vld [vmem:[%s9340_s4 + $0x240] sm:$0xff] (!%p5939_p6) }
 0x28c   : > { %7305 = vmatprep.subr.bf16.mxu0 %v7304_v44  ;;  %v4067_v49 = vpop.f32.mrb[2].mxu1  ;;  %v5180_v44 = vld [vmem:[%s9340_s4 + $0x250] sm:$0xff] (!%p5939_p6) }
 0x28d   : > { %v4069_v53 = vpop.f32.mrb[3].mxu1 }
 0x28e   : > { %v4926_v54 = vcombine.low %v4067_v49, %v4069_v53  ;;  %v5182_v49 = vld [vmem:[%s9340_s4 + $0x260] sm:$0xff] (!%p5939_p6)  ;;  %v5184_v53 = vld [vmem:[%s9340_s4 + $0x270] sm:$0xff] (!%p5939_p6) }
 0x28f   : > { %7307 = vmatpush1.bf16.msra.mxu0 %v7306_v47  ;;  %v5185_v47 = vld [vmem:[%s9340_s4 + $0x278] sm:$0xff] (!%p5939_p6) }
 0x290   : > { %7309 = vmatprep.subr.bf16.mxu0 %v7308_v57  ;;  %v4940_v61 = vrot.slane %v4926_v54, %v7998_v50  ;;  %v7574_v57 = vpack.c.bf16 (!%p5939_p6), %v5180_v44, %v5178_v58  ;;  %v7576_v48 = vpack.c.bf16 (!%p5939_p6), %v5185_v47, %v5183_v35  ;;  %v5187_v54 = vld [vmem:[%s9340_s4 + $0x288] sm:$0xff] (!%p5939_p6)  ;;  %v5209_v44 = vld [vmem:[%s9340_s4 + $0x338] sm:$0xff] (!%p5939_p6) }
 0x291   : > { %v5207_v58 = vld [vmem:[%s9340_s4 + $0x328] sm:$0xff] (!%p5939_p6) }
 0x292   : > { %v4941_v2 = vcombine.low %v4933_v60, %v4940_v61  ;;  %v5186_v61 = vld [vmem:[%s9340_s4 + $0x280] sm:$0xff] (!%p5939_p6) }
 0x293   : > { %7311 = vmatpush1.bf16.msra.mxu0 %v7310_v55  ;;  %v5189_v55 = vld [vmem:[%s9340_s4 + $0x298] sm:$0xff] (!%p5939_p6) }
 0x294   : > { %7313 = vmatprep.subr.bf16.mxu0 %v7312_v59  ;;  %v4960_v4 = vadd.f32 %v4941_v2, %v3151_v63  ;;  %v7578_v59 = vpack.c.bf16 (!%p5939_p6), %v5184_v53, %v5182_v49  ;;  %v7580_v60 = vpack.c.bf16 (!%p5939_p6), %v5189_v55, %v5187_v54  ;;  %v5188_v63 = vld [vmem:[%s9340_s4 + $0x290] sm:$0xff] (!%p5939_p6)  ;;  %v5191_v2 = vld [vmem:[%s9340_s4 + $0x2a8] sm:$0xff] (!%p5939_p6)  ;;  %v5109_v49 = vld [vmem:[%s9340_s4 + $0x18] sm:$0xff] (!%p5939_p6)  ;;  %v7600_v53 = vpack.c.bf16 (!%p5939_p6), %v5209_v44, %v5207_v58 }
 0x295   : > { %v5206_v54 = vld [vmem:[%s9340_s4 + $0x320] sm:$0xff] (!%p5939_p6)  ;;  %v5208_v55 = vld [vmem:[%s9340_s4 + $0x330] sm:$0xff] (!%p5939_p6)  ;;  %v5123_v58 = vld [vmem:[%s9340_s4 + $0x88] sm:$0xff] (!%p5939_p6) }
 0x296   : > { %4962 = vst [vmem:[#allocation2] sm:$0xff] %v4960_v4  ;;  %v7582_v4 = vpack.c.bf16 (!%p5939_p6), %v5188_v63, %v5186_v61  ;;  %v5106_v61 = vld [vmem:[%s9340_s4] sm:$0xff] (!%p5939_p6)  ;;  %v5211_v63 = vld [vmem:[%s9340_s4 + $0x348] sm:$0xff] (!%p5939_p6)  ;;  %v5125_v44 = vld [vmem:[%s9340_s4 + $0x98] sm:$0xff] (!%p5939_p6) }
 0x297   : > { %7315 = vmatpush1.bf16.msra.mxu0 %v7314_v3  ;;  %v5193_v3 = vld [vmem:[%s9340_s4 + $0x2b8] sm:$0xff] (!%p5939_p6) }
 0x298   : > { %7565 = vmatprep.subr.bf16.mxu0 (!%p5939_p6), %v7564_v33  ;;  %v5205_v33 = vld [vmem:[%s9340_s4 + $0x318] sm:$0xff] (!%p5939_p6) }
 0x299   : > { %v7596_v46 = vpack.c.bf16 (!%p5939_p6), %v5205_v33, %v5203_v32 }
 0x29a   : > { %4492 = vmatmul.mubr.f32.vlgmr.msra.gmra.mrb[2].mxu0 %v8202_v22 }
 0x29b   : > { %7567 = vmatpush1.bf16.msra.mxu0 (!%p5939_p6), %v7566_v51 }
 0x29c   : > { %7569 = vmatprep.subr.bf16.mxu0 (!%p5939_p6), %v7568_v40 }
 0x29d   : > { %v4968_v1 = vld [vmem:[#allocation2] sm:$0xff] (!%p5939_p6) }
 0x29f   : > { %7571 = vmatpush1.bf16.msra.mxu0 (!%p5939_p6), %v7570_v43  ;;  %v5204_v43 = vld [vmem:[%s9340_s4 + $0x310] sm:$0xff] (!%p5939_p6) }
 0x2a0   : > { %7573 = vmatprep.subr.bf16.mxu0 (!%p5939_p6), %v7572_v27 }
 0x2a3   : > { %7575 = vmatpush1.bf16.msra.mxu0 (!%p5939_p6), %v7574_v57  ;;  %v7598_v57 = vpack.c.bf16 (!%p5939_p6), %v5204_v43, %v5202_v42  ;;  %v5120_v42 = vld [vmem:[%s9340_s4 + $0x70] sm:$0xff] (!%p5939_p6) }
 0x2a4   : > { %7577 = vmatprep.subr.bf16.mxu0 (!%p5939_p6), %v7576_v48  ;;  %v5107_v48 = vld [vmem:[%s9340_s4 + $0x8] sm:$0xff] (!%p5939_p6) }
 0x2a7   : > { %7579 = vmatpush1.bf16.msra.mxu0 (!%p5939_p6), %v7578_v59 }
 0x2a8   : > { %7581 = vmatprep.subr.bf16.mxu0 (!%p5939_p6), %v7580_v60  ;;  %v7500_v60 = vpack.c.bf16 (!%p5939_p6), %v5109_v49, %v5107_v48  ;;  %v5218_v49 = vld [vmem:[%s9340_s4 + $0x380] sm:$0xff] (!%p5939_p6) }
 0x2aa   : > { %7501 = vmatprep.subr.bf16.mxu1 (!%p5939_p6), %v7500_v60  ;;  %v5122_v60 = vld [vmem:[%s9340_s4 + $0x80] sm:$0xff] (!%p5939_p6) }
 0x2ab   : > { %7583 = vmatpush1.bf16.msra.mxu0 (!%p5939_p6), %v7582_v4 }
 0x2ac   : > { %v5978_v5 = vpop.f32.mrb[4].mxu1 }
 0x2ad   : > { %v5979_v9 = vpop.f32.mrb[5].mxu1 }
 0x2ae   : > { %v5980_v6 = vadd.f32 %v5979_v9, %v5978_v5  ;;  %v7584_v5 = vpack.c.bf16 (!%p5939_p6), %v5193_v3, %v5191_v2  ;;  %v5190_v9 = vld [vmem:[%s9340_s4 + $0x2a0] sm:$0xff] (!%p5939_p6)  ;;  %v5213_v2 = vld [vmem:[%s9340_s4 + $0x358] sm:$0xff] (!%p5939_p6)  ;;  %v5108_v3 = vld [vmem:[%s9340_s4 + $0x10] sm:$0xff] (!%p5939_p6) }
 0x2b0   : > { %7585 = vmatprep.subr.bf16.mxu0 (!%p5939_p6), %v7584_v5  ;;  %v7502_v5 = vpack.c.bf16 (!%p5939_p6), %v5108_v3, %v5106_v61  ;;  %v5124_v61 = vld [vmem:[%s9340_s4 + $0x90] sm:$0xff] (!%p5939_p6)  ;;  %v5127_v3 = vld [vmem:[%s9340_s4 + $0xa8] sm:$0xff] (!%p5939_p6) }
 0x2b2   : > { %7503 = vmatpush1.bf16.msra.mxu1 (!%p5939_p6), %v7502_v5 }
 0x2cc   : > { %v6013_v10 = vpop.f32.mrb[6].mxu1 }
 0x2cd   : > { %v6014_v7 = vpop.f32.mrb[7].mxu1 }
 0x2ce   : > { %v6015_v11 = vadd.f32 %v6014_v7, %v6013_v10  ;;  %v5195_v10 = vld [vmem:[%s9340_s4 + $0x2c8] sm:$0xff] (!%p5939_p6)  ;;  %v5197_v7 = vld [vmem:[%s9340_s4 + $0x2d8] sm:$0xff] (!%p5939_p6) }
 0x2d0   : > { %v4635_v62 = vadd.f32 %v6015_v11, %v5980_v6  ;;  %v5192_v6 = vld [vmem:[%s9340_s4 + $0x2b0] sm:$0xff] (!%p5939_p6)  ;;  %v8489_v11 = vsub.s32 (!%p5939_p6), 0, %v7991_v39 }
 0x2ec   : > { %v6048_v0 = vpop.f32.mrb[8].mxu1 }
 0x2ed   : > { %v6049_v8 = vpop.f32.mrb[9].mxu1 }
 0x2ee   : > { %v6050_v12 = vadd.f32 %v6049_v8, %v6048_v0  ;;  %v4982_v0 = vsub.s32 (!%p5939_p6), 2, %v7991_v39  ;;  %v4986_v8 = vsub.s32 (!%p5939_p6), 3, %v7991_v39 }
 0x2f0   : > { %v4705_v13 = vadd.f32 %v6050_v12, %v4635_v62  ;;  %v8492_v62 = vsub.s32 (!%p5939_p6), 1, %v7991_v39  ;;  %v7586_v12 = vpack.c.bf16 (!%p5939_p6), %v5192_v6, %v5190_v9  ;;  %v5111_v9 = vld [vmem:[%s9340_s4 + $0x28] sm:$0xff] (!%p5939_p6)  ;;  %v5113_v6 = vld [vmem:[%s9340_s4 + $0x38] sm:$0xff] (!%p5939_p6) }
 0x2f2   : > { %7587 = vmatpush1.bf16.msra.mxu0 (!%p5939_p6), %v7586_v12  ;;  %v4990_v12 = vsub.s32 (!%p5939_p6), 4, %v7991_v39 }
 0x30c   : > { %v6083_v14 = vpop.f32.mrb[10].mxu1 }
 0x30d   : > { %v6084_v15 = vpop.f32.mrb[11].mxu1 }
 0x30e   : > { %v6085_v16 = vadd.f32 %v6084_v15, %v6083_v14  ;;  %v5194_v14 = vld [vmem:[%s9340_s4 + $0x2c0] sm:$0xff] (!%p5939_p6)  ;;  %v5196_v15 = vld [vmem:[%s9340_s4 + $0x2d0] sm:$0xff] (!%p5939_p6) }
 0x310   : > { %v4775_v17 = vadd.f32 %v6085_v16, %v4705_v13  ;;  %v7588_v13 = vpack.c.bf16 (!%p5939_p6), %v5197_v7, %v5195_v10  ;;  %v8505_v16 = vld [vmem:[%s9338_s2] sm:$0xff] (!%p5939_p6)  ;;  %v7602_v10 = vpack.c.bf16 (!%p5939_p6), %v5208_v55, %v5206_v54  ;;  %v7504_v7 = vpack.c.bf16 (!%p5939_p6), %v5113_v6, %v5111_v9  ;;  %v5223_v54 = vld [vmem:[%s9340_s4 + $0x3a8] sm:$0xff] (!%p5939_p6) }
 0x312   : > { %7589 = vmatprep.subr.bf16.mxu0 (!%p5939_p6), %v7588_v13  ;;  %v4994_v13 = vsub.s32 (!%p5939_p6), 5, %v7991_v39  ;;  %7505 = vmatprep.subr.bf16.mxu1 (!%p5939_p6), %v7504_v7  ;;  %v5224_v7 = vld [vmem:[%s9340_s4 + $0x3b0] sm:$0xff] (!%p5939_p6) }
 0x314   : > { %v4995_v32 = vrot.slane (!%p5939_p6), %v8505_v16, %v4994_v13 }
 0x32c   : > { %v6118_v18 = vpop.f32.mrb[12].mxu1 }
 0x32d   : > { %v6119_v19 = vpop.f32.mrb[13].mxu1 }
 0x32e   : > { %v6120_v21 = vadd.f32 %v6119_v19, %v6118_v18  ;;  %v5201_v18 = vld [vmem:[%s9340_s4 + $0x2f8] sm:$0xff] (!%p5939_p6)  ;;  %v4975_v19 = vrot.slane (!%p5939_p6), %v8505_v16, %v8489_v11 }
 0x330   : > { %v4845_v23 = vadd.f32 %v6120_v21, %v4775_v17  ;;  %v5199_v17 = vld [vmem:[%s9340_s4 + $0x2e8] sm:$0xff] (!%p5939_p6)  ;;  %v4979_v21 = vrot.slane (!%p5939_p6), %v8505_v16, %v8492_v62 }
 0x34c   : > { %v4914_v22 = vpop.f32.mrb[14].mxu1 }
 0x34d   : > { %v4915_v38 = vadd.f32 %v4914_v22, %v4845_v23  ;;  %v6224_v24 = vpop.f32.mrb[15].mxu1  ;;  %v4983_v23 = vrot.slane (!%p5939_p6), %v8505_v16, %v4982_v0  ;;  %v8521_v22 = vld [vmem:[%s9339_s3] sm:$0xff] (!%p5939_p6) }
 0x34e   : > { %v5042_v24 = vrot.slane (!%p5939_p6), %v8521_v22, %v8489_v11  ;;  %v5058_v43 = vrot.slane (!%p5939_p6), %v8521_v22, %v4990_v12 }
 0x34f   : > { %v4956_v28 = vrot.slane %v4915_v38, %v7998_v50  ;;  %v4987_v38 = vrot.slane (!%p5939_p6), %v8505_v16, %v4986_v8 }
 0x351   : > { %v5001_v31 = vcombine.low (!%p5939_p6), %v4983_v23, %v4987_v38  ;;  %v5215_v23 = vld [vmem:[%s9340_s4 + $0x368] sm:$0xff] (!%p5939_p6)  ;;  %v5217_v38 = vld [vmem:[%s9340_s4 + $0x378] sm:$0xff] (!%p5939_p6) }
 0x353   : > { %v5015_v37 = vrot.slane (!%p5939_p6), %v5001_v31, %v7998_v50  ;;  %v5121_v31 = vld [vmem:[%s9340_s4 + $0x78] sm:$0xff] (!%p5939_p6) }
 0x36d   : > { %v4493_v20 = vpop.f32.mrb[2].mxu0 }
 0x36e   : > { %v4495_v25 = vpop.f32.mrb[3].mxu0 }
 0x36f   : > { %v4942_v26 = vcombine.low %v4493_v20, %v4495_v25  ;;  %v5046_v20 = vrot.slane (!%p5939_p6), %v8521_v22, %v8492_v62  ;;  %v5050_v25 = vrot.slane (!%p5939_p6), %v8521_v22, %v4982_v0  ;;  %v5110_v0 = vld [vmem:[%s9340_s4 + $0x20] sm:$0xff] (!%p5939_p6) }
 0x371   : > { %v4949_v29 = vrot.slane %v4942_v26, %v7998_v50  ;;  %4967 = sbr.rel (%p5939_p6) target bundleno = 1673 (0x689), region = 68  ;;  %v7590_v26 = vpack.c.bf16 (!%p5939_p6), %v5196_v15, %v5194_v14  ;;  %v5067_v52 = vcombine.low (!%p5939_p6), %v5042_v24, %v5046_v20  ;;  %v7604_v14 = vpack.c.bf16 (!%p5939_p6), %v5213_v2, %v5211_v63  ;;  %v5210_v15 = vld [vmem:[%s9340_s4 + $0x340] sm:$0xff] (!%p5939_p6)  ;;  %v5117_v24 = vld [vmem:[%s9340_s4 + $0x58] sm:$0xff] (!%p5939_p6) }
 0x373   : > { %v4957_v30 = vcombine.low %v4949_v29, %v4956_v28  ;;  %v5000_v28 = vcombine.low (!%p5939_p6), %v4975_v19, %v4979_v21  ;;  %v5054_v29 = vrot.slane (!%p5939_p6), %v8521_v22, %v4986_v8  ;;  %v5075_v51 = vrot.slane (!%p5939_p6), %v5067_v52, %v7998_v50  ;;  %7591 = vmatpush1.bf16.msra.mxu0 (!%p5939_p6), %v7590_v26  ;;  %v5112_v8 = vld [vmem:[%s9340_s4 + $0x30] sm:$0xff] (!%p5939_p6)  ;;  %v5115_v21 = vld [vmem:[%s9340_s4 + $0x48] sm:$0xff] (!%p5939_p6) }
 0x374   : > { %v7506_v19 = vpack.c.bf16 (!%p5939_p6), %v5112_v8, %v5110_v0  ;;  %v7508_v26 = vpack.c.bf16 (!%p5939_p6), %v5117_v24, %v5115_v21  ;;  %v4991_v52 = vrot.slane (!%p5939_p6), %v8505_v16, %v4990_v12  ;;  %v5227_v0 = vld [vmem:[%s9340_s4 + $0x3c8] sm:$0xff] (!%p5939_p6)  ;;  %v7518_v8 = vpack.c.bf16 (!%p5939_p6), %v5124_v61, %v5122_v60  ;;  %v5229_v12 = vld [vmem:[%s9340_s4 + $0x3d8] sm:$0xff] (!%p5939_p6)  ;;  %v5138_v61 = vld [vmem:[%s9340_s4 + $0x100] sm:$0xff] (!%p5939_p6) }
 0x375   : > { %v4961_v56 = vadd.f32 %v4957_v30, %v3152_v34  ;;  %v7592_v34 = vpack.c.bf16 (!%p5939_p6), %v5201_v18, %v5199_v17  ;;  %v5198_v30 = vld [vmem:[%s9340_s4 + $0x2e0] sm:$0xff] (!%p5939_p6)  ;;  %v5008_v36 = vrot.slane (!%p5939_p6), %v5000_v28, %v7998_v50  ;;  %v5068_v45 = vcombine.low (!%p5939_p6), %v5050_v25, %v5054_v29  ;;  %v5212_v17 = vld [vmem:[%s9340_s4 + $0x350] sm:$0xff] (!%p5939_p6)  ;;  %v5133_v21 = vld [vmem:[%s9340_s4 + $0xd8] sm:$0xff] (!%p5939_p6) }
 0x376   : > { %v5114_v28 = vld [vmem:[%s9340_s4 + $0x40] sm:$0xff] (!%p5939_p6)  ;;  %v5116_v29 = vld [vmem:[%s9340_s4 + $0x50] sm:$0xff] (!%p5939_p6)  ;;  %7507 = vmatpush1.bf16.msra.mxu1 (!%p5939_p6), %v7506_v19  ;;  %v5131_v19 = vld [vmem:[%s9340_s4 + $0xc8] sm:$0xff] (!%p5939_p6)  ;;  %v7620_v24 = vpack.c.bf16 (!%p5939_p6), %v5229_v12, %v5227_v0 }
 0x377   : > { %4963 = vst [vmem:[#allocation2 + $0x8] sm:$0x3f] %v4961_v56  ;;  %v5200_v56 = vld [vmem:[%s9340_s4 + $0x2f0] sm:$0xff] (!%p5939_p6)  ;;  %v5082_v41 = vrot.slane (!%p5939_p6), %v5068_v45, %v7998_v50  ;;  %7593 = vmatprep.subr.bf16.mxu0 (!%p5939_p6), %v7592_v34  ;;  %v5016_v27 = vcombine.low (!%p5939_p6), %v5008_v36, %v5015_v37  ;;  %v4998_v34 = vsub.s32 (!%p5939_p6), 6, %v7991_v39  ;;  %v7608_v36 = vpack.c.bf16 (!%p5939_p6), %v5217_v38, %v5215_v23  ;;  %v5214_v39 = vld [vmem:[%s9340_s4 + $0x360] sm:$0xff] (!%p5939_p6)  ;;  %v5219_v37 = vld [vmem:[%s9340_s4 + $0x388] sm:$0xff] (!%p5939_p6) }
 0x378   : > { %v7594_v40 = vpack.c.bf16 %v5200_v56, %v5198_v30  ;;  %v7606_v30 = vpack.c.bf16 %v5212_v17, %v5210_v15  ;;  %v5119_v56 = vld [vmem:[%s9340_s4 + $0x68] sm:$0xff]  ;;  %v5216_v45 = vld [vmem:[%s9340_s4 + $0x370] sm:$0xff]  ;;  %7509 = vmatprep.subr.bf16.mxu1 %v7508_v26  ;;  %v5226_v26 = vld [vmem:[%s9340_s4 + $0x3c0] sm:$0xff] }
 0x379   : > { %v5083_v35 = vcombine.low %v5075_v51, %v5082_v41  ;;  %v5035_v47 = vmul.f32 %v5016_v27, %v4968_v1  ;;  %v5221_v1 = vld [vmem:[%s9340_s4 + $0x398] sm:$0xff]  ;;  %v7512_v41 = vpack.c.bf16 %v5121_v31, %v5119_v56  ;;  %v5062_v27 = vrot.slane %v8521_v22, %v4994_v13  ;;  %v5128_v15 = vld [vmem:[%s9340_s4 + $0xb0] sm:$0xff]  ;;  %v5130_v31 = vld [vmem:[%s9340_s4 + $0xc0] sm:$0xff] }
 0x37a   : > { %7595 = vmatpush1.bf16.msra.mxu0 %v7594_v40  ;;  %v7510_v40 = vpack.c.bf16 %v5116_v29, %v5114_v28  ;;  %v7612_v48 = vpack.c.bf16 %v5221_v1, %v5219_v37  ;;  %v5066_v63 = vrot.slane %v8521_v22, %v4998_v34  ;;  %v5222_v22 = vld [vmem:[%s9340_s4 + $0x3a0] sm:$0xff]  ;;  %v5228_v28 = vld [vmem:[%s9340_s4 + $0x3d0] sm:$0xff]  ;;  %v5231_v29 = vld [vmem:[%s9340_s4 + $0x3e8] sm:$0xff]  ;;  %v7524_v56 = vpack.c.bf16 %v5133_v21, %v5131_v19 }
 0x37b   : > { %7597 = vmatprep.subr.bf16.mxu0 %v7596_v46  ;;  %v5102_v59 = vadd.f32 %v5083_v35, %v5035_v47  ;;  %v5118_v46 = vld [vmem:[%s9340_s4 + $0x60] sm:$0xff]  ;;  %v7610_v35 = vpack.c.bf16 %v5216_v45, %v5214_v39  ;;  %v4999_v47 = vrot.slane %v8505_v16, %v4998_v34  ;;  %v5225_v16 = vld [vmem:[%s9340_s4 + $0x3b8] sm:$0xff]  ;;  %v5084_v2 = vcombine.low %v5058_v43, %v5062_v27  ;;  %v5232_v1 = vld [vmem:[%s9340_s4 + $0x3f0] sm:$0xff] }
 0x37c   : > { %7511 = vmatpush1.bf16.msra.mxu1 %v7510_v40  ;;  %v7514_v55 = vpack.c.bf16 %v5120_v42, %v5118_v46  ;;  %v7618_v23 = vpack.c.bf16 %v5224_v7, %v5222_v22  ;;  %v7622_v45 = vpack.c.bf16 %v5228_v28, %v5226_v26  ;;  %v5230_v40 = vld [vmem:[%s9340_s4 + $0x3e0] sm:$0xff]  ;;  %v5237_v42 = vld [vmem:[%s9340_s4 + $0x418] sm:$0xff]  ;;  %v5240_v22 = vld [vmem:[%s9340_s4 + $0x430] sm:$0xff] }
 0x37d   : > { %v5104_v4 = vmax.f32 %v5102_v59, 0.0  ;;  %7513 = vmatprep.subr.bf16.mxu1 %v7512_v41  ;;  %v7516_v59 = vpack.c.bf16 %v5125_v44, %v5123_v58  ;;  %v5031_v6 = vrot.slane %v4999_v47, %v7998_v50  ;;  %v5091_v17 = vrot.slane %v5084_v2, %v7998_v50  ;;  %v5235_v41 = vld [vmem:[%s9340_s4 + $0x408] sm:$0xff]  ;;  %v5134_v27 = vld [vmem:[%s9340_s4 + $0xe0] sm:$0xff]  ;;  %v5136_v58 = vld [vmem:[%s9340_s4 + $0xf0] sm:$0xff] }
 0x37e   : > { %7599 = vmatpush1.bf16.msra.mxu0 %v7598_v57  ;;  %v5017_v57 = vcombine.low %v4991_v52, %v4995_v32  ;;  %v5132_v52 = vld [vmem:[%s9340_s4 + $0xd0] sm:$0xff]  ;;  %v4969_v39 = vld [vmem:[#allocation2 + $0x8] sm:$0x3f]  ;;  %v5141_v47 = vld [vmem:[%s9340_s4 + $0x118] sm:$0xff] }
 0x37f   : > { %7601 = vmatprep.subr.bf16.mxu0 %v7600_v53  ;;  %v5344_v18 = vcombine.high %v5104_v4, %v5104_v4  ;;  %v8615_v20 = vrot.slane %v5104_v4, %v7998_v50  ;;  %v5220_v53 = vld [vmem:[%s9340_s4 + $0x390] sm:$0xff]  ;;  %v5129_v4 = vld [vmem:[%s9340_s4 + $0xb8] sm:$0xff]  ;;  %v7526_v46 = vpack.c.bf16 %v5132_v52, %v5130_v31  ;;  %v5243_v7 = vld [vmem:[%s9340_s4 + $0x448] sm:$0xff] }
 0x380   : > { %v7614_v5 = vpack.c.bf16 %v5220_v53, %v5218_v49  ;;  %v5024_v9 = vrot.slane %v5017_v57, %v7998_v50  ;;  %7515 = vmatpush1.bf16.msra.mxu1 %v7514_v55  ;;  %v7520_v13 = vpack.c.bf16 %v5129_v4, %v5127_v3  ;;  %v7626_v57 = vpack.c.bf16 %v5232_v1, %v5230_v40  ;;  %v5234_v53 = vld [vmem:[%s9340_s4 + $0x400] sm:$0xff]  ;;  %v5239_v55 = vld [vmem:[%s9340_s4 + $0x428] sm:$0xff]  ;;  %v5145_v4 = vld [vmem:[%s9340_s4 + $0x138] sm:$0xff] }
 0x381   : > { %v8618_v25 = vrot.slane %v5344_v18, %v7998_v50  ;;  %v5359_v33 = vcombine.high %v8615_v20, %v8615_v20  ;;  %7517 = vmatprep.subr.bf16.mxu1 %v7516_v59  ;;  %v5098_v18 = vrot.slane %v5066_v63, %v7998_v50  ;;  %v7628_v49 = vpack.c.bf16 %v5237_v42, %v5235_v41  ;;  %v5241_v59 = vld [vmem:[%s9340_s4 + $0x438] sm:$0xff]  ;;  %v5140_v63 = vld [vmem:[%s9340_s4 + $0x110] sm:$0xff]  ;;  %v5143_v3 = vld [vmem:[%s9340_s4 + $0x128] sm:$0xff] }
 0x382   : > { %7603 = vmatpush1.bf16.msra.mxu0 %v7602_v10  ;;  %v7616_v10 = vpack.c.bf16 %v5225_v16, %v5223_v54  ;;  %v5032_v38 = vcombine.low %v5024_v9, %v5031_v6  ;;  %v5236_v54 = vld [vmem:[%s9340_s4 + $0x410] sm:$0xff]  ;;  %v7530_v16 = vpack.c.bf16 %v5136_v58, %v5134_v27  ;;  %v7632_v6 = vpack.c.bf16 %v5241_v59, %v5239_v55  ;;  %v5242_v21 = vld [vmem:[%s9340_s4 + $0x440] sm:$0xff]  ;;  %v5155_v40 = vld [vmem:[%s9340_s4 + $0x188] sm:$0xff] }
 0x383   : > { %7605 = vmatprep.subr.bf16.mxu0 %v7604_v14  ;;  %v5360_v51 = vcombine.high %v8618_v25, %v8618_v25  ;;  %5448 = vmatprep.mubr.f32.mxu1 %v5359_v33  ;;  %v5126_v14 = vld [vmem:[%s9340_s4 + $0xa0] sm:$0xff]  ;;  %v5099_v32 = vcombine.low %v5091_v17, %v5098_v18  ;;  %v5135_v33 = vld [vmem:[%s9340_s4 + $0xe8] sm:$0xff]  ;;  %v7534_v0 = vpack.c.bf16 %v5140_v63, %v5138_v61  ;;  %v5149_v17 = vld [vmem:[%s9340_s4 + $0x158] sm:$0xff] }
 0x384   : > { %7519 = vmatpush1.bf16.msra.mxu1 %v7518_v8  ;;  %v7522_v34 = vpack.c.bf16 %v5128_v15, %v5126_v14  ;;  %v5036_v37 = vmul.f32 %v5032_v38, %v4969_v39  ;;  %v5245_v8 = vld [vmem:[%s9340_s4 + $0x458] sm:$0xff]  ;;  %v7536_v12 = vpack.c.bf16 %v5145_v4, %v5143_v3  ;;  %v5144_v14 = vld [vmem:[%s9340_s4 + $0x130] sm:$0xff]  ;;  %v5147_v15 = vld [vmem:[%s9340_s4 + $0x148] sm:$0xff] }
 0x385   : > { %5519 = vmatprep.mubr.f32.mxu0 %v5360_v51  ;;  %7521 = vmatprep.subr.bf16.mxu1 %v7520_v13  ;;  %v5142_v13 = vld [vmem:[%s9340_s4 + $0x120] sm:$0xff]  ;;  %v7636_v19 = vpack.c.bf16 %v5245_v8, %v5243_v7  ;;  %v7540_v26 = vpack.c.bf16 %v5149_v17, %v5147_v15  ;;  %v5253_v39 = vld [vmem:[%s9340_s4 + $0x498] sm:$0xff]  ;;  %v5255_v27 = vld [vmem:[%s9340_s4 + $0x4a8] sm:$0xff] }
 0x386   : > { %7607 = vmatpush1.bf16.msra.mxu0 %v7606_v30  ;;  %v5233_v30 = vld [vmem:[%s9340_s4 + $0x3f8] sm:$0xff]  ;;  %v5103_v44 = vadd.f32 %v5099_v32, %v5036_v37  ;;  %v7538_v38 = vpack.c.bf16 %v5144_v14, %v5142_v13  ;;  %v5146_v28 = vld [vmem:[%s9340_s4 + $0x140] sm:$0xff]  ;;  %v5248_v32 = vld [vmem:[%s9340_s4 + $0x470] sm:$0xff] }
 0x387   : > { %7609 = vmatprep.subr.bf16.mxu0 %v7608_v36  ;;  %v5137_v36 = vld [vmem:[%s9340_s4 + $0xf8] sm:$0xff]  ;;  %v7624_v51 = vpack.c.bf16 %v5233_v30, %v5231_v29  ;;  %v5148_v29 = vld [vmem:[%s9340_s4 + $0x150] sm:$0xff]  ;;  %v5246_v52 = vld [vmem:[%s9340_s4 + $0x460] sm:$0xff] }
 0x388   : > { %7523 = vmatpush1.bf16.msra.mxu1 %v7522_v34  ;;  %v7528_v43 = vpack.c.bf16 %v5137_v36, %v5135_v33  ;;  %v5151_v34 = vld [vmem:[%s9340_s4 + $0x168] sm:$0xff]  ;;  %v5153_v30 = vld [vmem:[%s9340_s4 + $0x178] sm:$0xff]  ;;  %v7542_v36 = vpack.c.bf16 %v5148_v29, %v5146_v28  ;;  %v5150_v37 = vld [vmem:[%s9340_s4 + $0x160] sm:$0xff]  ;;  %v7642_v41 = vpack.c.bf16 %v5248_v32, %v5246_v52 }
 0x389   : > { %7525 = vmatprep.subr.bf16.mxu1 %v7524_v56  ;;  %v5251_v33 = vld [vmem:[%s9340_s4 + $0x488] sm:$0xff]  ;;  %v5157_v1 = vld [vmem:[%s9340_s4 + $0x198] sm:$0xff]  ;;  %v5250_v42 = vld [vmem:[%s9340_s4 + $0x480] sm:$0xff] }
 0x38a   : > { %7611 = vmatpush1.bf16.msra.mxu0 %v7610_v35  ;;  %v5139_v35 = vld [vmem:[%s9340_s4 + $0x108] sm:$0xff]  ;;  %v5256_v59 = vld [vmem:[%s9340_s4 + $0x4b0] sm:$0xff]  ;;  %v5261_v63 = vld [vmem:[%s9340_s4 + $0x4d8] sm:$0xff] }
 0x38b   : > { %7613 = vmatprep.subr.bf16.mxu0 %v7612_v48  ;;  %v8767_v48 = vmax.f32 %v5103_v44, 0.0  ;;  %v7532_v60 = vpack.c.bf16 %v5141_v47, %v5139_v35  ;;  %v5257_v44 = vld [vmem:[%s9340_s4 + $0x4b8] sm:$0xff]  ;;  %v7548_v35 = vpack.c.bf16 %v5157_v1, %v5155_v40  ;;  %v5154_v47 = vld [vmem:[%s9340_s4 + $0x180] sm:$0xff]  ;;  %v5263_v8 = vld [vmem:[%s9340_s4 + $0x4e8] sm:$0xff] }
 0x38c   : > { %7527 = vmatpush1.bf16.msra.mxu1 %v7526_v46  ;;  %v7644_v46 = vpack.c.bf16 %v5253_v39, %v5251_v33  ;;  %v7648_v55 = vpack.c.bf16 %v5257_v44, %v5255_v27  ;;  %v5158_v4 = vld [vmem:[%s9340_s4 + $0x1a0] sm:$0xff]  ;;  %v5265_v13 = vld [vmem:[%s9340_s4 + $0x4f8] sm:$0xff]  ;;  %v5164_v17 = vld [vmem:[%s9340_s4 + $0x1d0] sm:$0xff] }
 0x38d   : > { %7529 = vmatprep.subr.bf16.mxu1 %v7528_v43  ;;  %v8789_v2 = vrot.slane %v8767_v48, %v7998_v50  ;;  %v5252_v43 = vld [vmem:[%s9340_s4 + $0x490] sm:$0xff]  ;;  %v5258_v7 = vld [vmem:[%s9340_s4 + $0x4c0] sm:$0xff]  ;;  %v5269_v28 = vld [vmem:[%s9340_s4 + $0x518] sm:$0xff] }
 0x38e   : > { %7615 = vmatpush1.bf16.msra.mxu0 %v7614_v5  ;;  %v7630_v5 = vpack.c.bf16 %v5236_v54, %v5234_v53  ;;  %v5161_v53 = vld [vmem:[%s9340_s4 + $0x1b8] sm:$0xff]  ;;  %v7646_v54 = vpack.c.bf16 %v5252_v43, %v5250_v42  ;;  %v5162_v15 = vld [vmem:[%s9340_s4 + $0x1c0] sm:$0xff]  ;;  %v5271_v39 = vld [vmem:[%s9340_s4 + $0x528] sm:$0xff] }
 0x38f   : > { %7617 = vmatprep.subr.bf16.mxu0 %v7616_v10  ;;  %v5376_v9 = vcombine.high %v8789_v2, %v8789_v2  ;;  %v5238_v10 = vld [vmem:[%s9340_s4 + $0x420] sm:$0xff]  ;;  %v5671_v1 = vld [vmem:[%s9342_s6 + $0x8] sm:$0xff] }
 0x390   : > { %7531 = vmatpush1.bf16.msra.mxu1 %v7530_v16  ;;  %v7634_v18 = vpack.c.bf16 %v5240_v22, %v5238_v10  ;;  %v5254_v16 = vld [vmem:[%s9340_s4 + $0x4a0] sm:$0xff]  ;;  %v5275_v44 = vld [vmem:[%s9340_s4 + $0x548] sm:$0xff] }
 0x391   : > { %7533 = vmatprep.subr.bf16.mxu1 %v7532_v60  ;;  %v5259_v60 = vld [vmem:[%s9340_s4 + $0x4c8] sm:$0xff]  ;;  %v7650_v10 = vpack.c.bf16 %v5256_v59, %v5254_v16  ;;  %v5266_v33 = vld [vmem:[%s9340_s4 + $0x500] sm:$0xff] }
 0x392   : > { %7619 = vmatpush1.bf16.msra.mxu0 %v7618_v23  ;;  %v5247_v23 = vld [vmem:[%s9340_s4 + $0x468] sm:$0xff]  ;;  %v7652_v22 = vpack.c.bf16 %v5261_v63, %v5259_v60  ;;  %v5670_v40 = vld [vmem:[%s9342_s6] sm:$0xff] }
 0x393   : > { %7621 = vmatprep.subr.bf16.mxu0 %v7620_v24  ;;  %v5249_v24 = vld [vmem:[%s9340_s4 + $0x478] sm:$0xff]  ;;  %v5270_v27 = vld [vmem:[%s9340_s4 + $0x520] sm:$0xff]  ;;  %v5279_v63 = vld [vmem:[%s9340_s4 + $0x568] sm:$0xff] }
 0x394   : > { %7535 = vmatpush1.bf16.msra.mxu1 %v7534_v0  ;;  %v7640_v31 = vpack.c.bf16 %v5249_v24, %v5247_v23  ;;  %v5260_v0 = vld [vmem:[%s9340_s4 + $0x4d0] sm:$0xff]  ;;  %v5262_v23 = vld [vmem:[%s9340_s4 + $0x4e0] sm:$0xff]  ;;  %v5267_v24 = vld [vmem:[%s9340_s4 + $0x508] sm:$0xff] }
 0x395   : > { %7537 = vmatprep.subr.bf16.mxu1 %v7536_v12  ;;  %v7660_v32 = vpack.c.bf16 %v5269_v28, %v5267_v24  ;;  %v5274_v60 = vld [vmem:[%s9340_s4 + $0x540] sm:$0xff]  ;;  %v5284_v24 = vld [vmem:[%s9340_s4 + $0x590] sm:$0xff] }
 0x396   : > { %7623 = vmatpush1.bf16.msra.mxu0 %v7622_v45  ;;  %v7544_v45 = vpack.c.bf16 %v5153_v30, %v5151_v34  ;;  %v5166_v34 = vld [vmem:[%s9340_s4 + $0x1e0] sm:$0xff]  ;;  %v5168_v30 = vld [vmem:[%s9340_s4 + $0x1f0] sm:$0xff] }
 0x397   : > { %7625 = vmatprep.subr.bf16.mxu0 %v7624_v51  ;;  %v5152_v51 = vld [vmem:[%s9340_s4 + $0x170] sm:$0xff] }
 0x398   : > { %7539 = vmatpush1.bf16.msra.mxu1 %v7538_v38  ;;  %v7546_v58 = vpack.c.bf16 %v5152_v51, %v5150_v37  ;;  %v5264_v38 = vld [vmem:[%s9340_s4 + $0x4f0] sm:$0xff]  ;;  %v5273_v37 = vld [vmem:[%s9340_s4 + $0x538] sm:$0xff] }
 0x399   : > { %7541 = vmatprep.subr.bf16.mxu1 %v7540_v26  ;;  %v7558_v26 = vpack.c.bf16 %v5164_v17, %v5162_v15  ;;  %v7658_v52 = vpack.c.bf16 %v5264_v38, %v5262_v23  ;;  %v7664_v43 = vpack.c.bf16 %v5273_v37, %v5271_v39  ;;  %v5676_v17 = vld [vmem:[%s9342_s6 + $0x30] sm:$0xff]  ;;  %v5282_v38 = vld [vmem:[%s9340_s4 + $0x580] sm:$0xff] }
 0x39a   : > { %7627 = vmatpush1.bf16.msra.mxu0 %v7626_v57  ;;  %v5156_v57 = vld [vmem:[%s9340_s4 + $0x190] sm:$0xff] }
 0x39b   : > { %7629 = vmatprep.subr.bf16.mxu0 %v7628_v49  ;;  %v5159_v49 = vld [vmem:[%s9340_s4 + $0x1a8] sm:$0xff]  ;;  %v7550_v61 = vpack.c.bf16 %v5156_v57, %v5154_v47  ;;  %v5277_v47 = vld [vmem:[%s9340_s4 + $0x558] sm:$0xff]  ;;  %v5288_v39 = vld [vmem:[%s9340_s4 + $0x5b0] sm:$0xff] }
 0x39c   : > { %7543 = vmatpush1.bf16.msra.mxu1 %v7542_v36  ;;  %v7552_v3 = vpack.c.bf16 %v5161_v53, %v5159_v49  ;;  %v5268_v36 = vld [vmem:[%s9340_s4 + $0x510] sm:$0xff]  ;;  %v5673_v53 = vld [vmem:[%s9342_s6 + $0x18] sm:$0xff]  ;;  %v7668_v59 = vpack.c.bf16 %v5277_v47, %v5275_v44  ;;  %v5295_v44 = vld [vmem:[%s9340_s4 + $0x5e8] sm:$0xff] }
 0x39d   : > { %5520 = vmatmul.mubr.f32.vlgmr.msra.gmra.mrb[0].mxu0 %v8618_v25  ;;  %v5244_v25 = vld [vmem:[%s9340_s4 + $0x450] sm:$0xff]  ;;  %7545 = vmatprep.subr.bf16.mxu1 %v7544_v45  ;;  %v7562_v45 = vpack.c.bf16 %v5168_v30, %v5166_v34  ;;  %v7662_v42 = vpack.c.bf16 %v5268_v36, %v5266_v33  ;;  %v5678_v30 = vld [vmem:[%s9342_s6 + $0x40] sm:$0xff] }
 0x39e   : > { %7631 = vmatpush1.bf16.msra.mxu0 %v7630_v5  ;;  %5590 = vmatprep.mubr.f32.mxu0 %v5376_v9  ;;  %v7638_v56 = vpack.c.bf16 %v5244_v25, %v5242_v21  ;;  %v5160_v5 = vld [vmem:[%s9340_s4 + $0x1b0] sm:$0xff]  ;;  %v5163_v9 = vld [vmem:[%s9340_s4 + $0x1c8] sm:$0xff]  ;;  %v7654_v21 = vpack.c.bf16 %v5260_v0, %v5258_v7  ;;  %v7656_v25 = vpack.c.bf16 %v5265_v13, %v5263_v8  ;;  %v5278_v0 = vld [vmem:[%s9340_s4 + $0x560] sm:$0xff] }
 0x39f   : > { %7633 = vmatprep.subr.bf16.mxu0 %v7632_v6  ;;  %v5165_v6 = vld [vmem:[%s9340_s4 + $0x1d8] sm:$0xff]  ;;  %v7554_v12 = vpack.c.bf16 %v5160_v5, %v5158_v4  ;;  %v5672_v49 = vld [vmem:[%s9342_s6 + $0x10] sm:$0xff]  ;;  %v5674_v5 = vld [vmem:[%s9342_s6 + $0x20] sm:$0xff] }
 0x3a0   : > { %7547 = vmatpush1.bf16.msra.mxu1 %v7546_v58  ;;  %v7556_v14 = vpack.c.bf16 %v5165_v6, %v5163_v9  ;;  %v5272_v58 = vld [vmem:[%s9340_s4 + $0x530] sm:$0xff]  ;;  %v5675_v9 = vld [vmem:[%s9342_s6 + $0x28] sm:$0xff]  ;;  %v5286_v36 = vld [vmem:[%s9340_s4 + $0x5a0] sm:$0xff] }
 0x3a1   : > { %7549 = vmatprep.subr.bf16.mxu1 %v7548_v35  ;;  %v7726_v35 = vpack.c.bf16 %v5671_v1, %v5670_v40  ;;  %v7666_v16 = vpack.c.bf16 %v5272_v58, %v5270_v27  ;;  %v5692_v6 = vld [vmem:[%s9342_s6 + $0xb0] sm:$0xff]  ;;  %v7734_v13 = vpack.c.bf16 %v5675_v9, %v5674_v5  ;;  %v5302_v5 = vld [vmem:[%s9340_s4 + $0x620] sm:$0xff] }
 0x3a2   : > { %7635 = vmatpush1.bf16.msra.mxu0 %v7634_v18  ;;  %v5167_v18 = vld [vmem:[%s9340_s4 + $0x1e8] sm:$0xff]  ;;  %v5280_v8 = vld [vmem:[%s9340_s4 + $0x570] sm:$0xff] }
 0x3a3   : > { %7637 = vmatprep.subr.bf16.mxu0 %v7636_v19  ;;  %v5169_v19 = vld [vmem:[%s9340_s4 + $0x1f8] sm:$0xff]  ;;  %v5680_v1 = vld [vmem:[%s9342_s6 + $0x50] sm:$0xff] }
 0x3a4   : > { %7551 = vmatpush1.bf16.msra.mxu1 %v7550_v61  ;;  %v7560_v29 = vpack.c.bf16 %v5169_v19, %v5167_v18  ;;  %v5276_v61 = vld [vmem:[%s9340_s4 + $0x550] sm:$0xff]  ;;  %v5677_v18 = vld [vmem:[%s9342_s6 + $0x38] sm:$0xff]  ;;  %v5694_v19 = vld [vmem:[%s9342_s6 + $0xc0] sm:$0xff] }
 0x3a5   : > { %7553 = vmatprep.subr.bf16.mxu1 %v7552_v3  ;;  %v7730_v3 = vpack.c.bf16 %v5673_v53, %v5672_v49  ;;  %v7738_v28 = vpack.c.bf16 %v5677_v18, %v5676_v17  ;;  %v5292_v27 = vld [vmem:[%s9340_s4 + $0x5d0] sm:$0xff]  ;;  %v5294_v49 = vld [vmem:[%s9340_s4 + $0x5e0] sm:$0xff] }
 0x3a6   : > { %7639 = vmatpush1.bf16.msra.mxu0 %v7638_v56  ;;  %v5686_v56 = vld [vmem:[%s9342_s6 + $0x80] sm:$0xff]  ;;  %v5296_v53 = vld [vmem:[%s9340_s4 + $0x5f0] sm:$0xff] }
 0x3a7   : > { %7641 = vmatprep.subr.bf16.mxu0 %v7640_v31  ;;  %v5687_v31 = vld [vmem:[%s9342_s6 + $0x88] sm:$0xff]  ;;  %v5304_v9 = vld [vmem:[%s9340_s4 + $0x630] sm:$0xff]  ;;  %v5310_v17 = vld [vmem:[%s9340_s4 + $0x660] sm:$0xff] }
 0x3a8   : > { %7555 = vmatpush1.bf16.msra.mxu1 %v7554_v12  ;;  %v7724_v51 = vpack.c.bf16 %v5687_v31, %v5686_v56  ;;  %v5283_v12 = vld [vmem:[%s9340_s4 + $0x588] sm:$0xff]  ;;  %v5696_v31 = vld [vmem:[%s9342_s6 + $0xd0] sm:$0xff] }
 0x3a9   : > { %7557 = vmatprep.subr.bf16.mxu1 %v7556_v14  ;;  %v5285_v14 = vld [vmem:[%s9340_s4 + $0x598] sm:$0xff]  ;;  %v5679_v56 = vld [vmem:[%s9342_s6 + $0x48] sm:$0xff]  ;;  %v5312_v18 = vld [vmem:[%s9340_s4 + $0x670] sm:$0xff] }
 0x3aa   : > { %7643 = vmatpush1.bf16.msra.mxu0 %v7642_v41  ;;  %v5688_v41 = vld [vmem:[%s9342_s6 + $0x90] sm:$0xff]  ;;  %v7676_v23 = vpack.c.bf16 %v5285_v14, %v5283_v12  ;;  %v7742_v37 = vpack.c.bf16 %v5679_v56, %v5678_v30  ;;  %v5318_v30 = vld [vmem:[%s9340_s4 + $0x6a0] sm:$0xff] }
 0x3ab   : > { %7645 = vmatprep.subr.bf16.mxu0 %v7644_v46  ;;  %v5689_v46 = vld [vmem:[%s9342_s6 + $0x98] sm:$0xff]  ;;  %v5308_v12 = vld [vmem:[%s9340_s4 + $0x650] sm:$0xff] }
 0x3ac   : > { %7559 = vmatpush1.bf16.msra.mxu1 %v7558_v26  ;;  %v7728_v57 = vpack.c.bf16 %v5689_v46, %v5688_v41  ;;  %v5287_v26 = vld [vmem:[%s9340_s4 + $0x5a8] sm:$0xff]  ;;  %v5681_v41 = vld [vmem:[%s9342_s6 + $0x58] sm:$0xff]  ;;  %v7682_v46 = vpack.c.bf16 %v5288_v39, %v5286_v36  ;;  %v5320_v56 = vld [vmem:[%s9340_s4 + $0x6b0] sm:$0xff] }
 0x3ad   : > { %7561 = vmatprep.subr.bf16.mxu1 %v7560_v29  ;;  %v5289_v29 = vld [vmem:[%s9340_s4 + $0x5b8] sm:$0xff]  ;;  %v7746_v58 = vpack.c.bf16 %v5681_v41, %v5680_v1  ;;  %v5322_v36 = vld [vmem:[%s9340_s4 + $0x6c0] sm:$0xff]  ;;  %v5324_v39 = vld [vmem:[%s9340_s4 + $0x6d0] sm:$0xff] }
 0x3ae   : > { %7647 = vmatpush1.bf16.msra.mxu0 %v7646_v54  ;;  %v5690_v54 = vld [vmem:[%s9342_s6 + $0xa0] sm:$0xff]  ;;  %v7680_v33 = vpack.c.bf16 %v5289_v29, %v5287_v26  ;;  %v5319_v26 = vld [vmem:[%s9340_s4 + $0x6a8] sm:$0xff]  ;;  %v5328_v41 = vld [vmem:[%s9340_s4 + $0x6f0] sm:$0xff] }
 0x3af   : > { %7649 = vmatprep.subr.bf16.mxu0 %v7648_v55  ;;  %v5691_v55 = vld [vmem:[%s9342_s6 + $0xa8] sm:$0xff]  ;;  %v5326_v1 = vld [vmem:[%s9340_s4 + $0x6e0] sm:$0xff] }
 0x3b0   : > { %7563 = vmatpush1.bf16.msra.mxu1 %v7562_v45  ;;  %v7732_v4 = vpack.c.bf16 %v5691_v55, %v5690_v54  ;;  %v5291_v45 = vld [vmem:[%s9340_s4 + $0x5c8] sm:$0xff]  ;;  %v5301_v55 = vld [vmem:[%s9340_s4 + $0x618] sm:$0xff] }
 0x3b1   : > { %7725 = vmatprep.subr.bf16.mxu1 %v7724_v51  ;;  %v5293_v51 = vld [vmem:[%s9340_s4 + $0x5d8] sm:$0xff]  ;;  %v5299_v54 = vld [vmem:[%s9340_s4 + $0x608] sm:$0xff] }
 0x3b2   : > { %7651 = vmatpush1.bf16.msra.mxu0 %v7650_v10  ;;  %v5693_v10 = vld [vmem:[%s9342_s6 + $0xb8] sm:$0xff] }
 0x3b3   : > { %7653 = vmatprep.subr.bf16.mxu0 %v7652_v22  ;;  %5449 = vmatmul.mubr.f32.vlgmr.msra.gmra.mrb[0].mxu1 %v8615_v20  ;;  %v5281_v20 = vld [vmem:[%s9340_s4 + $0x578] sm:$0xff]  ;;  %v7670_v22 = vpack.c.bf16 %v5276_v61, %v5274_v60  ;;  %v7736_v15 = vpack.c.bf16 %v5693_v10, %v5692_v6  ;;  %v5298_v60 = vld [vmem:[%s9340_s4 + $0x600] sm:$0xff]  ;;  %v5300_v61 = vld [vmem:[%s9340_s4 + $0x610] sm:$0xff] }
 0x3b4   : > { %7727 = vmatpush3.bf16.msra.mxu1 %v7726_v35  ;;  %v7672_v7 = vpack.c.bf16 %v5281_v20, %v5279_v63  ;;  %v5297_v35 = vld [vmem:[%s9340_s4 + $0x5f8] sm:$0xff]  ;;  %v5303_v63 = vld [vmem:[%s9340_s4 + $0x628] sm:$0xff]  ;;  %v7694_v20 = vpack.c.bf16 %v5300_v61, %v5298_v60 }
 0x3b5   : > { %7729 = vmatprep.subr.bf16.mxu1 %v7728_v57  ;;  %v7688_v57 = vpack.c.bf16 %v5297_v35, %v5295_v44  ;;  %v5307_v6 = vld [vmem:[%s9340_s4 + $0x648] sm:$0xff]  ;;  %v5309_v10 = vld [vmem:[%s9340_s4 + $0x658] sm:$0xff] }
 0x3b6   : > { %7655 = vmatpush1.bf16.msra.mxu0 %v7654_v21  ;;  %v5695_v21 = vld [vmem:[%s9342_s6 + $0xc8] sm:$0xff] }
 0x3b7   : > { %7657 = vmatprep.subr.bf16.mxu0 %v7656_v25  ;;  %v7674_v25 = vpack.c.bf16 %v5280_v8, %v5278_v0  ;;  %v7740_v34 = vpack.c.bf16 %v5695_v21, %v5694_v19  ;;  %v7700_v0 = vpack.c.bf16 %v5309_v10, %v5307_v6  ;;  %v5306_v8 = vld [vmem:[%s9340_s4 + $0x640] sm:$0xff]  ;;  %v5315_v19 = vld [vmem:[%s9340_s4 + $0x688] sm:$0xff]  ;;  %v5317_v21 = vld [vmem:[%s9340_s4 + $0x698] sm:$0xff] }
 0x3b8   : > { %7731 = vmatpush3.bf16.msra.mxu1 %v7730_v3  ;;  %v5305_v3 = vld [vmem:[%s9340_s4 + $0x638] sm:$0xff]  ;;  %v7702_v14 = vpack.c.bf16 %v5308_v12, %v5306_v8  ;;  %v5780_v10 = vld [vmem:[%s9344_s8] sm:$0xff] }
 0x3b9   : > { %7733 = vmatprep.subr.bf16.mxu1 %v7732_v4  ;;  %v7696_v4 = vpack.c.bf16 %v5305_v3, %v5303_v63 }
 0x3ba   : > { %7659 = vmatpush1.bf16.msra.mxu0 %v7658_v52  ;;  %v5697_v52 = vld [vmem:[%s9342_s6 + $0xd8] sm:$0xff] }
 0x3bb   : > { %7661 = vmatprep.subr.bf16.mxu0 %v7660_v32  ;;  %v7678_v32 = vpack.c.bf16 %v5284_v24, %v5282_v38  ;;  %v7744_v40 = vpack.c.bf16 %v5697_v52, %v5696_v31  ;;  %v5314_v38 = vld [vmem:[%s9340_s4 + $0x680] sm:$0xff]  ;;  %v5316_v24 = vld [vmem:[%s9340_s4 + $0x690] sm:$0xff]  ;;  %v5323_v31 = vld [vmem:[%s9340_s4 + $0x6c8] sm:$0xff] }
 0x3bc   : > { %7735 = vmatpush3.bf16.msra.mxu1 %v7734_v13  ;;  %v5311_v13 = vld [vmem:[%s9340_s4 + $0x668] sm:$0xff]  ;;  %v7710_v29 = vpack.c.bf16 %v5316_v24, %v5314_v38  ;;  %v5325_v52 = vld [vmem:[%s9340_s4 + $0x6d8] sm:$0xff]  ;;  %v5790_v24 = vld [vmem:[%s9344_s8 + $0x50] sm:$0xff] }
 0x3bd   : > { %7737 = vmatprep.subr.bf16.mxu1 %v7736_v15 }
 0x3be   : > { %7663 = vmatpush1.bf16.msra.mxu0 %v7662_v42  ;;  %v7684_v42 = vpack.c.bf16 %v5293_v51, %v5291_v45  ;;  %v5327_v45 = vld [vmem:[%s9340_s4 + $0x6e8] sm:$0xff]  ;;  %v7718_v51 = vpack.c.bf16 %v5324_v39, %v5322_v36 }
 0x3bf   : > { %7665 = vmatprep.subr.bf16.mxu0 %v7664_v43  ;;  %v5290_v43 = vld [vmem:[%s9340_s4 + $0x5c0] sm:$0xff] }
 0x3c0   : > { %7739 = vmatpush3.bf16.msra.mxu1 %v7738_v28  ;;  %v7686_v47 = vpack.c.bf16 %v5292_v27, %v5290_v43  ;;  %v5321_v28 = vld [vmem:[%s9340_s4 + $0x6b8] sm:$0xff]  ;;  %v5698_v27 = vld [vmem:[%s9342_s6 + $0xe0] sm:$0xff] }
 0x3c1   : > { %7741 = vmatprep.subr.bf16.mxu1 %v7740_v34  ;;  %v7712_v34 = vpack.c.bf16 %v5321_v28, %v5319_v26  ;;  %v5791_v26 = vld [vmem:[%s9344_s8 + $0x58] sm:$0xff] }
 0x3c2   : > { %7667 = vmatpush1.bf16.msra.mxu0 %v7666_v16  ;;  %v7690_v16 = vpack.c.bf16 %v5296_v53, %v5294_v49  ;;  %v5684_v53 = vld [vmem:[%s9342_s6 + $0x70] sm:$0xff]  ;;  %v7772_v28 = vpack.c.bf16 %v5791_v26, %v5790_v24 }
 0x3c3   : > { %7669 = vmatprep.subr.bf16.mxu0 %v7668_v59  ;;  %v7692_v59 = vpack.c.bf16 %v5301_v55, %v5299_v54  ;;  %v5685_v54 = vld [vmem:[%s9342_s6 + $0x78] sm:$0xff] }
 0x3c4   : > { %7743 = vmatpush3.bf16.msra.mxu1 %v7742_v37  ;;  %v5329_v37 = vld [vmem:[%s9340_s4 + $0x6f8] sm:$0xff]  ;;  %v7754_v55 = vpack.c.bf16 %v5685_v54, %v5684_v53 }
 0x3c5   : > { %7745 = vmatprep.subr.bf16.mxu1 %v7744_v40  ;;  %v7720_v40 = vpack.c.bf16 %v5329_v37, %v5327_v45 }
 0x3c6   : > { %7671 = vmatpush1.bf16.msra.mxu0 %v7670_v22  ;;  %v7698_v22 = vpack.c.bf16 %v5304_v9, %v5302_v5 }
 0x3c7   : > { %7673 = vmatprep.subr.bf16.mxu0 %v7672_v7  ;;  %v7896_v7 = vmov 0.0  }
 0x3c8   : > { %7747 = vmatpush3.bf16.msra.mxu1 %v7746_v58  ;;  %v5699_v58 = vld [vmem:[%s9342_s6 + $0xe8] sm:$0xff] }
 0x3c9   : > { %v7748_v44 = vpack.c.bf16 %v5699_v58, %v5698_v27 }
 0x3ca   : > { %7675 = vmatpush1.bf16.msra.mxu0 %v7674_v25  ;;  %v7706_v25 = vpack.c.bf16 %v5312_v18, %v5310_v17  ;;  %v5786_v18 = vld [vmem:[%s9344_s8 + $0x30] sm:$0xff] }
 0x3cb   : > { %7677 = vmatprep.subr.bf16.mxu0 %v7676_v23  ;;  %v7708_v23 = vpack.c.bf16 %v5317_v21, %v5315_v19  ;;  %7749 = vmatprep.subr.bf16.mxu1 %v7748_v44  ;;  %v5787_v19 = vld [vmem:[%s9344_s8 + $0x38] sm:$0xff] }
 0x3cc   : > { %v7766_v21 = vpack.c.bf16 %v5787_v19, %v5786_v18 }
 0x3ce   : > { %7679 = vmatpush1.bf16.msra.mxu0 %v7678_v32  ;;  %v7714_v32 = vpack.c.bf16 %v5320_v56, %v5318_v30  ;;  %v5794_v56 = vld [vmem:[%s9344_s8 + $0x70] sm:$0xff] }
 0x3cf   : > { %7681 = vmatprep.subr.bf16.mxu0 %v7680_v33  ;;  %v7716_v33 = vpack.c.bf16 %v5325_v52, %v5323_v31  ;;  %v5795_v31 = vld [vmem:[%s9344_s8 + $0x78] sm:$0xff] }
 0x3d0   : > { %v7778_v52 = vpack.c.bf16 %v5795_v31, %v5794_v56 }
 0x3d2   : > { %7683 = vmatpush1.bf16.msra.mxu0 %v7682_v46  ;;  %v5361_v46 = vcombine.high %v8767_v48, %v8767_v48  ;;  %v5682_v48 = vld [vmem:[%s9342_s6 + $0x60] sm:$0xff] }
 0x3d3   : > { %7685 = vmatprep.subr.bf16.mxu0 %v7684_v42  ;;  %v7722_v42 = vpack.c.bf16 %v5328_v41, %v5326_v1 }
 0x3d4   : > { %v5375_v43 = vrot.slane %v5361_v46, %v7998_v50  ;;  %v5683_v50 = vld [vmem:[%s9342_s6 + $0x68] sm:$0xff] }
 0x3d5   : > { %v7750_v35 = vpack.c.bf16 %v5683_v50, %v5682_v48 }
 0x3d6   : > { %7687 = vmatpush1.bf16.msra.mxu0 %v7686_v47  ;;  %v5700_v47 = vld [vmem:[%s9342_s6 + $0xf0] sm:$0xff] }
 0x3d7   : > { %7689 = vmatprep.subr.bf16.mxu0 %v7688_v57  ;;  %7751 = vmatpush3.bf16.msra.mxu1 %v7750_v35  ;;  %v5701_v57 = vld [vmem:[%s9342_s6 + $0xf8] sm:$0xff] }
 0x3d8   : > { %v7752_v49 = vpack.c.bf16 %v5701_v57, %v5700_v47 }
 0x3da   : > { %7691 = vmatpush1.bf16.msra.mxu0 %v7690_v16  ;;  %7753 = vmatprep.subr.bf16.mxu1 %v7752_v49  ;;  %v7897_v16 = vmov 0.0|0.0  }
 0x3db   : > { %7693 = vmatprep.subr.bf16.mxu0 %v7692_v59  ;;  %7755 = vmatpush3.bf16.msra.mxu1 %v7754_v55  ;;  %v5330_v59 = vld [vmem:[%s9341_s5] sm:$0x3] }
 0x3dc   : > { %7756 = vmatprep.subr.bf16.mxu1 %v7897_v16  ;;  %v5335_v60 = vrot.slane %v5330_v59, %v8489_v11 }
 0x3dd   : > { %5591 = vmatmul.mubr.f32.vlgmr.msra.gmra.mrb[0].mxu0 %v8789_v2  ;;  %v5313_v2 = vld [vmem:[%s9340_s4 + $0x678] sm:$0xff] }
 0x3de   : > { %7695 = vmatpush1.bf16.msra.mxu0 %v7694_v20  ;;  %5661 = vmatprep.mubr.f32.mxu0 %v7896_v7  ;;  %v7704_v15 = vpack.c.bf16 %v5313_v2, %v5311_v13  ;;  %v5339_v20 = vrot.slane %v5330_v59, %v8492_v62  ;;  %v5782_v62 = vld [vmem:[%s9344_s8 + $0x10] sm:$0xff]  ;;  %v5783_v13 = vld [vmem:[%s9344_s8 + $0x18] sm:$0xff] }
 0x3df   : > { %7697 = vmatprep.subr.bf16.mxu0 %v7696_v4  ;;  %v7760_v2 = vpack.c.bf16 %v5783_v13, %v5782_v62 }
 0x3e2   : > { %7699 = vmatpush1.bf16.msra.mxu0 %v7698_v22  ;;  %v5781_v22 = vld [vmem:[%s9344_s8 + $0x8] sm:$0xff] }
 0x3e3   : > { %7701 = vmatprep.subr.bf16.mxu0 %v7700_v0  ;;  %v7757_v11 = vpack.c.bf16 %v5781_v22, %v5780_v10 }
 0x3e6   : > { %7703 = vmatpush1.bf16.msra.mxu0 %v7702_v14  ;;  %v5784_v14 = vld [vmem:[%s9344_s8 + $0x20] sm:$0xff] }
 0x3e7   : > { %7705 = vmatprep.subr.bf16.mxu0 %v7704_v15  ;;  %v5785_v15 = vld [vmem:[%s9344_s8 + $0x28] sm:$0xff] }
 0x3e8   : > { %v7763_v17 = vpack.c.bf16 %v5785_v15, %v5784_v14 }
 0x3ea   : > { %7707 = vmatpush1.bf16.msra.mxu0 %v7706_v25  ;;  %v5788_v25 = vld [vmem:[%s9344_s8 + $0x40] sm:$0xff] }
 0x3eb   : > { %7709 = vmatprep.subr.bf16.mxu0 %v7708_v23  ;;  %v5789_v23 = vld [vmem:[%s9344_s8 + $0x48] sm:$0xff] }
 0x3ec   : > { %v7769_v38 = vpack.c.bf16 %v5789_v23, %v5788_v25 }
 0x3ee   : > { %7711 = vmatpush1.bf16.msra.mxu0 %v7710_v29  ;;  %v5792_v29 = vld [vmem:[%s9344_s8 + $0x60] sm:$0xff] }
 0x3ef   : > { %7713 = vmatprep.subr.bf16.mxu0 %v7712_v34  ;;  %v5793_v34 = vld [vmem:[%s9344_s8 + $0x68] sm:$0xff] }
 0x3f0   : > { %v7775_v30 = vpack.c.bf16 %v5793_v34, %v5792_v29 }
 0x3f2   : > { %7715 = vmatpush1.bf16.msra.mxu0 %v7714_v32 }
 0x3f3   : > { %7717 = vmatprep.subr.bf16.mxu0 %v7716_v33  ;;  %v5940_v33 = vld [vmem:[%s9343_s7] ss:$0 sm:$0xff] }
 0x3f6   : > { %7719 = vmatpush1.bf16.msra.mxu0 %v7718_v51  ;;  %v5941_v51 = vld [vmem:[%s9345_s9] ss:$0 sm:$0xff] }
 0x3f7   : > { %7721 = vmatprep.subr.bf16.mxu0 %v7720_v40 }
 0x3fa   : > { %7723 = vmatpush1.bf16.msra.mxu0 %v7722_v42 }
 0x3fd   : > { %5662 = vmatmul.mubr.f32.vlgmr.msra.gmra.mrb[0].mxu0 %v5375_v43 }
 0x486   : > { %v5450_v61 = vpop.f32.mrb[0].mxu1 }
 0x487   : > { %v5451_v63 = vadd.f32 %v5450_v61, %v5335_v60  ;;  %v5452_v3 = vpop.f32.mrb[1].mxu1 }
 0x488   : > { %v5453_v4 = vadd.f32 %v5452_v3, %v5339_v20 }
 0x4d0   : > { %v5663_v5 = vpop.f32.mrb[0].mxu0 }
 0x4d1   : > { %v7811_v9 = vadd.f32 %v5663_v5, %v5451_v63  ;;  %v5665_v6 = vpop.f32.mrb[1].mxu0 }
 0x4d2   : > { %v7813_v0 = vadd.f32 %v5665_v6, %v5453_v4 }
 0x4d3   : > { %v5668_v12 = vmax.f32 %v7811_v9, 0.0 }
 0x4d4   : > { %v5669_v8 = vmax.f32 %v7813_v0, 0.0 }
 0x4d6   : > { %5773 = vmatprep.mubr.f32.mxu1 %v5669_v8 }
 0x4d7   : > { %5774 = vmatmul.mubr.f32.vlgmr.msra.gmra.mrb[2].mxu1 %v5668_v12 }
 0x4d8   : > { %7758 = vmatpush3.bf16.msra.mxu1 %v7757_v11  ;;  %6257 = vmatprep.mubr.msk.f32.mxu1 %vm7898_vm1, %v7896_v7 }
 0x4d9   : > { %7759 = vmatprep.subr.bf16.mxu1 %v7897_v16 }
 0x4dc   : > { %7761 = vmatpush3.bf16.msra.mxu1 %v7760_v2 }
 0x4dd   : > { %7762 = vmatprep.subr.bf16.mxu1 %v7897_v16 }
 0x4e0   : > { %7764 = vmatpush3.bf16.msra.mxu1 %v7763_v17 }
 0x4e1   : > { %7765 = vmatprep.subr.bf16.mxu1 %v7897_v16 }
 0x4e4   : > { %7767 = vmatpush3.bf16.msra.mxu1 %v7766_v21 }
 0x4e5   : > { %7768 = vmatprep.subr.bf16.mxu1 %v7897_v16 }
 0x4e8   : > { %7770 = vmatpush3.bf16.msra.mxu1 %v7769_v38 }
 0x4e9   : > { %7771 = vmatprep.subr.bf16.mxu1 %v7897_v16 }
 0x4ec   : > { %7773 = vmatpush3.bf16.msra.mxu1 %v7772_v28 }
 0x4ed   : > { %7774 = vmatprep.subr.bf16.mxu1 %v7897_v16 }
 0x4f0   : > { %7776 = vmatpush3.bf16.msra.mxu1 %v7775_v30 }
 0x4f1   : > { %7777 = vmatprep.subr.bf16.mxu1 %v7897_v16 }
 0x4f4   : > { %7779 = vmatpush3.bf16.msra.mxu1 %v7778_v52 }
 0x5aa   : > { %v6170_v32 = vpop.f32.mrb[2].mxu1 }
 0x5ab   : > { %v6171_v36 = vpop.f32.mrb[3].mxu1 }
 0x5ac   : > { %v6172_v39 = vadd.f32 %v6171_v36, %v6170_v32 }
 0x5ae   : > { %v5776_v45 = vadd.f32 %v6172_v39, %v5940_v33 }
 0x5b0   : > { %v5779_v37 = vmax.f32 %v5776_v45, 0.0 }
 0x5b2   : > { %6258 = vmatmul.mubr.f32.vlgmr.msra.gmra.mrb[4].mxu1 %v5779_v37 }
 0x685   : > { %v5869_v40 = vpop.f32.mrb[4].mxu1 }
 0x686   : > { %v5870_v1 = vadd.f32 %v5941_v51, %v5869_v40  ;;  %v6259_v41 = vpop.f32.mrb[5].mxu1 }
 0x688   : > { %5873 = vst [vmem:[#allocation3] sm:$0x3] %v5870_v1 }
 0x689 PF: > { %p7831_p7 = scmp.eq.s32.totalorder %s7961_s14, 3  ;;  %s7899_s21 = smov [#allocation3]  }
 0x68a   : > { %s5881_s22 = sshll.u32 %s7899_s21, 4  ;;  %s5882_s22 = int_to_ptr.vmem [resolvable:$true] %s5881_s22 }
 0x68b   : > { %s7853_s23 = scalar_lea.vmem %s5882_s22, 32  ;;  %p7860_p11 = scmp.lt.s32.totalorder %s5882_s22, %s5882_s22 }
 0x68c   : > { %p7854_p8 = scmp.ne.s32.totalorder %s5882_s22, %s7853_s23  ;;  %p7861_p12 = scmp.lt.s32.totalorder %s7853_s23, %s7853_s23 }
 0x68e   : > { %p7855_p9 = pnand %p7854_p8, %p7831_p7  ;;  %p7862_p13 = por %p7861_p12, %p7860_p11 }
 0x690   : > { %p7856_p10 = pneg %p7855_p9 }
 0x692   : > { %p7863_p0 = pnand %p7862_p13, %p7856_p10 }
 0x694   : > { %7866 = shalt.err (!%p7863_p0)
}
 0x695   : > { %s7867_s26 = scalar_lea.hbm %s9346_s10, 32 }
 0x696   : > { %p7868_p1 = scmp.ne.s32.totalorder %s9346_s10, %s7867_s26  ;;  %p7873_p4 = scmp.lt.u32.totalorder %s7867_s26, %s9346_s10 }
 0x698   : > { %p7869_p2 = pnand %p7868_p1, %p7831_p7 }
 0x69a   : > { %p7870_p3 = pneg %p7869_p2 }
 0x69c   : > { %p7875_p5 = pnand %p7873_p4, %p7870_p3 }
 0x69e   : > { %7878 = shalt.err (!%p7875_p5)
}
 0x69f   : > { %7828 = dma.vmem_to_hbm [thread:$0]  (%p7831_p7), %s5882_s22, 32, %s9346_s10, [#allocation4]  }
 0x6a0   : > { %7884 = dma.done.wait (%p7831_p7), [#allocation4], 32  }
 0x6a1   : > { %7886 = vsyncadd (%p7831_p7), [#allocation4], 4294967264 }
 0x6a2 PF: > { %s21_s13 = sadd.s32 1, %s7889_s13  }
 0x6a3   : > { %p18_p6 = scmp.ge.s32.totalorder %s21_s13, 6  }
 0x6a5   :  { %20 = sbr.rel (!%p18_p6) target bundleno = 1 (0x1), region = 98 }
 0x6ac   :  { %5894 = vsyncpa [#allocation4], 1 }
 0x6ad   :  { %5896 = vsyncpa [#allocation4 + $0x1], 1 }

</bundles_post_ra>
